<compile_context>
chip_gen: v6e
topology: v6e:2x2x1
jax: 0.10.0
libtpu: 0.0.40
codegen_flags: <defaults>
</compile_context>

<pallas_src>
import functools
import math

import jax
import jax.numpy as jnp
from jax.experimental import pallas as pl
from jax.experimental.pallas import tpu as pltpu


# ----------------------------- Pallas kernel ------------------------------- #
def conv_bn_silu_kernel(x_ref, w_ref, shift_ref, o_ref, *,
                        KH, KW, sh, sw, TH, Wo, Cin, fuse_taps):
    """Fused conv(+BN-scale folded) + BN-shift + SiLU for one (batch, row-tile).

    x_ref:     (1, Hp_pad, Wp, Cin)  bf16 zero-padded NHWC image of this batch elem
    w_ref:     (KH*KW*Cin, Cout)     bf16 conv weight with BN scale folded in
    shift_ref: (1, Cout)             f32  folded BN shift
    o_ref:     (1, TH, Wo, Cout)     bf16 output tile
    """
    ht = pl.program_id(1)
    h_base = ht * (TH * sh)                       # first padded input row needed
    if (TH * sh) % 8 == 0:                        # sublane-aligned dynamic start
        h_base = pl.multiple_of(h_base, 8)

    def tap(i, j):
        # Whole-tile tap (i, j): rows h_base+i, h_base+i+sh, ... ; cols j, j+sw, ...
        hsl = pl.ds(h_base + i, TH) if sh == 1 else pl.ds(h_base + i, TH, stride=sh)
        wsl = pl.ds(j, Wo) if sw == 1 else pl.ds(j, Wo, stride=sw)
        t = x_ref[0, hsl, wsl, :]                 # (TH, Wo, Cin) bf16, sliced from ref
        return t.reshape(TH * Wo, Cin)            # leading-dim merge: free reshape

    if fuse_taps:
        # Small-Cin path: one im2col matmul so the MXU contraction is KH*KW*Cin.
        cols = [tap(i, j) for i in range(KH) for j in range(KW)]
        patches = jnp.concatenate(cols, axis=-1)              # (TH*Wo, KH*KW*Cin)
        acc = jnp.dot(patches, w_ref[...], preferred_element_type=jnp.float32)
    else:
        # Per-tap accumulating matmuls: no patches temp, no lane-axis concats.
        acc = None
        for i in range(KH):
            for j in range(KW):
                k0 = (i * KW + j) * Cin
                p = jnp.dot(tap(i, j), w_ref[k0:k0 + Cin, :],
                            preferred_element_type=jnp.float32)
                acc = p if acc is None else acc + p

    y = acc + shift_ref[...]                      # BN (scale already folded in w)
    y = y * jax.nn.sigmoid(y)                     # SiLU, f32 epilogue
    # Single fused store; reshape only splits leading dims (last dim unchanged).
    o_ref[...] = y.reshape(1, TH, Wo, y.shape[-1]).astype(o_ref.dtype)


# ------------------------------ tiling heuristic ---------------------------- #
def _choose_th(Ho, Wo, sh, N):
    """Row-tile size: ~1K matmul rows per step, TH*sh % 8 == 0 when possible."""
    th = max(1, min(Ho, 1024 // max(Wo, 1)))
    g = 8 // math.gcd(8, sh)                      # smallest g with g*sh % 8 == 0
    if th >= g:
        th = (th // g) * g
    # v7x has 2 TensorCores: make sure batch-1 inference still has >= 2 grid steps.
    if N == 1 and th >= Ho and Ho >= 2 * g:
        th = max(g, ((Ho // 2) // g) * g)
    return th


# ------------------------------ NHWC core ----------------------------------- #
def _conv_layer_nhwc(x_nhwc, weight, gamma, beta, running_mean, running_var,
                     stride, eps):
    """x_nhwc: (N, H, W, Cin) -> (N, Ho, Wo, Cout) bf16. Conv -> BN(eval) -> SiLU."""
    Cout, Cin, KH, KW = weight.shape
    sh, sw = stride
    ph, pw = (KH - 1) // 2, (KW - 1) // 2         # matches the module's autopad
    N, H, W, _ = x_nhwc.shape

    Ho = (H + 2 * ph - KH) // sh + 1
    Wo = (W + 2 * pw - KW) // sw + 1

    TH = _choose_th(Ho, Wo, sh, N)
    Ho_pad = -(-Ho // TH) * TH
    Hp_pad = max(H + 2 * ph, (Ho_pad - 1) * sh + KH)   # keep tap reads in-bounds
    Wp = W + 2 * pw
    K = KH * KW * Cin

    # Spatial zero-pad + bf16 cast. This fuses with the (mandatory) NCHW->NHWC
    # transpose in the caller into one XLA fusion: one read of x, one write of x_p.
    x_p = jnp.pad(x_nhwc, ((0, 0), (ph, Hp_pad - H - ph), (pw, pw), (0, 0)))
    x_p = x_p.astype(jnp.bfloat16)

    # Fold eval-mode BatchNorm: scale into the weights, shift as a per-channel add.
    scale = gamma / jnp.sqrt(running_var + eps)                     # (Cout,)
    shift = (beta - running_mean * scale).reshape(1, Cout).astype(jnp.float32)
    # (Cout, Cin, KH, KW) -> (KH, KW, Cin, Cout) -> (K, Cout): matches tap order.
    w2d = (jnp.transpose(weight, (2, 3, 1, 0)).reshape(K, Cout)
           * scale[None, :]).astype(jnp.bfloat16)

    fuse_taps = Cin < 64                           # small-Cin: keep im2col form
    kernel = functools.partial(conv_bn_silu_kernel, KH=KH, KW=KW, sh=sh, sw=sw,
                               TH=TH, Wo=Wo, Cin=Cin, fuse_taps=fuse_taps)

    # Advisory cost estimate so XLA schedules the boundary transposes around us.
    flops = 2 * N * Ho * Wo * Cout * K + 4 * N * Ho * Wo * Cout
    bytes_accessed = (N * Hp_pad * Wp * Cin * 2 + K * Cout * 2 + Cout * 4
                      + N * Ho_pad * Wo * Cout * 2)
    cost = pl.CostEstimate(flops=flops, transcendentals=N * Ho * Wo * Cout,
                           bytes_accessed=bytes_accessed)

    # Derive the scoped-VMEM limit from the actual chip (128 MiB v5e/v6e, 64 MiB v7x).
    try:
        vmem_cap = int(pltpu.get_tpu_info().vmem_capacity_bytes)
    except Exception:
        vmem_cap = 128 * 1024 * 1024
    vmem_limit = min(vmem_cap * 3 // 4, 100 * 1024 * 1024)

    out = pl.pallas_call(
        kernel,
        out_shape=jax.ShapeDtypeStruct((N, Ho_pad, Wo, Cout), jnp.bfloat16),
        grid_spec=pltpu.PrefetchScalarGridSpec(
            num_scalar_prefetch=0,
            grid=(N, Ho_pad // TH),
            in_specs=[
                # Padded image of this batch element; block index constant across
                # row tiles, so it is DMA'd once per image.
                pl.BlockSpec((1, Hp_pad, Wp, Cin), lambda n, ht: (n, 0, 0, 0)),
                # Grid-invariant weight / shift (fetched once).
                pl.BlockSpec((K, Cout), lambda n, ht: (0, 0)),
                pl.BlockSpec((1, Cout), lambda n, ht: (0, 0)),
            ],
            out_specs=pl.BlockSpec((1, TH, Wo, Cout), lambda n, ht: (n, ht, 0, 0)),
        ),
        compiler_params=pltpu.CompilerParams(
            dimension_semantics=("parallel", "parallel"),
            vmem_limit_bytes=vmem_limit,
        ),
        cost_estimate=cost,
    )(x_p, w2d, shift)

    return out[:, :Ho]                             # drop bottom row padding


# --------------------------- NCHW module wrapper ----------------------------- #
@functools.partial(jax.jit, static_argnames=("stride",))
def conv_layer_forward(x_nchw, weight, gamma, beta, running_mean, running_var,
                       stride=(1, 1), eps=1e-5):
    """ConvLayer forward (PyTorch NCHW interface): Conv2d(no bias)->BN(eval)->SiLU.

    x_nchw : (N, C_in, H, W),  weight : (C_out, C_in, KH, KW)
    returns: (N, C_out, H_out, W_out) float32
    """
    x_nhwc = jnp.transpose(x_nchw, (0, 2, 3, 1))   # boundary-only layout change
    out_nhwc = _conv_layer_nhwc(x_nhwc, weight, gamma, beta,
                                running_mean, running_var, stride, eps)
    return jnp.transpose(out_nhwc, (0, 3, 1, 2)).astype(jnp.float32)


# ------------------------------- reference ---------------------------------- #
def reference_forward(x, weight, gamma, beta, mean, var, stride, eps=1e-5):
    """Same math on bf16-rounded operands (kernel feeds the MXU bf16, f32 acc)."""
    KH, KW = weight.shape[2], weight.shape[3]
    scale = gamma / jnp.sqrt(var + eps)
    shift = beta - mean * scale
    w_eff = (weight * scale[:, None, None, None]).astype(jnp.bfloat16).astype(jnp.float32)
    xb = x.astype(jnp.bfloat16).astype(jnp.float32)
    conv = jax.lax.conv_general_dilated(
        xb, w_eff, window_strides=stride,
        padding=[((KH - 1) // 2, (KH - 1) // 2), ((KW - 1) // 2, (KW - 1) // 2)],
        dimension_numbers=("NCHW", "OIHW", "NCHW"))
    y = conv + shift[None, :, None, None]
    return y * jax.nn.sigmoid(y)


# -------------------------------- Driver ------------------------------------ #
if __name__ == "__main__":
    key = jax.random.PRNGKey(0)
    keys = jax.random.split(key, 8)

    def make_bn(kb, cout):
        g = 0.5 + jax.random.uniform(jax.random.fold_in(kb, 0), (cout,))
        b = 0.1 * jax.random.normal(jax.random.fold_in(kb, 1), (cout,))
        m = 0.1 * jax.random.normal(jax.random.fold_in(kb, 2), (cout,))
        v = 0.5 + jax.random.uniform(jax.random.fold_in(kb, 3), (cout,))
        return g, b, m, v

    # ---- Test 1: stem-like layer (small Cin -> fused im2col path) ----
    N, Cin, H, W = 2, 4, 16, 16
    Cout, KS = 8, 3
    stride = (1, 1)
    x = jax.random.normal(keys[0], (N, Cin, H, W), dtype=jnp.float32)
    w = jax.random.normal(keys[1], (Cout, Cin, KS, KS), dtype=jnp.float32) * 0.1
    g1, b1, m1, v1 = make_bn(keys[2], Cout)

    out = conv_layer_forward(x, w, g1, b1, m1, v1, stride=stride)
    out = jax.block_until_ready(out)
    ref = reference_forward(x, w, g1, b1, m1, v1, stride)
    assert out.shape == (N, Cout, H, W)
    assert jnp.allclose(out, ref, atol=2e-2, rtol=2e-2), \
        float(jnp.max(jnp.abs(out - ref)))

    # ---- Test 2: wider layer (Cin >= 64 -> per-tap accumulating matmuls) ----
    N2, Cin2, H2, W2 = 1, 64, 8, 8
    Cout2 = 32
    x2 = jax.random.normal(keys[3], (N2, Cin2, H2, W2), dtype=jnp.float32)
    w2 = jax.random.normal(keys[4], (Cout2, Cin2, KS, KS), dtype=jnp.float32) * 0.1
    g2, b2, m2, v2 = make_bn(keys[5], Cout2)

    out2 = conv_layer_forward(x2, w2, g2, b2, m2, v2, stride=stride)
    out2 = jax.block_until_ready(out2)
    ref2 = reference_forward(x2, w2, g2, b2, m2, v2, stride)
    assert out2.shape == (N2, Cout2, H2, W2)
    assert jnp.allclose(out2, ref2, atol=2e-2, rtol=2e-2), \
        float(jnp.max(jnp.abs(out2 - ref2)))

    print("KERNEL_OK")
</pallas_src>

<mosaic_0001>
module attributes {stable_mosaic.version = 11 : i64} {
  func.func @conv_bn_silu_kernel(%arg0: i32, %arg1: i32, %arg2: memref<1x18x18x4xbf16, #tpu.memory_space<vmem>>, %arg3: memref<36x8xbf16, #tpu.memory_space<vmem>>, %arg4: memref<1x8xf32, #tpu.memory_space<vmem>>, %arg5: memref<1x16x16x8xbf16, #tpu.memory_space<vmem>>) attributes {dimension_semantics = [#tpu.dimension_semantics<parallel>, #tpu.dimension_semantics<parallel>], iteration_bounds = array<i64: 2, 1>, scalar_prefetch = 0 : i64, scratch_operands = 0 : i64, tpu.core_type = #tpu.core_type<tc>, window_params = [{transform_indices = @transform_0, window_bounds = array<i64: 1, 18, 18, 4>}, {pipeline_mode = #tpu.pipeline_mode<synchronous>, transform_indices = @transform_1, window_bounds = array<i64: 36, 8>}, {pipeline_mode = #tpu.pipeline_mode<synchronous>, transform_indices = @transform_2, window_bounds = array<i64: 1, 8>}, {transform_indices = @transform_3, window_bounds = array<i64: 1, 16, 16, 8>}]} {
    %c16_i32 = arith.constant 16 : i32
    %0 = arith.muli %arg1, %c16_i32 : i32
    %1 = tpu.assume_multiple %0, 8 : i32
    %c0_i32 = arith.constant 0 : i32
    %2 = arith.addi %1, %c0_i32 : i32
    %c0 = arith.constant 0 : index
    %3 = arith.index_cast %2 : i32 to index
    %c0_0 = arith.constant 0 : index
    %c0_1 = arith.constant 0 : index
    %4 = vector.load %arg2[%c0, %3, %c0_0, %c0_1] : memref<1x18x18x4xbf16, #tpu.memory_space<vmem>>, vector<1x16x16x4xbf16>
    %5 = vector.shape_cast %4 : vector<1x16x16x4xbf16> to vector<16x16x4xbf16>
    %6 = vector.shape_cast %5 : vector<16x16x4xbf16> to vector<256x4xbf16>
    %c0_i32_2 = arith.constant 0 : i32
    %7 = arith.addi %1, %c0_i32_2 : i32
    %c0_3 = arith.constant 0 : index
    %8 = arith.index_cast %7 : i32 to index
    %c1 = arith.constant 1 : index
    %c0_4 = arith.constant 0 : index
    %9 = vector.load %arg2[%c0_3, %8, %c1, %c0_4] : memref<1x18x18x4xbf16, #tpu.memory_space<vmem>>, vector<1x16x16x4xbf16>
    %10 = vector.shape_cast %9 : vector<1x16x16x4xbf16> to vector<16x16x4xbf16>
    %11 = vector.shape_cast %10 : vector<16x16x4xbf16> to vector<256x4xbf16>
    %c0_i32_5 = arith.constant 0 : i32
    %12 = arith.addi %1, %c0_i32_5 : i32
    %c0_6 = arith.constant 0 : index
    %13 = arith.index_cast %12 : i32 to index
    %c2 = arith.constant 2 : index
    %c0_7 = arith.constant 0 : index
    %14 = vector.load %arg2[%c0_6, %13, %c2, %c0_7] : memref<1x18x18x4xbf16, #tpu.memory_space<vmem>>, vector<1x16x16x4xbf16>
    %15 = vector.shape_cast %14 : vector<1x16x16x4xbf16> to vector<16x16x4xbf16>
    %16 = vector.shape_cast %15 : vector<16x16x4xbf16> to vector<256x4xbf16>
    %c1_i32 = arith.constant 1 : i32
    %17 = arith.addi %1, %c1_i32 : i32
    %c0_8 = arith.constant 0 : index
    %18 = arith.index_cast %17 : i32 to index
    %c0_9 = arith.constant 0 : index
    %c0_10 = arith.constant 0 : index
    %19 = vector.load %arg2[%c0_8, %18, %c0_9, %c0_10] : memref<1x18x18x4xbf16, #tpu.memory_space<vmem>>, vector<1x16x16x4xbf16>
    %20 = vector.shape_cast %19 : vector<1x16x16x4xbf16> to vector<16x16x4xbf16>
    %21 = vector.shape_cast %20 : vector<16x16x4xbf16> to vector<256x4xbf16>
    %c1_i32_11 = arith.constant 1 : i32
    %22 = arith.addi %1, %c1_i32_11 : i32
    %c0_12 = arith.constant 0 : index
    %23 = arith.index_cast %22 : i32 to index
    %c1_13 = arith.constant 1 : index
    %c0_14 = arith.constant 0 : index
    %24 = vector.load %arg2[%c0_12, %23, %c1_13, %c0_14] : memref<1x18x18x4xbf16, #tpu.memory_space<vmem>>, vector<1x16x16x4xbf16>
    %25 = vector.shape_cast %24 : vector<1x16x16x4xbf16> to vector<16x16x4xbf16>
    %26 = vector.shape_cast %25 : vector<16x16x4xbf16> to vector<256x4xbf16>
    %c1_i32_15 = arith.constant 1 : i32
    %27 = arith.addi %1, %c1_i32_15 : i32
    %c0_16 = arith.constant 0 : index
    %28 = arith.index_cast %27 : i32 to index
    %c2_17 = arith.constant 2 : index
    %c0_18 = arith.constant 0 : index
    %29 = vector.load %arg2[%c0_16, %28, %c2_17, %c0_18] : memref<1x18x18x4xbf16, #tpu.memory_space<vmem>>, vector<1x16x16x4xbf16>
    %30 = vector.shape_cast %29 : vector<1x16x16x4xbf16> to vector<16x16x4xbf16>
    %31 = vector.shape_cast %30 : vector<16x16x4xbf16> to vector<256x4xbf16>
    %c2_i32 = arith.constant 2 : i32
    %32 = arith.addi %1, %c2_i32 : i32
    %c0_19 = arith.constant 0 : index
    %33 = arith.index_cast %32 : i32 to index
    %c0_20 = arith.constant 0 : index
    %c0_21 = arith.constant 0 : index
    %34 = vector.load %arg2[%c0_19, %33, %c0_20, %c0_21] : memref<1x18x18x4xbf16, #tpu.memory_space<vmem>>, vector<1x16x16x4xbf16>
    %35 = vector.shape_cast %34 : vector<1x16x16x4xbf16> to vector<16x16x4xbf16>
    %36 = vector.shape_cast %35 : vector<16x16x4xbf16> to vector<256x4xbf16>
    %c2_i32_22 = arith.constant 2 : i32
    %37 = arith.addi %1, %c2_i32_22 : i32
    %c0_23 = arith.constant 0 : index
    %38 = arith.index_cast %37 : i32 to index
    %c1_24 = arith.constant 1 : index
    %c0_25 = arith.constant 0 : index
    %39 = vector.load %arg2[%c0_23, %38, %c1_24, %c0_25] : memref<1x18x18x4xbf16, #tpu.memory_space<vmem>>, vector<1x16x16x4xbf16>
    %40 = vector.shape_cast %39 : vector<1x16x16x4xbf16> to vector<16x16x4xbf16>
    %41 = vector.shape_cast %40 : vector<16x16x4xbf16> to vector<256x4xbf16>
    %c2_i32_26 = arith.constant 2 : i32
    %42 = arith.addi %1, %c2_i32_26 : i32
    %c0_27 = arith.constant 0 : index
    %43 = arith.index_cast %42 : i32 to index
    %c2_28 = arith.constant 2 : index
    %c0_29 = arith.constant 0 : index
    %44 = vector.load %arg2[%c0_27, %43, %c2_28, %c0_29] : memref<1x18x18x4xbf16, #tpu.memory_space<vmem>>, vector<1x16x16x4xbf16>
    %45 = vector.shape_cast %44 : vector<1x16x16x4xbf16> to vector<16x16x4xbf16>
    %46 = vector.shape_cast %45 : vector<16x16x4xbf16> to vector<256x4xbf16>
    %47 = tpu.concatenate %6, %11, %16, %21, %26, %31, %36, %41, %46 in 1 : vector<256x4xbf16>, vector<256x4xbf16>, vector<256x4xbf16>, vector<256x4xbf16>, vector<256x4xbf16>, vector<256x4xbf16>, vector<256x4xbf16>, vector<256x4xbf16>, vector<256x4xbf16> -> vector<256x36xbf16>
    %c0_30 = arith.constant 0 : index
    %c0_31 = arith.constant 0 : index
    %48 = vector.load %arg3[%c0_30, %c0_31] : memref<36x8xbf16, #tpu.memory_space<vmem>>, vector<36x8xbf16>
    %cst = arith.constant dense<0.000000e+00> : vector<256x8xf32>
    %49 = tpu.matmul %47, %48, %cst {dimension_numbers = #tpu.dot_dimension_numbers<[1], [0], [0], [1], [0, 0, 1, 1], [], []>} : vector<256x36xbf16>, vector<36x8xbf16>, vector<256x8xf32> -> vector<256x8xf32>
    %c0_32 = arith.constant 0 : index
    %c0_33 = arith.constant 0 : index
    %50 = vector.load %arg4[%c0_32, %c0_33] : memref<1x8xf32, #tpu.memory_space<vmem>>, vector<1x8xf32>
    %51 = vector.broadcast %50 : vector<1x8xf32> to vector<256x8xf32>
    %52 = arith.addf %49, %51 : vector<256x8xf32>
    %53 = arith.negf %52 : vector<256x8xf32>
    %54 = math.exp %53 : vector<256x8xf32>
    %cst_34 = arith.constant 1.000000e+00 : f32
    %55 = vector.broadcast %cst_34 : f32 to vector<256x8xf32>
    %56 = arith.addf %55, %54 : vector<256x8xf32>
    %57 = arith.divf %55, %56 : vector<256x8xf32>
    %58 = arith.mulf %52, %57 : vector<256x8xf32>
    %59 = vector.shape_cast %58 : vector<256x8xf32> to vector<1x16x16x8xf32>
    %60 = arith.truncf %59 : vector<1x16x16x8xf32> to vector<1x16x16x8xbf16>
    %c0_35 = arith.constant 0 : index
    %c0_36 = arith.constant 0 : index
    %c0_37 = arith.constant 0 : index
    %c0_38 = arith.constant 0 : index
    %61 = vector.load %arg5[%c0_35, %c0_36, %c0_37, %c0_38] : memref<1x16x16x8xbf16, #tpu.memory_space<vmem>>, vector<1x16x16x8xbf16>
    tpu.vector_store %arg5[%c0_35, %c0_36, %c0_37, %c0_38], %60 {strides = array<i32>} : memref<1x16x16x8xbf16, #tpu.memory_space<vmem>>, vector<1x16x16x8xbf16>,
    return
  }
  func.func @transform_0(%arg0: i32, %arg1: i32) -> (i32, i32, i32, i32) {
    %c0_i32 = arith.constant 0 : i32
    %c0_i32_0 = arith.constant 0 : i32
    %c0_i32_1 = arith.constant 0 : i32
    %c0_i32_2 = arith.constant 0 : i32
    return %arg0, %c0_i32, %c0_i32_0, %c0_i32_1 : i32, i32, i32, i32
  }
  func.func @transform_1(%arg0: i32, %arg1: i32) -> (i32, i32) {
    %c0_i32 = arith.constant 0 : i32
    %c0_i32_0 = arith.constant 0 : i32
    %c0_i32_1 = arith.constant 0 : i32
    return %c0_i32, %c0_i32_0 : i32, i32
  }
  func.func @transform_2(%arg0: i32, %arg1: i32) -> (i32, i32) {
    %c0_i32 = arith.constant 0 : i32
    %c0_i32_0 = arith.constant 0 : i32
    %c0_i32_1 = arith.constant 0 : i32
    return %c0_i32, %c0_i32_0 : i32, i32
  }
  func.func @transform_3(%arg0: i32, %arg1: i32) -> (i32, i32, i32, i32) {
    %c0_i32 = arith.constant 0 : i32
    %c0_i32_0 = arith.constant 0 : i32
    %c0_i32_1 = arith.constant 0 : i32
    return %arg0, %arg1, %c0_i32, %c0_i32_0 : i32, i32, i32, i32
  }
}

</mosaic_0001>

<bundles_post_ra>
// kernel: conv_layer_forward.1
= control target key start
LH: loop header
LB: loop body
LE: loop exit
PB: predicated region body
PF: predicated region fallthrough
CT: control target
= control target key end

     0   :  { %s4569_s12 = smov 0   ;;  %s4571_s13 = smov 0   ;;  %s6592_s0 = inlined_call_operand.vmem [shape: bf16[2,18,18,4], index: 0, kind: input, shape index: {}]   ;;  %s6593_s1 = inlined_call_operand.vmem [shape: bf16[36,8], index: 1, kind: input, shape index: {}]   ;;  %s6594_s2 = inlined_call_operand.vmem [shape: f32[1,8], index: 2, kind: input, shape index: {}]   ;;  %s6595_s3 = inlined_call_operand.vmem [shape: bf16[2,16,16,8], index: 3, kind: output, shape index: {}]  }
   0x1   :  { %s4573_s14 = smov 0  }
   0x2 LB: > { %s25_s15 = sadd.s32 1, %s4535_s13  ;;  %p3766_p0 = scmp.ge.s32.totalorder %s4539_s14, 1  ;;  %s4539_s14 = sphi %s4573_s14, %s13_s14   ;;  %s4535_s13 = sphi %s4571_s13, %s6601_s13   ;;  %s4531_s12 = sphi %s4569_s12, %s6600_s12  }
   0x3   : > { %p27_p1 = scmp.ge.s32.totalorder %s25_s15, 2  ;;  %p151_p2 = scmp.lt.s32.totalorder %s4539_s14, 3 }
   0x5   : > { %s6603_s15 = smov (%p27_p1, %s25_s15), 0  ;;  %p152_p3 = pnand %p3766_p0, %p151_p2 }
   0x6   : > { %p180_p4 = scmp.lt.s32.totalorder (!%p152_p3), %s4531_s12, 1  ;;  %s4541_s20 = smov (!%p152_p3), 12  }
   0x7   : > { %155 = sbr.rel (%p152_p3) target bundleno = 692 (0x2b4), region = 32  ;;  %s4542_s21 = smov (!%p152_p3), 8  }
   0x8   : > { %s4543_s22 = smov (!%p152_p3), 4   ;;  %s4544_s23 = smov (!%p152_p3), 16  }
   0x9   : > { %s4545_s24 = smov (!%p152_p3), 20   ;;  %s4546_s25 = smov (!%p152_p3), 24  }
   0xa   : > { %s4547_s26 = smov (!%p152_p3), 28   ;;  %s4548_s27 = smov (!%p152_p3), 32  }
   0xc   : > { %s6605_s12 = smov (!%p180_p4, %s4531_s12), 1  ;;  %vm700_vm0 = vcmask 1042432   ;;  %vm701_vm1 = vcmask 1046532   ;;  %vm249_vm3 = vsmask.f32 3328  ;;  %vm2775_vm6 = vcmask 31744  }
   0xd   : > { %s4274_s16 = smul.u32 216, %s6605_s12  ;;  %vm4624_vm2 = vmor %vm700_vm0, %vm701_vm1  ;;  %vm250_vm4 = vsmask.f32 7440  ;;  %vm2824_vm7 = vcmask 64512   ;;  %vm2857_vm8 = vcmask 97280   ;;  %vm2890_vm9 = vcmask 130048  }
   0xe   : > { %vm4682_vm5 = vmor %vm249_vm3, %vm250_vm4  ;;  %vm2923_vm10 = vcmask 162816   ;;  %vm2956_vm11 = vcmask 195584   ;;  %vm2989_vm12 = vcmask 228352   ;;  %vm3115_vm13 = vcmask 1041408   ;;  %s4176_s9 = sshll.u32 %s6605_s12, 7 }
   0xf   : > { %s4593_s19 = scalar_lea.vmem %s6592_s0, %s4274_s16  ;;  %vm3022_vm14 = vcmask 261120   ;;  %vm3082_vm15 = vcmask 293888   ;;  %s6486_s16 = scalar_lea.vmem %s6595_s3, %s4176_s9  ;;  %vm3632_vm0 = vcmask 60416  }
  0x10   : > { %v3802_v0 = vld [vmem:[%s4593_s19 + $0x6c] sm:$0xf]  ;;  %v4597_v1 = vld [vmem:[%s4593_s19 + $0x70] sm:$0xf]  ;;  %v4610_v12 = vld [vmem:[%s4593_s19 + $0x64] sm:$0xf] }
  0x11   : > { %v3786_v2 = vld [vmem:[%s4593_s19 + $0xc] sm:$0xf]  ;;  %v1069_v3 = vshll.u32 %v4597_v1, 16  ;;  %v1073_v4 = vshrl.u32 %v4597_v1, 16  ;;  %v4002_v5 = vcombine.low %v3802_v0, %v4597_v1  ;;  %v1060_v6 = vshrl.u32 %v3802_v0, 16 }
  0x12   : > { %v4604_v7 = vld [vmem:[%s4593_s19 + $0x10] sm:$0xf]  ;;  %v1063_v8 = vshll.u32 %v3802_v0, 16  ;;  %v868_v15 = vshrl.u32 %v3786_v2, 16  ;;  %v871_v16 = vshll.u32 %v3786_v2, 16  ;;  %v761_v22 = vrot.slane %v4610_v12, 5 }
  0x13   : > { %v877_v9 = vshll.u32 %v4604_v7, 16  ;;  %v881_v10 = vshrl.u32 %v4604_v7, 16  ;;  %v3994_v11 = vcombine.low %v3786_v2, %v4604_v7  ;;  %v4612_v13 = vrot.slane %v1073_v4, 4  ;;  %2343 = vrot.lane.b32.xlu1 %v4002_v5, %s4541_s20  ;;  %v4616_v17 = vld [vmem:[%s4593_s19 + $0x68] sm:$0x1] }
  0x14   : > { %v1062_v14 = vrot.slane %v1060_v6, 4  ;;  %v1065_v18 = vrot.slane %v1063_v8, 5  ;;  %v644_v20 = vld [vmem:[%s4593_s19 + $0x60] sm:$0xe]  ;;  %v764_v23 = vrot.slane %v4616_v17, 5  ;;  %v870_v24 = vrot.slane %v868_v15, 4 }
  0x15   : > { %v4618_v19 = vrot.slane %v881_v10, 4  ;;  %2327 = vrot.lane.b32.xlu0 %v3994_v11, %s4541_s20  ;;  %v873_v25 = vrot.slane %v871_v16, 5  ;;  %v3778_v26 = vrot.slane %v644_v20, 9  ;;  %v4631_v27 = vld [vmem:[%s4593_s19 + $0x4] sm:$0xf]  ;;  %v454_v28 = vshll.u32 %v4610_v12, 16 }
  0x16   : > { %v1066_v29 = vor.u32 %v1065_v18, %v1062_v14  ;;  %v763_v30 = vrot.slane %v761_v22, 4  ;;  %v4635_v31 = vld [vmem:[%s4593_s19 + $0x8] sm:$0x1]  ;;  %v636_v32 = vld [vmem:[%s4593_s19] sm:$0xe]  ;;  %v705_v33 = vrot.slane %v4631_v27, 5 }
  0x17   : > { %v874_v34 = vor.u32 %v873_v25, %v870_v24  ;;  %v762_v35 = vsel %vm4624_vm2, %v3778_v26, %v761_v22  ;;  %v3770_v36 = vrot.slane %v636_v32, 9  ;;  %v708_v37 = vrot.slane %v4635_v31, 5  ;;  %v4643_v38 = vld [vmem:[%s4593_s19 + $0x70] sm:$0xf]  ;;  %v4646_v39 = vld [vmem:[%s4593_s19 + $0x74] sm:$0x1] }
  0x18   : > { %v4648_v40 = vrot.slane %v1066_v29, 4  ;;  %v765_v41 = vsel %vm4624_vm2, %v763_v30, %v764_v23  ;;  %v707_v42 = vrot.slane %v705_v33, 4  ;;  %v645_v43 = vld [vmem:[%s4593_s19 + $0x6c] sm:$0xe]  ;;  %v768_v44 = vrot.slane %v4643_v38, 5 }
  0x19   : > { %v4654_v45 = vrot.slane %v874_v34, 4  ;;  %v3986_v46 = vcombine.low %v762_v35, %v765_v41  ;;  %v706_v47 = vsel %vm4624_vm2, %v3770_v36, %v705_v33  ;;  %v3779_v48 = vrot.slane %v645_v43, 9  ;;  %v204_v49 = vld [vmem:[%s4593_s19 + $0x10] sm:$0xf]  ;;  %v234_v50 = vld [vmem:[%s4593_s19 + $0x14] sm:$0x1] }
  0x1a   : > { %v709_v51 = vsel %vm4624_vm2, %v707_v42, %v708_v37  ;;  %v770_v52 = vrot.slane %v768_v44, 4  ;;  %v771_v53 = vrot.slane %v4646_v39, 5  ;;  %v637_v54 = vld [vmem:[%s4593_s19 + $0xc] sm:$0xe]  ;;  %v712_v55 = vrot.slane %v204_v49, 5 }
  0x1b   : > { %2247 = vrot.lane.b32.xlu1 %v3986_v46, %s4542_s21  ;;  %v3978_v56 = vcombine.low %v706_v47, %v709_v51  ;;  %v769_v57 = vsel %vm4624_vm2, %v3779_v48, %v768_v44  ;;  %v3771_v58 = vrot.slane %v637_v54, 9  ;;  %v715_v59 = vrot.slane %v234_v50, 5  ;;  %v203_v60 = vld [vmem:[%s4593_s19 + $0xc] sm:$0xf]  ;;  %v201_v2 = vld [vmem:[%s4593_s19] sm:$0xf] }
  0x1c   : > { %v772_v61 = vsel %vm4624_vm2, %v770_v52, %v771_v53  ;;  %v714_v62 = vrot.slane %v712_v55, 4  ;;  %v277_v63 = vshrl.u32 %v203_v60, 16  ;;  %v280_v0 = vshll.u32 %v203_v60, 16  ;;  %v219_v23 = vld [vmem:[%s4593_s19 + $0x6c] sm:$0xf] }
  0x1d   : > { %2231 = vrot.lane.b32.xlu0 %v3978_v56, %s4542_s21  ;;  %v3987_v4 = vcombine.low %v769_v57, %v772_v61  ;;  %v713_v5 = vsel %vm4624_vm2, %v3771_v58, %v712_v55  ;;  %v286_v6 = vshll.u32 %v204_v49, 16  ;;  %v290_v8 = vshrl.u32 %v204_v49, 16  ;;  %v217_v52 = vld [vmem:[%s4593_s19 + $0x60] sm:$0xf]  ;;  %v4504_v21 = vld [vmem:[%s4593_s19 + $0x30] sm:$0xf] }
  0x1e   : > { %v716_v10 = vsel %vm4624_vm2, %v714_v62, %v715_v59  ;;  %v279_v11 = vrot.slane %v277_v63, 4  ;;  %v282_v14 = vrot.slane %v280_v0, 5  ;;  %v296_v15 = vshll.u32 %v234_v50, 16 }
  0x1f   : > { %2249 = vrot.lane.b32.xlu1 %v3987_v4, %s4542_s21  ;;  %v3979_v16 = vcombine.low %v713_v5, %v716_v10  ;;  %v288_v18 = vrot.slane %v286_v6, 5  ;;  %v292_v20 = vrot.slane %v290_v8, 4  ;;  %v253_v22 = vshrl.u32 %v201_v2, 16  ;;  %v3804_v4 = vld [vmem:[%s4593_s19 + $0x78] sm:$0xf] }
  0x20   : > { %v283_v24 = vor.u32 %v282_v14, %v279_v11  ;;  %v298_v25 = vrot.slane %v296_v15, 5  ;;  %v256_v26 = vshll.u32 %v201_v2, 16  ;;  %v262_v29 = vshll.u32 %v4631_v27, 16  ;;  %v4705_v10 = vld [vmem:[%s4593_s19 + $0x7c] sm:$0xf] }
  0x21   : > { %2233 = vrot.lane.b32.xlu0 %v3979_v16, %s4542_s21  ;;  %v293_v32 = vor.u32 %v292_v20, %v288_v18  ;;  %v255_v33 = vrot.slane %v253_v22, 4  ;;  %v266_v34 = vshrl.u32 %v4631_v27, 16  ;;  %v272_v35 = vshll.u32 %v4635_v31, 16 }
  0x22   : > { %v284_v36 = vrot.slane %v283_v24, 4  ;;  %v258_v37 = vrot.slane %v256_v26, 5  ;;  %v264_v41 = vrot.slane %v262_v29, 5  ;;  %v469_v42 = vshrl.u32 %v219_v23, 16 }
  0x23   : > { %v294_v43 = vrot.slane %v293_v32, 4  ;;  %v268_v44 = vrot.slane %v266_v34, 4  ;;  %v274_v46 = vrot.slane %v272_v35, 5  ;;  %v472_v47 = vshll.u32 %v219_v23, 16  ;;  %v4712_v23 = vld [vmem:[%s4593_s19 + $0x18] sm:$0xf] }
  0x24   : > { %v289_v48 = vsel %vm4682_vm5, %v284_v36, %v288_v18  ;;  %v259_v49 = vor.u32 %v258_v37, %v255_v33  ;;  %v471_v50 = vrot.slane %v469_v42, 4  ;;  %v478_v51 = vshll.u32 %v4643_v38, 16  ;;  %v4723_v35 = vld [vmem:[%s4593_s19 + $0x74] sm:$0x1] }
  0x25   : > { %v299_v27 = vsel %vm4682_vm5, %v294_v43, %v298_v25  ;;  %v269_v31 = vor.u32 %v268_v44, %v264_v41  ;;  %v474_v53 = vrot.slane %v472_v47, 5  ;;  %v482_v54 = vshrl.u32 %v4643_v38, 16 }
  0x26   : > { %v3963_v55 = vcombine.low %v289_v48, %v299_v27  ;;  %v260_v56 = vrot.slane %v259_v49, 4  ;;  %v480_v57 = vrot.slane %v478_v51, 5  ;;  %v488_v58 = vshll.u32 %v4646_v39, 16  ;;  %v4733_v48 = vld [vmem:[%s4593_s19 + $0x14] sm:$0x1] }
  0x27   : > { %v270_v59 = vrot.slane %v269_v31, 4  ;;  %v475_v60 = vor.u32 %v474_v53, %v471_v50  ;;  %v484_v61 = vrot.slane %v482_v54, 4  ;;  %v445_v62 = vshrl.u32 %v217_v52, 16 }
  0x28   : > { %2153 = vrot.lane.b32.xlu1 %v3963_v55, %s4543_s22  ;;  %v265_v63 = vsel %vm4682_vm5, %v260_v56, %v264_v41  ;;  %v490_v0 = vrot.slane %v488_v58, 5  ;;  %v448_v2 = vshll.u32 %v217_v52, 16  ;;  %v456_v38 = vrot.slane %v454_v28, 5 }
  0x29   : > { %v275_v39 = vsel %vm4682_vm5, %v270_v59, %v274_v46  ;;  %v476_v5 = vrot.slane %v475_v60, 4  ;;  %v485_v6 = vor.u32 %v484_v61, %v480_v57  ;;  %v447_v8 = vrot.slane %v445_v62, 4 }
  0x2a   : > { %v3962_v11 = vcombine.low %v265_v63, %v275_v39  ;;  %v450_v14 = vrot.slane %v448_v2, 5  ;;  %v458_v15 = vshrl.u32 %v4610_v12, 16  ;;  %v464_v16 = vshll.u32 %v4616_v17, 16  ;;  %v4717_v12 = vld [vmem:[%s4593_s19 + $0x1c] sm:$0xf] }
  0x2b   : > { %v481_v28 = vsel %vm4682_vm5, %v476_v5, %v480_v57  ;;  %v486_v18 = vrot.slane %v485_v6, 4  ;;  %v1084_v20 = vshrl.u32 %v3804_v4, 16  ;;  %v1087_v22 = vshll.u32 %v3804_v4, 16  ;;  %v4749_v57 = vld [vmem:[%s4593_s19 + $0x80] sm:$0x1] }
  0x2c   : > { %2151 = vrot.lane.b32.xlu0 %v3962_v11, %s4543_s22  ;;  %v451_v24 = vor.u32 %v450_v14, %v447_v8  ;;  %v460_v25 = vrot.slane %v458_v15, 4  ;;  %v466_v26 = vrot.slane %v464_v16, 5  ;;  %v1097_v29 = vshrl.u32 %v4705_v10, 16  ;;  %v3842_v8 = vld [vmem:[%s4593_s19 + $0x6c] sm:$0xe] }
  0x2d   : > { %v491_v17 = vsel %vm4682_vm5, %v486_v18, %v490_v0  ;;  %v1086_v32 = vrot.slane %v1084_v20, 4  ;;  %v1089_v33 = vrot.slane %v1087_v22, 5  ;;  %v4003_v34 = vcombine.low %v3804_v4, %v4705_v10  ;;  %v4758_v0 = vld [vmem:[%s4593_s19 + $0x20] sm:$0x1] }
  0x2e   : > { %v3971_v36 = vcombine.low %v481_v28, %v491_v17  ;;  %v452_v37 = vrot.slane %v451_v24, 4  ;;  %v461_v41 = vor.u32 %v460_v25, %v456_v38  ;;  %v892_v42 = vshrl.u32 %v4712_v23, 16  ;;  %v3834_v28 = vld [vmem:[%s4593_s19 + $0xc] sm:$0xe]  ;;  %v3843_v17 = vld [vmem:[%s4593_s19 + $0x78] sm:$0xe] }
  0x2f   : > { %v895_v43 = vshll.u32 %v4712_v23, 16  ;;  %v905_v44 = vshrl.u32 %v4717_v12, 16  ;;  %v3995_v46 = vcombine.low %v4712_v23, %v4717_v12  ;;  %v1071_v47 = vrot.slane %v1069_v3, 5 }
  0x30   : > { %2169 = vrot.lane.b32.xlu1 %v3971_v36, %s4543_s22  ;;  %v457_v49 = vsel %vm4682_vm5, %v452_v37, %v456_v38  ;;  %v462_v50 = vrot.slane %v461_v41, 4  ;;  %v894_v51 = vrot.slane %v892_v42, 4  ;;  %v1079_v52 = vshll.u32 %v4723_v35, 16 }
  0x31   : > { %v897_v27 = vrot.slane %v895_v43, 5  ;;  %v1072_v31 = vsel %vm4682_vm5, %v4648_v40, %v1071_v47  ;;  %v1076_v53 = vor.u32 %v4612_v13, %v1071_v47  ;;  %v879_v3 = vrot.slane %v877_v9, 5  ;;  %v3835_v47 = vld [vmem:[%s4593_s19 + $0x18] sm:$0xe] }
  0x32   : > { %v467_v54 = vsel %vm4682_vm5, %v462_v50, %v466_v26  ;;  %v1081_v55 = vrot.slane %v1079_v52, 5  ;;  %v887_v56 = vshll.u32 %v4733_v48, 16  ;;  %v1090_v58 = vor.u32 %v1089_v33, %v1086_v32 }
  0x33   : > { %v3970_v59 = vcombine.low %v457_v49, %v467_v54  ;;  %v1077_v60 = vrot.slane %v1076_v53, 4  ;;  %v880_v40 = vsel %vm4682_vm5, %v4654_v45, %v879_v3  ;;  %v884_v13 = vor.u32 %v4618_v19, %v879_v3  ;;  %v4800_v53 = vld [vmem:[%s4593_s19 + $0x7c] sm:$0xf] }
  0x34   : > { %2345 = vrot.lane.b32.xlu1 %v4003_v34, %s4541_s20  ;;  %v889_v9 = vrot.slane %v887_v56, 5  ;;  %v1091_v61 = vrot.slane %v1090_v58, 4  ;;  %v1093_v62 = vshll.u32 %v4705_v10, 16  ;;  %v1099_v63 = vrot.slane %v1097_v29, 4  ;;  %v4807_v58 = vld [vmem:[%s4593_s19 + $0x18] sm:$0xf] }
  0x35   : > { %2167 = vrot.lane.b32.xlu0 %v3970_v59, %s4543_s22  ;;  %v1082_v2 = vsel %vm4682_vm5, %v1077_v60, %v1081_v55  ;;  %v885_v38 = vrot.slane %v884_v13, 4  ;;  %v1103_v45 = vshll.u32 %v4749_v57, 16  ;;  %v898_v19 = vor.u32 %v897_v27, %v894_v51  ;;  %v4793_v51 = vld [vmem:[%s4593_s19 + $0x78] sm:$0xf] }
  0x36   : > { %v4018_v4 = vcombine.low %v1072_v31, %v1082_v2  ;;  %v1095_v39 = vrot.slane %v1093_v62, 5  ;;  %v901_v5 = vshll.u32 %v4717_v12, 16  ;;  %v907_v6 = vrot.slane %v905_v44, 4 }
  0x37   : > { %v890_v11 = vsel %vm4682_vm5, %v885_v38, %v889_v9  ;;  %v1105_v14 = vrot.slane %v1103_v45, 5  ;;  %v899_v15 = vrot.slane %v898_v19, 4  ;;  %v911_v16 = vshll.u32 %v4758_v0, 16  ;;  %v4813_v9 = vld [vmem:[%s4593_s19 + $0x1c] sm:$0xf] }
  0x38   : > { %2423 = vrot.lane.b32.xlu1 %v4018_v4, %s4544_s23  ;;  %v4010_v18 = vcombine.low %v880_v40, %v890_v11  ;;  %v1096_v20 = vsel %vm4682_vm5, %v1091_v61, %v1095_v39  ;;  %v1100_v22 = vor.u32 %v1099_v63, %v1095_v39  ;;  %v903_v23 = vrot.slane %v901_v5, 5  ;;  %v4828_v19 = vld [vmem:[%s4593_s19 + $0x88] sm:$0xf] }
  0x39   : > { %2329 = vrot.lane.b32.xlu0 %v3995_v46, %s4541_s20  ;;  %v913_v24 = vrot.slane %v911_v16, 5  ;;  %v3858_v25 = vrot.slane %v3842_v8, 9  ;;  %v1373_v26 = vrot.slane %v4597_v1, 5  ;;  %v1376_v29 = vrot.slane %v4723_v35, 5  ;;  %v4835_v8 = vld [vmem:[%s4593_s19 + $0x24] sm:$0xf] }
  0x3a   : > { %v1101_v32 = vrot.slane %v1100_v22, 4  ;;  %v904_v33 = vsel %vm4682_vm5, %v899_v15, %v903_v23  ;;  %v908_v34 = vor.u32 %v907_v6, %v903_v23  ;;  %v3850_v36 = vrot.slane %v3834_v28, 9  ;;  %v4844_v28 = vld [vmem:[%s4593_s19 + $0x28] sm:$0xf] }
  0x3b   : > { %v1374_v37 = vsel %vm4624_vm2, %v3858_v25, %v1373_v26  ;;  %v1375_v41 = vrot.slane %v1373_v26, 4  ;;  %v1317_v42 = vrot.slane %v4604_v7, 5  ;;  %v1320_v43 = vrot.slane %v4733_v48, 5 }
  0x3c   : > { %v1106_v1 = vsel %vm4682_vm5, %v1101_v32, %v1105_v14  ;;  %v909_v35 = vrot.slane %v908_v34, 4  ;;  %v3859_v44 = vrot.slane %v3843_v17, 9  ;;  %v1380_v46 = vrot.slane %v4705_v10, 5 }
  0x3d   : > { %2407 = vrot.lane.b32.xlu0 %v4010_v18, %s4544_s23  ;;  %v4019_v49 = vcombine.low %v1096_v20, %v1106_v1  ;;  %v1377_v50 = vsel %vm4624_vm2, %v1375_v41, %v1376_v29  ;;  %v1318_v7 = vsel %vm4624_vm2, %v3850_v36, %v1317_v42  ;;  %v1319_v48 = vrot.slane %v1317_v42, 4 }
  0x3e   : > { %v914_v52 = vsel %vm4682_vm5, %v909_v35, %v913_v24  ;;  %v4034_v27 = vcombine.low %v1374_v37, %v1377_v50  ;;  %v1381_v10 = vsel %vm4624_vm2, %v3859_v44, %v1380_v46  ;;  %v1382_v31 = vrot.slane %v1380_v46, 4  ;;  %v4849_v24 = vld [vmem:[%s4593_s19 + $0x80] sm:$0x1] }
  0x3f   : > { %2425 = vrot.lane.b32.xlu1 %v4019_v49, %s4544_s23  ;;  %v4011_v3 = vcombine.low %v904_v33, %v914_v52  ;;  %v1321_v54 = vsel %vm4624_vm2, %v1319_v48, %v1320_v43  ;;  %v1383_v55 = vrot.slane %v4749_v57, 5  ;;  %v3851_v56 = vrot.slane %v3835_v47, 9  ;;  %v4860_v37 = vld [vmem:[%s4593_s19 + $0x20] sm:$0x1] }
  0x40   : > { %v4026_v59 = vcombine.low %v1318_v7, %v1321_v54  ;;  %v1324_v60 = vrot.slane %v4717_v12, 5  ;;  %v1327_v40 = vrot.slane %v4758_v0, 5  ;;  %v1672_v13 = vshrl.u32 %v4793_v51, 16  ;;  %v4823_v12 = vld [vmem:[%s4593_s19 + $0x84] sm:$0xf] }
  0x41   : > { %2409 = vrot.lane.b32.xlu0 %v4011_v3, %s4544_s23  ;;  %v1384_v61 = vsel %vm4624_vm2, %v1382_v31, %v1383_v55  ;;  %v1675_v57 = vshll.u32 %v4793_v51, 16  ;;  %v1685_v62 = vshrl.u32 %v4800_v53, 16  ;;  %v4050_v63 = vcombine.low %v4793_v51, %v4800_v53 }
  0x42   : > { %v4035_v0 = vcombine.low %v1381_v10, %v1384_v61  ;;  %v1325_v2 = vsel %vm4624_vm2, %v3851_v56, %v1324_v60  ;;  %v1326_v38 = vrot.slane %v1324_v60, 4  ;;  %v1674_v45 = vrot.slane %v1672_v13, 4 }
  0x43   : > { %2503 = vrot.lane.b32.xlu1 %v4034_v27, %s4545_s24  ;;  %v1677_v4 = vrot.slane %v1675_v57, 5  ;;  %v1480_v39 = vshrl.u32 %v4807_v58, 16  ;;  %v1483_v5 = vshll.u32 %v4807_v58, 16  ;;  %v1493_v6 = vshrl.u32 %v4813_v9, 16  ;;  %v4869_v27 = vld [vmem:[%s4593_s19 + $0x8c] sm:$0x1] }
  0x44   : > { %v1328_v11 = vsel %vm4624_vm2, %v1326_v38, %v1327_v40  ;;  %v4042_v14 = vcombine.low %v4807_v58, %v4813_v9  ;;  %v1696_v15 = vshrl.u32 %v4823_v12, 16  ;;  %v1699_v16 = vshll.u32 %v4823_v12, 16  ;;  %v4879_v57 = vld [vmem:[%s4593_s19 + $0x2c] sm:$0x1] }
  0x45   : > { %2487 = vrot.lane.b32.xlu0 %v4026_v59, %s4545_s24  ;;  %v4027_v18 = vcombine.low %v1325_v2, %v1328_v11  ;;  %v1482_v20 = vrot.slane %v1480_v39, 4  ;;  %v1485_v22 = vrot.slane %v1483_v5, 5  ;;  %v1709_v23 = vshrl.u32 %v4828_v19, 16 }
  0x46   : > { %v1698_v25 = vrot.slane %v1696_v15, 4  ;;  %v1701_v26 = vrot.slane %v1699_v16, 5  ;;  %v4051_v29 = vcombine.low %v4823_v12, %v4828_v19  ;;  %v1504_v17 = vshrl.u32 %v4835_v8, 16  ;;  %v3914_v16 = vld [vmem:[%s4593_s19 + $0x18] sm:$0xe] }
  0x47   : > { %2505 = vrot.lane.b32.xlu1 %v4035_v0, %s4545_s24  ;;  %v1507_v32 = vshll.u32 %v4835_v8, 16  ;;  %v1517_v33 = vshrl.u32 %v4844_v28, 16  ;;  %v4043_v34 = vcombine.low %v4835_v8, %v4844_v28  ;;  %v1678_v36 = vor.u32 %v1677_v4, %v1674_v45  ;;  %v3922_v45 = vld [vmem:[%s4593_s19 + $0x78] sm:$0xe] }
  0x48   : > { %v1506_v41 = vrot.slane %v1504_v17, 4  ;;  %v1681_v42 = vshll.u32 %v4800_v53, 16  ;;  %v1687_v43 = vrot.slane %v1685_v62, 4  ;;  %v1691_v1 = vshll.u32 %v4849_v24, 16 }
  0x49   : > { %2489 = vrot.lane.b32.xlu0 %v4027_v18, %s4545_s24  ;;  %v1509_v35 = vrot.slane %v1507_v32, 5  ;;  %v1679_v44 = vrot.slane %v1678_v36, 4  ;;  %v1486_v46 = vor.u32 %v1485_v22, %v1482_v20  ;;  %v1489_v47 = vshll.u32 %v4813_v9, 16 }
  0x4a   : > { %v1683_v49 = vrot.slane %v1681_v42, 5  ;;  %v1693_v50 = vrot.slane %v1691_v1, 5  ;;  %v1495_v7 = vrot.slane %v1493_v6, 4  ;;  %v1499_v48 = vshll.u32 %v4860_v37, 16  ;;  %v4903_v42 = vld [vmem:[%s4593_s19 + $0x7c] sm:$0xf] }
  0x4b   : > { %2599 = vrot.lane.b32.xlu1 %v4050_v63, %s4546_s25  ;;  %v1487_v51 = vrot.slane %v1486_v46, 4  ;;  %v1491_v52 = vrot.slane %v1489_v47, 5  ;;  %v1702_v10 = vor.u32 %v1701_v26, %v1698_v25  ;;  %v1705_v31 = vshll.u32 %v4828_v19, 16  ;;  %v221_v25 = vld [vmem:[%s4593_s19 + $0x78] sm:$0xf] }
  0x4c   : > { %v1684_v3 = vsel %vm4682_vm5, %v1679_v44, %v1683_v49  ;;  %v1688_v54 = vor.u32 %v1687_v43, %v1683_v49  ;;  %v1501_v55 = vrot.slane %v1499_v48, 5  ;;  %v1711_v56 = vrot.slane %v1709_v23, 4  ;;  %v4914_v46 = vld [vmem:[%s4593_s19 + $0x80] sm:$0x1]  ;;  %v205_v49 = vld [vmem:[%s4593_s19 + $0x18] sm:$0xf] }
  0x4d   : > { %2583 = vrot.lane.b32.xlu0 %v4042_v14, %s4546_s25  ;;  %v1492_v58 = vsel %vm4682_vm5, %v1487_v51, %v1491_v52  ;;  %v1496_v59 = vor.u32 %v1495_v7, %v1491_v52  ;;  %v1703_v60 = vrot.slane %v1702_v10, 4  ;;  %v1707_v40 = vrot.slane %v1705_v31, 5  ;;  %v4922_v51 = vld [vmem:[%s4593_s19 + $0x1c] sm:$0xf] }
  0x4e   : > { %v1689_v13 = vrot.slane %v1688_v54, 4  ;;  %v1715_v61 = vshll.u32 %v4869_v27, 16  ;;  %v1510_v62 = vor.u32 %v1509_v35, %v1506_v41  ;;  %v1513_v63 = vshll.u32 %v4844_v28, 16  ;;  %v4928_v54 = vld [vmem:[%s4593_s19 + $0x20] sm:$0x1] }
  0x4f   : > { %2601 = vrot.lane.b32.xlu1 %v4051_v29, %s4546_s25  ;;  %v1497_v12 = vrot.slane %v1496_v59, 4  ;;  %v1708_v0 = vsel %vm4682_vm5, %v1703_v60, %v1707_v40  ;;  %v1712_v2 = vor.u32 %v1711_v56, %v1707_v40  ;;  %v1519_v38 = vrot.slane %v1517_v33, 4 }
  0x50   : > { %v1694_v4 = vsel %vm4682_vm5, %v1689_v13, %v1693_v50  ;;  %v1717_v39 = vrot.slane %v1715_v61, 5  ;;  %v1511_v5 = vrot.slane %v1510_v62, 4  ;;  %v1515_v6 = vrot.slane %v1513_v63, 5  ;;  %v3923_v62 = vld [vmem:[%s4593_s19 + $0x84] sm:$0xe] }
  0x51   : > { %2585 = vrot.lane.b32.xlu0 %v4043_v34, %s4546_s25  ;;  %v4066_v8 = vcombine.low %v1684_v3, %v1694_v4  ;;  %v1502_v11 = vsel %vm4682_vm5, %v1497_v12, %v1501_v55  ;;  %v1713_v14 = vrot.slane %v1712_v2, 4  ;;  %v1523_v15 = vshll.u32 %v4879_v57, 16 }
  0x52   : > { %v4058_v18 = vcombine.low %v1492_v58, %v1502_v11  ;;  %v1516_v20 = vsel %vm4682_vm5, %v1511_v5, %v1515_v6  ;;  %v1520_v22 = vor.u32 %v1519_v38, %v1515_v6  ;;  %v3938_v23 = vrot.slane %v3922_v45, 9  ;;  %v3915_v5 = vld [vmem:[%s4593_s19 + $0x24] sm:$0xe] }
  0x53   : > { %2679 = vrot.lane.b32.xlu1 %v4066_v8, %s4547_s26  ;;  %v1718_v26 = vsel %vm4682_vm5, %v1713_v14, %v1717_v39  ;;  %v1525_v29 = vrot.slane %v1523_v15, 5  ;;  %v1985_v17 = vrot.slane %v4800_v53, 5  ;;  %v1988_v32 = vrot.slane %v4849_v24, 5 }
  0x54   : > { %v4067_v33 = vcombine.low %v1708_v0, %v1718_v26  ;;  %v1521_v34 = vrot.slane %v1520_v22, 4  ;;  %v3930_v36 = vrot.slane %v3914_v16, 9  ;;  %v1929_v41 = vrot.slane %v4813_v9, 5  ;;  %v223_v22 = vld [vmem:[%s4593_s19 + $0x84] sm:$0xf] }
  0x55   : > { %2663 = vrot.lane.b32.xlu0 %v4058_v18, %s4547_s26  ;;  %v1986_v43 = vsel %vm4624_vm2, %v3938_v23, %v1985_v17  ;;  %v1987_v1 = vrot.slane %v1985_v17, 4  ;;  %v1932_v35 = vrot.slane %v4860_v37, 5  ;;  %v493_v53 = vshrl.u32 %v221_v25, 16 }
  0x56   : > { %v1526_v24 = vsel %vm4682_vm5, %v1521_v34, %v1525_v29  ;;  %v1930_v44 = vsel %vm4624_vm2, %v3930_v36, %v1929_v41  ;;  %v1931_v9 = vrot.slane %v1929_v41, 4  ;;  %v496_v47 = vshll.u32 %v221_v25, 16  ;;  %v4951_v34 = vld [vmem:[%s4593_s19 + $0x88] sm:$0xf] }
  0x57   : > { %2681 = vrot.lane.b32.xlu1 %v4067_v33, %s4547_s26  ;;  %v4059_v50 = vcombine.low %v1516_v20, %v1526_v24  ;;  %v1989_v7 = vsel %vm4624_vm2, %v1987_v1, %v1988_v32  ;;  %v495_v37 = vrot.slane %v493_v53, 4  ;;  %v502_v48 = vshll.u32 %v4903_v42, 16  ;;  %v207_v24 = vld [vmem:[%s4593_s19 + $0x24] sm:$0xf] }
  0x58   : > { %v4082_v52 = vcombine.low %v1986_v43, %v1989_v7  ;;  %v1933_v10 = vsel %vm4624_vm2, %v1931_v9, %v1932_v35  ;;  %v498_v31 = vrot.slane %v496_v47, 5  ;;  %v506_v3 = vshrl.u32 %v4903_v42, 16  ;;  %v4956_v43 = vld [vmem:[%s4593_s19 + $0x8c] sm:$0x1] }
  0x59   : > { %2665 = vrot.lane.b32.xlu0 %v4059_v50, %s4547_s26  ;;  %v4074_v55 = vcombine.low %v1930_v44, %v1933_v10  ;;  %v504_v56 = vrot.slane %v502_v48, 5  ;;  %v512_v58 = vshll.u32 %v4914_v46, 16  ;;  %v301_v59 = vshrl.u32 %v205_v49, 16  ;;  %v4968_v50 = vld [vmem:[%s4593_s19 + $0x28] sm:$0xf] }
  0x5a   : > { %v499_v60 = vor.u32 %v498_v31, %v495_v37  ;;  %v508_v40 = vrot.slane %v506_v3, 4  ;;  %v304_v13 = vshll.u32 %v205_v49, 16  ;;  %v310_v61 = vshll.u32 %v4922_v51, 16  ;;  %v4975_v10 = vld [vmem:[%s4593_s19 + $0x2c] sm:$0x1] }
  0x5b   : > { %2759 = vrot.lane.b32.xlu1 %v4082_v52, %s4548_s27  ;;  %v514_v63 = vrot.slane %v512_v58, 5  ;;  %v303_v12 = vrot.slane %v301_v59, 4  ;;  %v314_v0 = vshrl.u32 %v4922_v51, 16  ;;  %v320_v2 = vshll.u32 %v4928_v54, 16  ;;  %v646_v58 = vld [vmem:[%s4593_s19 + $0x78] sm:$0xe] }
  0x5c   : > { %v500_v38 = vrot.slane %v499_v60, 4  ;;  %v509_v45 = vor.u32 %v508_v40, %v504_v56  ;;  %v306_v4 = vrot.slane %v304_v13, 5  ;;  %v312_v39 = vrot.slane %v310_v61, 5 }
  0x5d   : > { %2743 = vrot.lane.b32.xlu0 %v4074_v55, %s4548_s27  ;;  %v316_v6 = vrot.slane %v314_v0, 4  ;;  %v322_v8 = vrot.slane %v320_v2, 5  ;;  %v3939_v11 = vrot.slane %v3923_v62, 9  ;;  %v1992_v14 = vrot.slane %v4828_v19, 5  ;;  %v638_v0 = vld [vmem:[%s4593_s19 + $0x18] sm:$0xe] }
  0x5e   : > { %v505_v15 = vsel %vm4682_vm5, %v500_v38, %v504_v56  ;;  %v510_v16 = vrot.slane %v509_v45, 4  ;;  %v307_v18 = vor.u32 %v306_v4, %v303_v12  ;;  %v1995_v20 = vrot.slane %v4869_v27, 5 }
  0x5f   : > { %v317_v23 = vor.u32 %v316_v6, %v312_v39  ;;  %v1993_v25 = vsel %vm4624_vm2, %v3939_v11, %v1992_v14  ;;  %v1994_v26 = vrot.slane %v1992_v14, 4  ;;  %v3931_v29 = vrot.slane %v3915_v5, 9 }
  0x60   : > { %v515_v17 = vsel %vm4682_vm5, %v510_v16, %v514_v63  ;;  %v308_v19 = vrot.slane %v307_v18, 4  ;;  %v1936_v32 = vrot.slane %v4844_v28, 5  ;;  %v1939_v33 = vrot.slane %v4879_v57, 5  ;;  %v647_v18 = vld [vmem:[%s4593_s19 + $0x84] sm:$0xe] }
  0x61   : > { %v3972_v27 = vcombine.low %v505_v15, %v515_v17  ;;  %v318_v36 = vrot.slane %v317_v23, 4  ;;  %v1996_v41 = vsel %vm4624_vm2, %v1994_v26, %v1995_v20  ;;  %v517_v1 = vshrl.u32 %v223_v22, 16 }
  0x62   : > { %v313_v35 = vsel %vm4682_vm5, %v308_v19, %v312_v39  ;;  %v4083_v53 = vcombine.low %v1993_v25, %v1996_v41  ;;  %v1937_v28 = vsel %vm4624_vm2, %v3931_v29, %v1936_v32  ;;  %v1938_v57 = vrot.slane %v1936_v32, 4 }
  0x63   : > { %2171 = vrot.lane.b32.xlu1 %v3972_v27, %s4543_s22  ;;  %v323_v44 = vsel %vm4682_vm5, %v318_v36, %v322_v8  ;;  %v519_v9 = vrot.slane %v517_v1, 4  ;;  %v520_v47 = vshll.u32 %v223_v22, 16  ;;  %v526_v49 = vshll.u32 %v4951_v34, 16 }
  0x64   : > { %v3964_v7 = vcombine.low %v313_v35, %v323_v44  ;;  %v1940_v37 = vsel %vm4624_vm2, %v1938_v57, %v1939_v33  ;;  %v530_v48 = vshrl.u32 %v4951_v34, 16  ;;  %v536_v52 = vshll.u32 %v4956_v43, 16 }
  0x65   : > { %v4075_v31 = vcombine.low %v1937_v28, %v1940_v37  ;;  %v522_v3 = vrot.slane %v520_v47, 5  ;;  %v528_v55 = vrot.slane %v526_v49, 5  ;;  %v325_v56 = vshrl.u32 %v207_v24, 16 }
  0x66   : > { %2155 = vrot.lane.b32.xlu0 %v3964_v7, %s4543_s22  ;;  %v532_v59 = vrot.slane %v530_v48, 4  ;;  %v538_v60 = vrot.slane %v536_v52, 5  ;;  %v328_v40 = vshll.u32 %v207_v24, 16  ;;  %v334_v13 = vshll.u32 %v4968_v50, 16  ;;  %v5012_v24 = vld [vmem:[%s4593_s19 + $0x88] sm:$0xf] }
  0x67   : > { %2761 = vrot.lane.b32.xlu1 %v4083_v53, %s4548_s27  ;;  %v523_v61 = vor.u32 %v522_v3, %v519_v9  ;;  %v327_v62 = vrot.slane %v325_v56, 4  ;;  %v338_v63 = vshrl.u32 %v4968_v50, 16  ;;  %v344_v12 = vshll.u32 %v4975_v10, 16  ;;  %v5019_v7 = vld [vmem:[%s4593_s19 + $0x24] sm:$0xf] }
  0x68   : > { %v533_v2 = vor.u32 %v532_v59, %v528_v55  ;;  %v330_v38 = vrot.slane %v328_v40, 5  ;;  %v336_v45 = vrot.slane %v334_v13, 5  ;;  %v3780_v4 = vrot.slane %v646_v58, 9  ;;  %v5030_v3 = vld [vmem:[%s4593_s19 + $0x28] sm:$0xf] }
  0x69   : > { %v524_v39 = vrot.slane %v523_v61, 4  ;;  %v340_v5 = vrot.slane %v338_v63, 4  ;;  %v346_v6 = vrot.slane %v344_v12, 5  ;;  %v775_v8 = vrot.slane %v4903_v42, 5  ;;  %v5040_v40 = vld [vmem:[%s4593_s19 + $0x94] sm:$0xf] }
  0x6a   : > { %2745 = vrot.lane.b32.xlu0 %v4075_v31, %s4548_s27  ;;  %v534_v11 = vrot.slane %v533_v2, 4  ;;  %v331_v14 = vor.u32 %v330_v38, %v327_v62  ;;  %v778_v15 = vrot.slane %v4914_v46, 5  ;;  %v3772_v16 = vrot.slane %v638_v0, 9  ;;  %v639_v46 = vld [vmem:[%s4593_s19 + $0x24] sm:$0xe] }
  0x6b   : > { %v529_v20 = vsel %vm4682_vm5, %v524_v39, %v528_v55  ;;  %v341_v22 = vor.u32 %v340_v5, %v336_v45  ;;  %v776_v23 = vsel %vm4624_vm2, %v3780_v4, %v775_v8  ;;  %v777_v25 = vrot.slane %v775_v8, 4  ;;  %v5046_v12 = vld [vmem:[%s4593_s19 + $0x30] sm:$0xf]  ;;  %v5049_v0 = vld [vmem:[%s4593_s19 + $0x34] sm:$0xf] }
  0x6c   : > { %v539_v42 = vsel %vm4682_vm5, %v534_v11, %v538_v60  ;;  %v332_v26 = vrot.slane %v331_v14, 4  ;;  %v719_v29 = vrot.slane %v4922_v51, 5  ;;  %v722_v17 = vrot.slane %v4928_v54, 5  ;;  %v5004_v51 = vld [vmem:[%s4593_s19 + $0x84] sm:$0xf] }
  0x6d   : > { %v3973_v19 = vcombine.low %v529_v20, %v539_v42  ;;  %v342_v32 = vrot.slane %v341_v22, 4  ;;  %v779_v33 = vsel %vm4624_vm2, %v777_v25, %v778_v15  ;;  %v3781_v27 = vrot.slane %v647_v18, 9  ;;  %v3808_v60 = vld [vmem:[%s4593_s19 + $0x90] sm:$0xf]  ;;  %v5062_v18 = vld [vmem:[%s4593_s19 + $0x8c] sm:$0x1] }
  0x6e   : > { %v337_v36 = vsel %vm4682_vm5, %v332_v26, %v336_v45  ;;  %v3988_v41 = vcombine.low %v776_v23, %v779_v33  ;;  %v720_v1 = vsel %vm4624_vm2, %v3772_v16, %v719_v29  ;;  %v721_v35 = vrot.slane %v719_v29, 4  ;;  %v5067_v42 = vld [vmem:[%s4593_s19 + $0x2c] sm:$0x1] }
  0x6f   : > { %2173 = vrot.lane.b32.xlu1 %v3973_v19, %s4543_s22  ;;  %v347_v54 = vsel %vm4682_vm5, %v342_v32, %v346_v6  ;;  %v782_v53 = vrot.slane %v4951_v34, 5  ;;  %v785_v28 = vrot.slane %v4956_v43, 5  ;;  %v3773_v57 = vrot.slane %v639_v46, 9 }
  0x70   : > { %v3965_v44 = vcombine.low %v337_v36, %v347_v54  ;;  %v723_v9 = vsel %vm4624_vm2, %v721_v35, %v722_v17  ;;  %v726_v47 = vrot.slane %v4968_v50, 5  ;;  %v729_v49 = vrot.slane %v4975_v10, 5 }
  0x71   : > { %v3980_v37 = vcombine.low %v720_v1, %v723_v9  ;;  %v783_v34 = vsel %vm4624_vm2, %v3781_v27, %v782_v53  ;;  %v784_v43 = vrot.slane %v782_v53, 4  ;;  %v1108_v48 = vshrl.u32 %v5004_v51, 16 }
  0x72   : > { %2157 = vrot.lane.b32.xlu0 %v3965_v44, %s4543_s22  ;;  %v727_v52 = vsel %vm4624_vm2, %v3773_v57, %v726_v47  ;;  %v728_v50 = vrot.slane %v726_v47, 4  ;;  %v1111_v10 = vshll.u32 %v5004_v51, 16  ;;  %v1121_v31 = vshrl.u32 %v5012_v24, 16 }
  0x73   : > { %2251 = vrot.lane.b32.xlu1 %v3988_v41, %s4542_s21  ;;  %v786_v55 = vsel %vm4624_vm2, %v784_v43, %v785_v28  ;;  %v1110_v56 = vrot.slane %v1108_v48, 4  ;;  %v4004_v58 = vcombine.low %v5004_v51, %v5012_v24  ;;  %v916_v59 = vshrl.u32 %v5019_v7, 16  ;;  %v5076_v28 = vld [vmem:[%s4593_s19 + $0x98] sm:$0x1] }
  0x74   : > { %v3989_v13 = vcombine.low %v783_v34, %v786_v55  ;;  %v730_v61 = vsel %vm4624_vm2, %v728_v50, %v729_v49  ;;  %v1113_v62 = vrot.slane %v1111_v10, 5  ;;  %v919_v63 = vshll.u32 %v5019_v7, 16  ;;  %v5087_v50 = vld [vmem:[%s4593_s19 + $0x38] sm:$0x1] }
  0x75   : > { %v3981_v2 = vcombine.low %v727_v52, %v730_v61  ;;  %v918_v38 = vrot.slane %v916_v59, 4  ;;  %v929_v45 = vshrl.u32 %v5030_v3, 16  ;;  %v3996_v4 = vcombine.low %v5019_v7, %v5030_v3 }
  0x76   : > { %2235 = vrot.lane.b32.xlu0 %v3980_v37, %s4542_s21  ;;  %v921_v39 = vrot.slane %v919_v63, 5  ;;  %v1132_v5 = vshrl.u32 %v3808_v60, 16  ;;  %v1135_v6 = vshll.u32 %v3808_v60, 16  ;;  %v1145_v8 = vshrl.u32 %v5040_v40, 16 }
  0x77   : > { %2253 = vrot.lane.b32.xlu1 %v3989_v13, %s4542_s21  ;;  %v4005_v11 = vcombine.low %v3808_v60, %v5040_v40  ;;  %v940_v14 = vshrl.u32 %v5046_v12, 16  ;;  %v943_v15 = vshll.u32 %v5046_v12, 16  ;;  %v953_v16 = vshrl.u32 %v5049_v0, 16  ;;  %v3844_v60 = vld [vmem:[%s4593_s19 + $0x84] sm:$0xe] }
  0x78   : > { %v1134_v20 = vrot.slane %v1132_v5, 4  ;;  %v1137_v22 = vrot.slane %v1135_v6, 5  ;;  %v3997_v23 = vcombine.low %v5046_v12, %v5049_v0  ;;  %v1114_v25 = vor.u32 %v1113_v62, %v1110_v56 }
  0x79   : > { %v942_v26 = vrot.slane %v940_v14, 4  ;;  %v945_v29 = vrot.slane %v943_v15, 5  ;;  %v1117_v17 = vshll.u32 %v5012_v24, 16  ;;  %v1123_v46 = vrot.slane %v1121_v31, 4 }
  0x7a   : > { %2237 = vrot.lane.b32.xlu0 %v3981_v2, %s4542_s21  ;;  %v1115_v19 = vrot.slane %v1114_v25, 4  ;;  %v1127_v32 = vshll.u32 %v5062_v18, 16  ;;  %v922_v33 = vor.u32 %v921_v39, %v918_v38  ;;  %v925_v27 = vshll.u32 %v5030_v3, 16 }
  0x7b   : > { %2347 = vrot.lane.b32.xlu1 %v4004_v58, %s4541_s20  ;;  %v1119_v36 = vrot.slane %v1117_v17, 5  ;;  %v931_v41 = vrot.slane %v929_v45, 4  ;;  %v935_v1 = vshll.u32 %v5067_v42, 16  ;;  %v1138_v35 = vor.u32 %v1137_v22, %v1134_v20 }
  0x7c   : > { %v1129_v51 = vrot.slane %v1127_v32, 5  ;;  %v923_v54 = vrot.slane %v922_v33, 4  ;;  %v927_v53 = vrot.slane %v925_v27, 5  ;;  %v1141_v57 = vshll.u32 %v5040_v40, 16  ;;  %v5120_v27 = vld [vmem:[%s4593_s19 + $0x90] sm:$0xf] }
  0x7d   : > { %v1120_v44 = vsel %vm4682_vm5, %v1115_v19, %v1119_v36  ;;  %v1124_v9 = vor.u32 %v1123_v46, %v1119_v36  ;;  %v937_v47 = vrot.slane %v935_v1, 5  ;;  %v1139_v49 = vrot.slane %v1138_v35, 4  ;;  %v5127_v35 = vld [vmem:[%s4593_s19 + $0x94] sm:$0xf] }
  0x7e   : > { %2331 = vrot.lane.b32.xlu0 %v3996_v4, %s4541_s20  ;;  %v928_v7 = vsel %vm4682_vm5, %v923_v54, %v927_v53  ;;  %v932_v37 = vor.u32 %v931_v41, %v927_v53  ;;  %v1143_v34 = vrot.slane %v1141_v57, 5  ;;  %v1147_v43 = vrot.slane %v1145_v8, 4  ;;  %v3836_v4 = vld [vmem:[%s4593_s19 + $0x24] sm:$0xe]  ;;  %v5134_v57 = vld [vmem:[%s4593_s19 + $0x30] sm:$0xf] }
  0x7f   : > { %2349 = vrot.lane.b32.xlu1 %v4005_v11, %s4541_s20  ;;  %v1125_v48 = vrot.slane %v1124_v9, 4  ;;  %v1151_v52 = vshll.u32 %v5076_v28, 16  ;;  %v946_v10 = vor.u32 %v945_v29, %v942_v26  ;;  %v949_v31 = vshll.u32 %v5049_v0, 16  ;;  %v3845_v11 = vld [vmem:[%s4593_s19 + $0x90] sm:$0xe] }
  0x80   : > { %v933_v55 = vrot.slane %v932_v37, 4  ;;  %v1144_v56 = vsel %vm4682_vm5, %v1139_v49, %v1143_v34  ;;  %v1148_v58 = vor.u32 %v1147_v43, %v1143_v34  ;;  %v955_v59 = vrot.slane %v953_v16, 4  ;;  %v3837_v29 = vld [vmem:[%s4593_s19 + $0x30] sm:$0xe]  ;;  %v5141_v49 = vld [vmem:[%s4593_s19 + $0x34] sm:$0xf] }
  0x81   : > { %v1130_v13 = vsel %vm4682_vm5, %v1125_v48, %v1129_v51  ;;  %v1153_v61 = vrot.slane %v1151_v52, 5  ;;  %v947_v62 = vrot.slane %v946_v10, 4  ;;  %v951_v63 = vrot.slane %v949_v31, 5 }
  0x82   : > { %2333 = vrot.lane.b32.xlu0 %v3997_v23, %s4541_s20  ;;  %v4020_v12 = vcombine.low %v1120_v44, %v1130_v13  ;;  %v938_v2 = vsel %vm4682_vm5, %v933_v55, %v937_v47  ;;  %v1149_v38 = vrot.slane %v1148_v58, 4  ;;  %v959_v45 = vshll.u32 %v5087_v50, 16  ;;  %v5158_v55 = vld [vmem:[%s4593_s19 + $0xa0] sm:$0xf]  ;;  %v5164_v13 = vld [vmem:[%s4593_s19 + $0x3c] sm:$0xf] }
  0x83   : > { %v4012_v39 = vcombine.low %v928_v7, %v938_v2  ;;  %v952_v5 = vsel %vm4682_vm5, %v947_v62, %v951_v63  ;;  %v956_v6 = vor.u32 %v955_v59, %v951_v63  ;;  %v3860_v8 = vrot.slane %v3844_v60, 9  ;;  %v5174_v2 = vld [vmem:[%s4593_s19 + $0x40] sm:$0xf] }
  0x84   : > { %2427 = vrot.lane.b32.xlu1 %v4020_v12, %s4544_s23  ;;  %v1154_v14 = vsel %vm4682_vm5, %v1149_v38, %v1153_v61  ;;  %v961_v15 = vrot.slane %v959_v45, 5  ;;  %v1387_v16 = vrot.slane %v5012_v24, 5  ;;  %v1390_v20 = vrot.slane %v5062_v18, 5 }
  0x85   : > { %v4021_v22 = vcombine.low %v1144_v56, %v1154_v14  ;;  %v957_v23 = vrot.slane %v956_v6, 4  ;;  %v3852_v25 = vrot.slane %v3836_v4, 9  ;;  %v1331_v26 = vrot.slane %v5030_v3, 5  ;;  %v5143_v7 = vpop.permute.xlu1 %2343 }
  0x86   : > { %2411 = vrot.lane.b32.xlu0 %v4012_v39, %s4544_s23  ;;  %v1388_v17 = vsel %vm4624_vm2, %v3860_v8, %v1387_v16  ;;  %v1389_v46 = vrot.slane %v1387_v16, 4  ;;  %v1334_v19 = vrot.slane %v5067_v42, 5  ;;  %v3861_v32 = vrot.slane %v3845_v11, 9 }
  0x87   : > { %v962_v24 = vsel %vm4682_vm5, %v957_v23, %v961_v15  ;;  %v1332_v18 = vsel %vm4624_vm2, %v3852_v25, %v1331_v26  ;;  %v1333_v33 = vrot.slane %v1331_v26, 4  ;;  %v1394_v3 = vrot.slane %v5040_v40, 5  ;;  %v5180_v6 = vpop.permute.xlu0 %2327  ;;  %v5193_v26 = vld [vmem:[%s4593_s19 + $0x38] sm:$0x1] }
  0x88   : > { %2429 = vrot.lane.b32.xlu1 %v4021_v22, %s4544_s23  ;;  %v4013_v36 = vcombine.low %v952_v5, %v962_v24  ;;  %v1391_v42 = vsel %vm4624_vm2, %v1389_v46, %v1390_v20  ;;  %v1397_v41 = vrot.slane %v5076_v28, 5  ;;  %v3853_v1 = vrot.slane %v3837_v29, 9  ;;  %v5178_v5 = vld [vmem:[%s4593_s19 + $0x98] sm:$0x1] }
  0x89   : > { %v4036_v51 = vcombine.low %v1388_v17, %v1391_v42  ;;  %v1335_v54 = vsel %vm4624_vm2, %v1333_v33, %v1334_v19  ;;  %v1395_v40 = vsel %vm4624_vm2, %v3861_v32, %v1394_v3  ;;  %v1396_v53 = vrot.slane %v1394_v3, 4 }
  0x8a   : > { %2413 = vrot.lane.b32.xlu0 %v4013_v36, %s4544_s23  ;;  %v4028_v44 = vcombine.low %v1332_v18, %v1335_v54  ;;  %v1338_v28 = vrot.slane %v5049_v0, 5  ;;  %v1341_v9 = vrot.slane %v5087_v50, 5  ;;  %v1720_v47 = vshrl.u32 %v5120_v27, 16  ;;  %v5152_v0 = vld [vmem:[%s4593_s19 + $0x9c] sm:$0xf] }
  0x8b   : > { %v1398_v37 = vsel %vm4624_vm2, %v1396_v53, %v1397_v41  ;;  %v1723_v34 = vshll.u32 %v5120_v27, 16  ;;  %v1733_v43 = vshrl.u32 %v5127_v35, 16  ;;  %v4052_v48 = vcombine.low %v5120_v27, %v5127_v35 }
  0x8c   : > { %2507 = vrot.lane.b32.xlu1 %v4036_v51, %s4545_s24  ;;  %v4037_v52 = vcombine.low %v1395_v40, %v1398_v37  ;;  %v1339_v50 = vsel %vm4624_vm2, %v3853_v1, %v1338_v28  ;;  %v1340_v10 = vrot.slane %v1338_v28, 4  ;;  %v1722_v31 = vrot.slane %v1720_v47, 4  ;;  %v5202_v51 = vld [vmem:[%s4593_s19 + $0xa4] sm:$0x1] }
  0x8d   : > { %v1725_v56 = vrot.slane %v1723_v34, 5  ;;  %v1528_v58 = vshrl.u32 %v5134_v57, 16  ;;  %v1531_v59 = vshll.u32 %v5134_v57, 16  ;;  %v1541_v60 = vshrl.u32 %v5141_v49, 16  ;;  %v5186_v16 = vpop.permute.xlu1 %2247 }
  0x8e   : > { %2491 = vrot.lane.b32.xlu0 %v4028_v44, %s4545_s24  ;;  %v1342_v61 = vsel %vm4624_vm2, %v1340_v10, %v1341_v9  ;;  %v4044_v62 = vcombine.low %v5134_v57, %v5141_v49  ;;  %v1744_v63 = vshrl.u32 %v5152_v0, 16  ;;  %v1747_v12 = vshll.u32 %v5152_v0, 16 }
  0x8f   : > { %v4029_v38 = vcombine.low %v1339_v50, %v1342_v61  ;;  %v1530_v45 = vrot.slane %v1528_v58, 4  ;;  %v1533_v4 = vrot.slane %v1531_v59, 5  ;;  %v1757_v39 = vshrl.u32 %v5158_v55, 16  ;;  %v5205_v53 = vpop.permute.xlu0 %2231  ;;  %v5217_v50 = vld [vmem:[%s4593_s19 + $0x44] sm:$0x1] }
  0x90   : > { %2509 = vrot.lane.b32.xlu1 %v4037_v52, %s4545_s24  ;;  %v1746_v8 = vrot.slane %v1744_v63, 4  ;;  %v1749_v11 = vrot.slane %v1747_v12, 5  ;;  %v4053_v14 = vcombine.low %v5152_v0, %v5158_v55  ;;  %v1552_v15 = vshrl.u32 %v5164_v13, 16 }
  0x91   : > { %v1555_v20 = vshll.u32 %v5164_v13, 16  ;;  %v1565_v22 = vshrl.u32 %v5174_v2, 16  ;;  %v4045_v23 = vcombine.low %v5164_v13, %v5174_v2  ;;  %v1726_v25 = vor.u32 %v1725_v56, %v1722_v31  ;;  %v5210_v47 = vpop.permute.xlu1 %2249  ;;  %v3924_v13 = vld [vmem:[%s4593_s19 + $0x90] sm:$0xe] }
  0x92   : > { %2493 = vrot.lane.b32.xlu0 %v4029_v38, %s4545_s24  ;;  %v1554_v29 = vrot.slane %v1552_v15, 4  ;;  %v1729_v17 = vshll.u32 %v5127_v35, 16  ;;  %v1735_v46 = vrot.slane %v1733_v43, 4  ;;  %v1739_v19 = vshll.u32 %v5178_v5, 16 }
  0x93   : > { %v1557_v32 = vrot.slane %v1555_v20, 5  ;;  %v1727_v24 = vrot.slane %v1726_v25, 4  ;;  %v1534_v18 = vor.u32 %v1533_v4, %v1530_v45  ;;  %v1537_v33 = vshll.u32 %v5141_v49, 16 }
  0x94   : > { %2603 = vrot.lane.b32.xlu1 %v4052_v48, %s4546_s25  ;;  %v1731_v3 = vrot.slane %v1729_v17, 5  ;;  %v1741_v27 = vrot.slane %v1739_v19, 5  ;;  %v1543_v36 = vrot.slane %v1541_v60, 4  ;;  %v1547_v42 = vshll.u32 %v5193_v26, 16 }
  0x95   : > { %v1535_v41 = vrot.slane %v1534_v18, 4  ;;  %v1539_v1 = vrot.slane %v1537_v33, 5  ;;  %v1750_v54 = vor.u32 %v1749_v11, %v1746_v8  ;;  %v1753_v40 = vshll.u32 %v5158_v55, 16  ;;  %v3916_v8 = vld [vmem:[%s4593_s19 + $0x30] sm:$0xe]  ;;  %v5230_v11 = vpop.permute.xlu0 %2233 }
  0x96   : > { %2587 = vrot.lane.b32.xlu0 %v4044_v62, %s4546_s25  ;;  %v1732_v57 = vsel %vm4682_vm5, %v1727_v24, %v1731_v3  ;;  %v1736_v44 = vor.u32 %v1735_v46, %v1731_v3  ;;  %v1549_v28 = vrot.slane %v1547_v42, 5  ;;  %v1759_v9 = vrot.slane %v1757_v39, 4  ;;  %v5245_v3 = vld [vmem:[%s4593_s19 + $0x94] sm:$0xf] }
  0x97   : > { %v1540_v37 = vsel %vm4682_vm5, %v1535_v41, %v1539_v1  ;;  %v1544_v34 = vor.u32 %v1543_v36, %v1539_v1  ;;  %v1751_v43 = vrot.slane %v1750_v54, 4  ;;  %v1755_v48 = vrot.slane %v1753_v40, 5  ;;  %v5255_v54 = vld [vmem:[%s4593_s19 + $0x98] sm:$0x1]  ;;  %v209_v40 = vld [vmem:[%s4593_s19 + $0x30] sm:$0xf] }
  0x98   : > { %2605 = vrot.lane.b32.xlu1 %v4053_v14, %s4546_s25  ;;  %v1737_v0 = vrot.slane %v1736_v44, 4  ;;  %v1763_v52 = vshll.u32 %v5202_v51, 16  ;;  %v1558_v10 = vor.u32 %v1557_v32, %v1554_v29  ;;  %v1561_v31 = vshll.u32 %v5174_v2, 16 }
  0x99   : > { %v1545_v56 = vrot.slane %v1544_v34, 4  ;;  %v1756_v58 = vsel %vm4682_vm5, %v1751_v43, %v1755_v48  ;;  %v1760_v59 = vor.u32 %v1759_v9, %v1755_v48  ;;  %v1567_v60 = vrot.slane %v1565_v22, 4  ;;  %v5263_v9 = vld [vmem:[%s4593_s19 + $0x34] sm:$0xf] }
  0x9a   : > { %2589 = vrot.lane.b32.xlu0 %v4045_v23, %s4546_s25  ;;  %v1742_v61 = vsel %vm4682_vm5, %v1737_v0, %v1741_v27  ;;  %v1765_v62 = vrot.slane %v1763_v52, 5  ;;  %v1559_v63 = vrot.slane %v1558_v10, 4  ;;  %v1563_v12 = vrot.slane %v1561_v31, 5  ;;  %v225_v23 = vld [vmem:[%s4593_s19 + $0x90] sm:$0xf]  ;;  %v5235_v25 = vpop.permute.xlu1 %2153 }
  0x9b   : > { %v4068_v38 = vcombine.low %v1732_v57, %v1742_v61  ;;  %v1550_v45 = vsel %vm4682_vm5, %v1545_v56, %v1549_v28  ;;  %v1761_v4 = vrot.slane %v1760_v59, 4  ;;  %v1571_v39 = vshll.u32 %v5217_v50, 16  ;;  %v5271_v52 = vld [vmem:[%s4593_s19 + $0x38] sm:$0x1] }
  0x9c   : > { %v4060_v14 = vcombine.low %v1540_v37, %v1550_v45  ;;  %v1564_v15 = vsel %vm4682_vm5, %v1559_v63, %v1563_v12  ;;  %v1568_v20 = vor.u32 %v1567_v60, %v1563_v12  ;;  %v3940_v22 = vrot.slane %v3924_v13, 9 }
  0x9d   : > { %2683 = vrot.lane.b32.xlu1 %v4068_v38, %s4547_s26  ;;  %v1766_v29 = vsel %vm4682_vm5, %v1761_v4, %v1765_v62  ;;  %v1573_v17 = vrot.slane %v1571_v39, 5  ;;  %v1999_v46 = vrot.slane %v5127_v35, 5  ;;  %v2002_v19 = vrot.slane %v5178_v5, 5 }
  0x9e   : > { %2667 = vrot.lane.b32.xlu0 %v4060_v14, %s4547_s26  ;;  %v4069_v32 = vcombine.low %v1756_v58, %v1766_v29  ;;  %v1569_v24 = vrot.slane %v1568_v20, 4  ;;  %v3932_v18 = vrot.slane %v3916_v8, 9  ;;  %v1943_v33 = vrot.slane %v5141_v49, 5  ;;  %v5265_v37 = vpop.permute.xlu0 %2151  ;;  %v4487_v29 = vld [vmem:[%s4593_s19 + $0xc] sm:$0xf] }
  0x9f   : > { %v2000_v27 = vsel %vm4624_vm2, %v3940_v22, %v1999_v46  ;;  %v2001_v36 = vrot.slane %v1999_v46, 4  ;;  %v1946_v42 = vrot.slane %v5193_v26, 5  ;;  %v541_v35 = vshrl.u32 %v225_v23, 16 }
  0xa0   : > { %v1574_v5 = vsel %vm4682_vm5, %v1569_v24, %v1573_v17  ;;  %v1944_v41 = vsel %vm4624_vm2, %v3932_v18, %v1943_v33  ;;  %v1945_v1 = vrot.slane %v1943_v33, 4  ;;  %v544_v49 = vshll.u32 %v225_v23, 16  ;;  %v4486_v23 = vld [vmem:[%s4593_s19 + $0x10] sm:$0xf] }
  0xa1   : > { %2685 = vrot.lane.b32.xlu1 %v4069_v32, %s4547_s26  ;;  %v4061_v57 = vcombine.low %v1564_v15, %v1574_v5  ;;  %v2003_v44 = vsel %vm4624_vm2, %v2001_v36, %v2002_v19  ;;  %v543_v26 = vrot.slane %v541_v35, 4  ;;  %v550_v28 = vshll.u32 %v5245_v3, 16  ;;  %v3925_v15 = vld [vmem:[%s4593_s19 + $0x9c] sm:$0xe]  ;;  %v4488_v5 = vld [vmem:[%s4593_s19 + $0x4] sm:$0xf] }
  0xa2   : > { %v4084_v34 = vcombine.low %v2000_v27, %v2003_v44  ;;  %v1947_v43 = vsel %vm4624_vm2, %v1945_v1, %v1946_v42  ;;  %v546_v48 = vrot.slane %v544_v49, 5  ;;  %v554_v0 = vshrl.u32 %v5245_v3, 16  ;;  %v5273_v10 = vpop.permute.xlu1 %2169  ;;  %v3917_v36 = vld [vmem:[%s4593_s19 + $0x3c] sm:$0xe] }
  0xa3   : > { %2669 = vrot.lane.b32.xlu0 %v4061_v57, %s4547_s26  ;;  %v4076_v31 = vcombine.low %v1944_v41, %v1947_v43  ;;  %v552_v56 = vrot.slane %v550_v28, 5  ;;  %v560_v58 = vshll.u32 %v5255_v54, 16  ;;  %v349_v59 = vshrl.u32 %v209_v40, 16  ;;  %v4489_v41 = vld [vmem:[%s4593_s19] sm:$0xf] }
  0xa4   : > { %v547_v60 = vor.u32 %v546_v48, %v543_v26  ;;  %v556_v13 = vrot.slane %v554_v0, 4  ;;  %v352_v61 = vshll.u32 %v209_v40, 16  ;;  %v358_v62 = vshll.u32 %v5263_v9, 16  ;;  %v227_v28 = vld [vmem:[%s4593_s19 + $0x9c] sm:$0xf] }
  0xa5   : > { %2763 = vrot.lane.b32.xlu1 %v4084_v34, %s4548_s27  ;;  %v562_v63 = vrot.slane %v560_v58, 5  ;;  %v351_v12 = vrot.slane %v349_v59, 4  ;;  %v362_v38 = vshrl.u32 %v5263_v9, 16  ;;  %v368_v45 = vshll.u32 %v5271_v52, 16  ;;  %v4490_v58 = vld [vmem:[%s4593_s19 + $0x70] sm:$0xf] }
  0xa6   : > { %v548_v4 = vrot.slane %v547_v60, 4  ;;  %v557_v39 = vor.u32 %v556_v13, %v552_v56  ;;  %v354_v8 = vrot.slane %v352_v61, 5  ;;  %v360_v14 = vrot.slane %v358_v62, 5  ;;  %v5282_v20 = vpop.permute.xlu1 %2345  ;;  %v4491_v59 = vld [vmem:[%s4593_s19 + $0x6c] sm:$0xf] }
  0xa7   : > { %2747 = vrot.lane.b32.xlu0 %v4076_v31, %s4548_s27  ;;  %v364_v22 = vrot.slane %v362_v38, 4  ;;  %v3947_v17 = vcombine.low %v4487_v29, %v4486_v23  ;;  %v5287_v46 = vpop.permute.xlu0 %2167  ;;  %v370_v33 = vrot.slane %v368_v45, 5  ;;  %v3941_v27 = vrot.slane %v3925_v15, 9  ;;  %v5319_v13 = vld [vmem:[%s4593_s19 + $0xa0] sm:$0xf] }
  0xa8   : > { %v553_v19 = vsel %vm4682_vm5, %v548_v4, %v552_v56  ;;  %v558_v32 = vrot.slane %v557_v39, 4  ;;  %v355_v24 = vor.u32 %v354_v8, %v351_v12  ;;  %v3946_v1 = vcombine.low %v4489_v41, %v4488_v5  ;;  %v4492_v45 = vld [vmem:[%s4593_s19 + $0x64] sm:$0xf]  ;;  %v4493_v4 = vld [vmem:[%s4593_s19 + $0x60] sm:$0xf] }
  0xa9   : > { %v365_v18 = vor.u32 %v364_v22, %v360_v14  ;;  %v2006_v49 = vrot.slane %v5158_v55, 5  ;;  %v5299_v44 = vsel %vm2775_vm6, %v3947_v17, %v5235_v25  ;;  %v2009_v26 = vrot.slane %v5202_v51, 5  ;;  %v211_v8 = vld [vmem:[%s4593_s19 + $0x3c] sm:$0xf]  ;;  %v5338_v17 = vld [vmem:[%s4593_s19 + $0x40] sm:$0xf] }
  0xaa   : > { %v563_v42 = vsel %vm4682_vm5, %v558_v32, %v562_v63  ;;  %v356_v35 = vrot.slane %v355_v24, 4  ;;  %v5305_v43 = vpop.permute.xlu1 %2423  ;;  %v3933_v31 = vrot.slane %v3917_v36, 9  ;;  %v1950_v25 = vrot.slane %v5174_v2, 5  ;;  %v5324_v63 = vld [vmem:[%s4593_s19 + $0xa4] sm:$0x1] }
  0xab   : > { %v3974_v40 = vcombine.low %v553_v19, %v563_v42  ;;  %v366_v57 = vrot.slane %v365_v18, 4  ;;  %v5303_v34 = vpop.permute.xlu0 %2329  ;;  %v2007_v48 = vsel %vm4624_vm2, %v3941_v27, %v2006_v49  ;;  %v2008_v0 = vrot.slane %v2006_v49, 4 }
  0xac   : > { %v361_v55 = vsel %vm4682_vm5, %v356_v35, %v360_v14  ;;  %v1953_v56 = vrot.slane %v5217_v50, 5  ;;  %v3955_v60 = vcombine.low %v4491_v59, %v4490_v58  ;;  %v565_v12 = vshrl.u32 %v227_v28, 16 }
  0xad   : > { %2175 = vrot.lane.b32.xlu1 %v3974_v40, %s4543_s22  ;;  %v371_v51 = vsel %vm4682_vm5, %v366_v57, %v370_v33  ;;  %v2010_v62 = vsel %vm4624_vm2, %v2008_v0, %v2009_v26  ;;  %v1951_v2 = vsel %vm4624_vm2, %v3933_v31, %v1950_v25  ;;  %v1952_v50 = vrot.slane %v1950_v25, 4  ;;  %v5348_v33 = vld [vmem:[%s4593_s19 + $0x44] sm:$0x1] }
  0xae   : > { %v3966_v61 = vcombine.low %v361_v55, %v371_v51  ;;  %v4085_v38 = vcombine.low %v2007_v48, %v2010_v62  ;;  %v3954_v39 = vcombine.low %v4493_v4, %v4492_v45  ;;  %v2778_v15 = vsel %vm2775_vm6, %v3946_v1, %v5265_v37 }
  0xaf   : > { %v5331_v14 = vpop.permute.xlu0 %2407  ;;  %v567_v22 = vrot.slane %v565_v12, 4  ;;  %v568_v23 = vshll.u32 %v227_v28, 16  ;;  %v574_v29 = vshll.u32 %v5319_v13, 16  ;;  %v1954_v19 = vsel %vm4624_vm2, %v1952_v50, %v1953_v56 }
  0xb0   : > { %2159 = vrot.lane.b32.xlu0 %v3966_v61, %s4543_s22  ;;  %v2805_v32 = vsel %vm2775_vm6, %v3955_v60, %v5273_v10  ;;  %v578_v24 = vshrl.u32 %v5319_v13, 16  ;;  %v584_v18 = vshll.u32 %v5324_v63, 16  ;;  %v4077_v27 = vcombine.low %v1951_v2, %v1954_v19 }
  0xb1   : > { %2765 = vrot.lane.b32.xlu1 %v4085_v38, %s4548_s27  ;;  %v5350_v37 = vpop.permute.xlu1 %2425  ;;  %v570_v36 = vrot.slane %v568_v23, 5  ;;  %v576_v42 = vrot.slane %v574_v29, 5  ;;  %v373_v35 = vshrl.u32 %v211_v8, 16  ;;  %v2802_v5 = vsel %vm2775_vm6, %v3954_v39, %v5287_v46  ;;  %v648_v46 = vld [vmem:[%s4593_s19 + $0x90] sm:$0xe] }
  0xb2   : > { %v580_v41 = vrot.slane %v578_v24, 4  ;;  %v376_v1 = vshll.u32 %v211_v8, 16  ;;  %v382_v10 = vshll.u32 %v5338_v17, 16  ;;  %v386_v26 = vshrl.u32 %v5338_v17, 16  ;;  %v640_v38 = vld [vmem:[%s4593_s19 + $0x30] sm:$0xe] }
  0xb3   : > { %v5355_v49 = vpop.permute.xlu0 %2409  ;;  %v571_v40 = vor.u32 %v570_v36, %v567_v22  ;;  %v375_v57 = vrot.slane %v373_v35, 4  ;;  %v392_v28 = vshll.u32 %v5348_v33, 16  ;;  %v586_v48 = vrot.slane %v584_v18, 5 }
  0xb4   : > { %2749 = vrot.lane.b32.xlu0 %v4077_v27, %s4548_s27  ;;  %v581_v55 = vor.u32 %v580_v41, %v576_v42  ;;  %v378_v0 = vrot.slane %v376_v1, 5  ;;  %v384_v31 = vrot.slane %v382_v10, 5  ;;  %v2826_v25 = vsel %vm2824_vm7, %v2778_v15, %v5205_v53  ;;  %v641_v1 = vld [vmem:[%s4593_s19 + $0x3c] sm:$0xe] }
  0xb5   : > { %v5361_v51 = vpop.permute.xlu1 %2503  ;;  %v2842_v56 = vsel %vm2824_vm7, %v2802_v5, %v5186_v16  ;;  %v572_v58 = vrot.slane %v571_v40, 4  ;;  %v388_v59 = vrot.slane %v386_v26, 4  ;;  %v394_v62 = vrot.slane %v392_v28, 5 }
  0xb6   : > { %v582_v60 = vrot.slane %v581_v55, 4  ;;  %v379_v61 = vor.u32 %v378_v0, %v375_v57  ;;  %v2844_v12 = vsel %vm2824_vm7, %v2805_v32, %v5210_v47  ;;  %v3782_v53 = vrot.slane %v648_v46, 9  ;;  %v5411_v57 = vld [vmem:[%s4593_s19 + $0x9c] sm:$0xf] }
  0xb7   : > { %v5370_v2 = vpop.permute.xlu0 %2487  ;;  %v577_v50 = vsel %vm4682_vm5, %v572_v58, %v576_v42  ;;  %v389_v45 = vor.u32 %v388_v59, %v384_v31  ;;  %v789_v39 = vrot.slane %v5245_v3, 5  ;;  %v792_v8 = vrot.slane %v5255_v54, 5  ;;  %v649_v42 = vld [vmem:[%s4593_s19 + $0x9c] sm:$0xe]  ;;  %v5429_v58 = vld [vmem:[%s4593_s19 + $0xa0] sm:$0xf] }
  0xb8   : > { %v587_v16 = vsel %vm4682_vm5, %v582_v60, %v586_v48  ;;  %v380_v4 = vrot.slane %v379_v61, 4  ;;  %v3774_v23 = vrot.slane %v640_v38, 9  ;;  %v733_v29 = vrot.slane %v5263_v9, 5  ;;  %v3794_v46 = vld [vmem:[%s4593_s19 + $0x3c] sm:$0xf] }
  0xb9   : > { %v5378_v15 = vpop.permute.xlu1 %2505  ;;  %v3975_v47 = vcombine.low %v577_v50, %v587_v16  ;;  %v390_v22 = vrot.slane %v389_v45, 4  ;;  %v790_v32 = vsel %vm4624_vm2, %v3782_v53, %v789_v39  ;;  %v791_v24 = vrot.slane %v789_v39, 4  ;;  %v5453_v16 = vld [vmem:[%s4593_s19 + $0x40] sm:$0xf] }
  0xba   : > { %v385_v19 = vsel %vm4682_vm5, %v380_v4, %v384_v31  ;;  %v736_v3 = vrot.slane %v5271_v52, 5  ;;  %v2828_v9 = vsel %vm2824_vm7, %v5299_v44, %v5230_v11  ;;  %v734_v27 = vsel %vm4624_vm2, %v3774_v23, %v733_v29 }
  0xbb   : > { %v5386_v18 = vpop.permute.xlu0 %2489  ;;  %2177 = vrot.lane.b32.xlu1 %v3975_v47, %s4543_s22  ;;  %v395_v54 = vsel %vm4682_vm5, %v390_v22, %v394_v62  ;;  %v735_v36 = vrot.slane %v733_v29, 4  ;;  %v2877_v52 = vsel %vm2857_vm8, %v2844_v12, %v5282_v20  ;;  %v2861_v5 = vsel %vm2857_vm8, %v2828_v9, %v5303_v34  ;;  %v3812_v12 = vld [vmem:[%s4593_s19 + $0xa8] sm:$0xf]  ;;  %v5458_v47 = vld [vmem:[%s4593_s19 + $0xac] sm:$0xf] }
  0xbc   : > { %v3967_v35 = vcombine.low %v385_v19, %v395_v54  ;;  %v793_v41 = vsel %vm4624_vm2, %v791_v24, %v792_v8  ;;  %v2875_v44 = vsel %vm2857_vm8, %v2842_v56, %v5143_v7  ;;  %v3783_v34 = vrot.slane %v649_v42, 9  ;;  %v3796_v22 = vld [vmem:[%s4593_s19 + $0x48] sm:$0xf]  ;;  %v5465_v24 = vld [vmem:[%s4593_s19 + $0x4c] sm:$0xf] }
  0xbd   : > { %v5404_v10 = vpop.permute.xlu1 %2599  ;;  %v3990_v40 = vcombine.low %v790_v32, %v793_v41  ;;  %v737_v11 = vsel %vm4624_vm2, %v735_v36, %v736_v3  ;;  %v796_v26 = vrot.slane %v5319_v13, 5  ;;  %v799_v28 = vrot.slane %v5324_v63, 5  ;;  %v5483_v41 = vld [vmem:[%s4593_s19 + $0xa4] sm:$0x1] }
  0xbe   : > { %2161 = vrot.lane.b32.xlu0 %v3967_v35, %s4543_s22  ;;  %v3982_v20 = vcombine.low %v734_v27, %v737_v11  ;;  %v2859_v48 = vsel %vm2857_vm8, %v2826_v25, %v5180_v6  ;;  %v3775_v0 = vrot.slane %v641_v1, 9  ;;  %v740_v7 = vrot.slane %v5338_v17, 5 }
  0xbf   : > { %v5416_v55 = vpop.permute.xlu0 %2583  ;;  %2255 = vrot.lane.b32.xlu1 %v3990_v40, %s4542_s21  ;;  %v743_v31 = vrot.slane %v5348_v33, 5  ;;  %v2908_v56 = vsel %vm2890_vm9, %v2875_v44, %v5305_v43  ;;  %v797_v13 = vsel %vm4624_vm2, %v3783_v34, %v796_v26  ;;  %v798_v63 = vrot.slane %v796_v26, 4 }
  0xc0   : > { %v1156_v59 = vshrl.u32 %v5411_v57, 16  ;;  %v2892_v17 = vsel %vm2890_vm9, %v2859_v48, %v5331_v14  ;;  %v741_v33 = vsel %vm4624_vm2, %v3775_v0, %v740_v7  ;;  %v742_v25 = vrot.slane %v740_v7, 4 }
  0xc1   : > { %v5432_v6 = vpop.permute.xlu1 %2601  ;;  %v1159_v43 = vshll.u32 %v5411_v57, 16  ;;  %v800_v60 = vsel %vm4624_vm2, %v798_v63, %v799_v28  ;;  %v2910_v61 = vsel %vm2890_vm9, %v2877_v52, %v5350_v37  ;;  %v2894_v62 = vsel %vm2890_vm9, %v2861_v5, %v5355_v49 }
  0xc2   : > { %2239 = vrot.lane.b32.xlu0 %v3982_v20, %s4542_s21  ;;  %v964_v14 = vshrl.u32 %v3794_v46, 16  ;;  %v3991_v50 = vcombine.low %v797_v13, %v800_v60  ;;  %v744_v45 = vsel %vm4624_vm2, %v742_v25, %v743_v31  ;;  %v1169_v53 = vshrl.u32 %v5429_v58, 16  ;;  %v5505_v25 = vld [vmem:[%s4593_s19 + $0xb0] sm:$0x1] }
  0xc3   : > { %v5447_v38 = vpop.permute.xlu0 %2585  ;;  %v967_v4 = vshll.u32 %v3794_v46, 16  ;;  %v3983_v39 = vcombine.low %v741_v33, %v744_v45  ;;  %v1158_v8 = vrot.slane %v1156_v59, 4  ;;  %v1161_v37 = vrot.slane %v1159_v43, 5 }
  0xc4   : > { %v4006_v49 = vcombine.low %v5411_v57, %v5429_v58  ;;  %2257 = vrot.lane.b32.xlu1 %v3991_v50, %s4542_s21  ;;  %v966_v29 = vrot.slane %v964_v14, 4  ;;  %v1180_v19 = vshrl.u32 %v3812_v12, 16  ;;  %v1183_v32 = vshll.u32 %v3812_v12, 16 }
  0xc5   : > { %v5461_v23 = vpop.permute.xlu1 %2679  ;;  %v969_v3 = vrot.slane %v967_v4, 5  ;;  %v977_v54 = vshrl.u32 %v5453_v16, 16  ;;  %v3998_v9 = vcombine.low %v3794_v46, %v5453_v16  ;;  %v5472_v27 = vsel %vm2923_vm10, %v2908_v56, %v5361_v51  ;;  %v5487_v51 = vld [vmem:[%s4593_s19 + $0x44] sm:$0x1] }
  0xc6   : > { %2241 = vrot.lane.b32.xlu0 %v3983_v39, %s4542_s21  ;;  %v5478_v42 = vsel %vm2923_vm10, %v2892_v17, %v5370_v2  ;;  %v1182_v35 = vrot.slane %v1180_v19, 4  ;;  %v1193_v52 = vshrl.u32 %v5458_v47, 16  ;;  %v4007_v5 = vcombine.low %v3812_v12, %v5458_v47 }
  0xc7   : > { %v5474_v36 = vpop.permute.xlu0 %2663  ;;  %v1185_v1 = vrot.slane %v1183_v32, 5  ;;  %v988_v40 = vshrl.u32 %v3796_v22, 16  ;;  %v991_v11 = vshll.u32 %v3796_v22, 16  ;;  %v1001_v44 = vshrl.u32 %v5465_v24, 16 }
  0xc8   : > { %2351 = vrot.lane.b32.xlu1 %v4006_v49, %s4541_s20  ;;  %v3999_v2 = vcombine.low %v3796_v22, %v5465_v24  ;;  %v5495_v20 = vsel %vm2923_vm10, %v2910_v61, %v5378_v15  ;;  %v1162_v34 = vor.u32 %v1161_v37, %v1158_v8  ;;  %v1165_v26 = vshll.u32 %v5429_v58, 16  ;;  %v5522_v22 = vld [vmem:[%s4593_s19 + $0x50] sm:$0x1] }
  0xc9   : > { %v5489_v57 = vpop.permute.xlu1 %2681  ;;  %v1171_v28 = vrot.slane %v1169_v53, 4  ;;  %v1175_v48 = vshll.u32 %v5483_v41, 16  ;;  %v970_v0 = vor.u32 %v969_v3, %v966_v29  ;;  %v973_v7 = vshll.u32 %v5453_v16, 16 }
  0xca   : > { %2335 = vrot.lane.b32.xlu0 %v3998_v9, %s4541_s20  ;;  %v1163_v31 = vrot.slane %v1162_v34, 4  ;;  %v1167_v46 = vrot.slane %v1165_v26, 5  ;;  %v979_v56 = vrot.slane %v977_v54, 4  ;;  %v983_v13 = vshll.u32 %v5487_v51, 16 }
  0xcb   : > { %v5502_v63 = vpop.permute.xlu0 %2665  ;;  %v990_v15 = vrot.slane %v988_v40, 4  ;;  %v993_v59 = vrot.slane %v991_v11, 5  ;;  %v971_v17 = vrot.slane %v970_v0, 4  ;;  %v975_v33 = vrot.slane %v973_v7, 5  ;;  %v3846_v40 = vld [vmem:[%s4593_s19 + $0x9c] sm:$0xe] }
  0xcc   : > { %2353 = vrot.lane.b32.xlu1 %v4007_v5, %s4541_s20  ;;  %v5510_v43 = vsel %vm2923_vm10, %v2894_v62, %v5386_v18  ;;  %v1168_v60 = vsel %vm4682_vm5, %v1163_v31, %v1167_v46  ;;  %v1172_v61 = vor.u32 %v1171_v28, %v1167_v46  ;;  %v1177_v14 = vrot.slane %v1175_v48, 5  ;;  %v3838_v28 = vld [vmem:[%s4593_s19 + $0x3c] sm:$0xe] }
  0xcd   : > { %v976_v12 = vsel %vm4682_vm5, %v971_v17, %v975_v33  ;;  %v980_v50 = vor.u32 %v979_v56, %v975_v33  ;;  %v985_v45 = vrot.slane %v983_v13, 5  ;;  %v1186_v53 = vor.u32 %v1185_v1, %v1182_v35  ;;  %v5517_v4 = vpop.permute.xlu1 %2759  ;;  %v3847_v33 = vld [vmem:[%s4593_s19 + $0xa8] sm:$0xe] }
  0xce   : > { %2337 = vrot.lane.b32.xlu0 %v3999_v2, %s4541_s20  ;;  %v1173_v39 = vrot.slane %v1172_v61, 4  ;;  %v1189_v18 = vshll.u32 %v5458_v47, 16  ;;  %v1195_v62 = vrot.slane %v1193_v52, 4  ;;  %v1199_v8 = vshll.u32 %v5505_v25, 16 }
  0xcf   : > { %v981_v37 = vrot.slane %v980_v50, 4  ;;  %v1187_v49 = vrot.slane %v1186_v53, 4  ;;  %v994_v29 = vor.u32 %v993_v59, %v990_v15  ;;  %v997_v19 = vshll.u32 %v5465_v24, 16  ;;  %v5527_v9 = vpop.permute.xlu0 %2743  ;;  %v3839_v53 = vld [vmem:[%s4593_s19 + $0x48] sm:$0xe] }
  0xd0   : > { %v1178_v32 = vsel %vm4682_vm5, %v1173_v39, %v1177_v14  ;;  %v1191_v3 = vrot.slane %v1189_v18, 5  ;;  %v1003_v54 = vrot.slane %v1001_v44, 4  ;;  %v1201_v34 = vrot.slane %v1199_v8, 5 }
  0xd1   : > { %v4022_v35 = vcombine.low %v1168_v60, %v1178_v32  ;;  %v986_v52 = vsel %vm4682_vm5, %v981_v37, %v985_v45  ;;  %v995_v5 = vrot.slane %v994_v29, 4  ;;  %v999_v1 = vrot.slane %v997_v19, 5  ;;  %v4331_v29 = vld [vmem:[%s6593_s1 + $0x10] ss:$0 sps:$4 sm:$0x33]  }
  0xd2   : > { %v4014_v11 = vcombine.low %v976_v12, %v986_v52  ;;  %v1196_v2 = vor.u32 %v1195_v62, %v1191_v3  ;;  %v1007_v26 = vshll.u32 %v5522_v22, 16  ;;  %v2974_v44 = vsel %vm2956_vm11, %v5472_v27, %v5404_v10  ;;  %v5576_v19 = vld [vmem:[%s4593_s19 + $0xa8] sm:$0xf]  ;;  %4272 = vmatprep.subr.msk.bf16.mxu0 %vm3115_vm13, %v4331_v29  ;;  %4273 = vmatprep.subr.msk.bf16.mxu1 %vm3115_vm13, %v4331_v29 }
  0xd3   : > { %2431 = vrot.lane.b32.xlu1 %v4022_v35, %s4544_s23  ;;  %v1192_v48 = vsel %vm4682_vm5, %v1187_v49, %v1191_v3  ;;  %v1000_v0 = vsel %vm4682_vm5, %v995_v5, %v999_v1  ;;  %v1004_v7 = vor.u32 %v1003_v54, %v999_v1  ;;  %v3862_v13 = vrot.slane %v3846_v40, 9  ;;  %v5593_v5 = vld [vmem:[%s4593_s19 + $0x48] sm:$0xf] }
  0xd4   : > { %2415 = vrot.lane.b32.xlu0 %v4014_v11, %s4544_s23  ;;  %v1197_v46 = vrot.slane %v1196_v2, 4  ;;  %v1009_v56 = vrot.slane %v1007_v26, 5  ;;  %v1401_v15 = vrot.slane %v5429_v58, 5  ;;  %v1404_v10 = vrot.slane %v5483_v41, 5  ;;  %v4334_v26 = vld [vmem:[%s6593_s1 + $0x8] sm:$0xff]  }
  0xd5   : > { %v5542_v31 = vpop.permute.xlu1 %2171  ;;  %v1005_v59 = vrot.slane %v1004_v7, 4  ;;  %v3854_v27 = vrot.slane %v3838_v28, 9  ;;  %v1345_v17 = vrot.slane %v5453_v16, 5  ;;  %v1348_v12 = vrot.slane %v5487_v51, 5  ;;  %v5627_v28 = vld [vmem:[%s4593_s19 + $0xb4] sm:$0xf] }
  0xd6   : > { %v1202_v60 = vsel %vm4682_vm5, %v1197_v46, %v1201_v34  ;;  %v1402_v61 = vsel %vm4624_vm2, %v3862_v13, %v1401_v15  ;;  %v1403_v14 = vrot.slane %v1401_v15, 4  ;;  %v3863_v62 = vrot.slane %v3847_v33, 9  ;;  %v5637_v7 = vld [vmem:[%s4593_s19 + $0x54] sm:$0xf] }
  0xd7   : > { %v4023_v58 = vcombine.low %v1192_v48, %v1202_v60  ;;  %v1010_v41 = vsel %vm4682_vm5, %v1005_v59, %v1009_v56  ;;  %v1346_v16 = vsel %vm4624_vm2, %v3854_v27, %v1345_v17  ;;  %v1347_v45 = vrot.slane %v1345_v17, 4 }
  0xd8   : > { %v5554_v50 = vpop.permute.xlu0 %2155  ;;  %v4015_v39 = vcombine.low %v1000_v0, %v1010_v41  ;;  %v1405_v18 = vsel %vm4624_vm2, %v1403_v14, %v1404_v10  ;;  %v2958_v51 = vsel %vm2956_vm11, %v5478_v42, %v5416_v55  ;;  %v2976_v8 = vsel %vm2956_vm11, %v5495_v20, %v5432_v6  ;;  %v5644_v10 = vld [vmem:[%s4593_s19 + $0xb8] sm:$0xf] }
  0xd9   : > { %2433 = vrot.lane.b32.xlu1 %v4023_v58, %s4544_s23  ;;  %v4038_v37 = vcombine.low %v1402_v61, %v1405_v18  ;;  %v1349_v49 = vsel %vm4624_vm2, %v1347_v45, %v1348_v12  ;;  %v5578_v32 = vpop.permute.xlu1 %2761  ;;  %v1408_v42 = vrot.slane %v5458_v47, 5  ;;  %v1411_v6 = vrot.slane %v5505_v25, 5  ;;  %v5598_v25 = vld [vmem:[%s4593_s19 + $0xac] sm:$0xf]  ;;  %v5651_v61 = vld [vmem:[%s4593_s19 + $0x58] sm:$0xf] }
  0xda   : > { %2417 = vrot.lane.b32.xlu0 %v4015_v39, %s4544_s23  ;;  %v4030_v55 = vcombine.low %v1346_v16, %v1349_v49  ;;  %v3855_v20 = vrot.slane %v3839_v53, 9  ;;  %v2960_v3 = vsel %vm2956_vm11, %v5510_v43, %v5447_v38  ;;  %v5588_v54 = vsel %vm2989_vm12, %v2974_v44, %v5461_v23  ;;  %v4339_v49 = vld [vmem:[%s6593_s1] sm:$0xff]  }
  0xdb   : > { %v1352_v35 = vrot.slane %v5465_v24, 5  ;;  %v1355_v52 = vrot.slane %v5522_v22, 5  ;;  %v1409_v47 = vsel %vm4624_vm2, %v3863_v62, %v1408_v42  ;;  %v1410_v1 = vrot.slane %v1408_v42, 4  ;;  %v5665_v62 = vld [vmem:[%s4593_s19 + $0xb0] sm:$0x1] }
  0xdc   : > { %v1768_v38 = vshrl.u32 %v5576_v19, 16  ;;  %v5601_v43 = vpop.permute.xlu0 %2745  ;;  %v2991_v23 = vsel %vm2989_vm12, %v2958_v51, %v5474_v36  ;;  %v1771_v40 = vshll.u32 %v5576_v19, 16  ;;  %v5615_v2 = vsel %vm2989_vm12, %v2976_v8, %v5489_v57 }
  0xdd   : > { %2511 = vrot.lane.b32.xlu1 %v4038_v37, %s4545_s24  ;;  %v1353_v24 = vsel %vm4624_vm2, %v3855_v20, %v1352_v35  ;;  %v1354_v22 = vrot.slane %v1352_v35, 4  ;;  %v1412_v11 = vsel %vm4624_vm2, %v1410_v1, %v1411_v6  ;;  %v5619_v36 = vsel %vm2989_vm12, %v2960_v3, %v5502_v63  ;;  %v5633_v63 = vld [vmem:[%s4593_s19 + $0x4c] sm:$0xf] }
  0xde   : > { %2495 = vrot.lane.b32.xlu0 %v4030_v55, %s4545_s24  ;;  %v1576_v34 = vshrl.u32 %v5593_v5, 16  ;;  %v4039_v44 = vcombine.low %v1409_v47, %v1412_v11  ;;  %v1781_v48 = vshrl.u32 %v5598_v25, 16  ;;  %v1579_v0 = vshll.u32 %v5593_v5, 16 }
  0xdf   : > { %v1356_v57 = vsel %vm4624_vm2, %v1354_v22, %v1355_v52  ;;  %v1770_v13 = vrot.slane %v1768_v38, 4  ;;  %v1773_v15 = vrot.slane %v1771_v40, 5  ;;  %v4054_v59 = vcombine.low %v5576_v19, %v5598_v25  ;;  %v5688_v52 = vld [vmem:[%s4593_s19 + $0x50] sm:$0x1] }
  0xe0   : > { %v4031_v56 = vcombine.low %v1353_v24, %v1356_v57  ;;  %v1578_v27 = vrot.slane %v1576_v34, 4  ;;  %v3117_v17 = vsel %vm3115_vm13, %v4331_v29, 0  ;;  %v1792_v33 = vshrl.u32 %v5627_v28, 16 }
  0xe1   : > { %v5639_v46 = vpop.permute.xlu1 %2173  ;;  %2513 = vrot.lane.b32.xlu1 %v4039_v44, %s4545_s24  ;;  %v1795_v60 = vshll.u32 %v5627_v28, 16  ;;  %v1581_v14 = vrot.slane %v1579_v0, 5  ;;  %v1589_v12 = vshrl.u32 %v5633_v63, 16  ;;  %v4046_v58 = vcombine.low %v5593_v5, %v5633_v63  ;;  %4229 = vmatpush3.bf16.msra.mxu0 %v3117_v17 }
  0xe2   : > { %2497 = vrot.lane.b32.xlu0 %v4031_v56, %s4545_s24  ;;  %v1600_v41 = vshrl.u32 %v5637_v7, 16  ;;  %4269 = vmatpush3.bf16.msra.mxu1 %v3117_v17  ;;  %v1794_v45 = vrot.slane %v1792_v33, 4  ;;  %v1805_v53 = vshrl.u32 %v5644_v10, 16  ;;  %v4055_v39 = vcombine.low %v5627_v28, %v5644_v10 }
  0xe3   : > { %4230 = vmatprep.subr.bf16.mxu0 %v4334_v26  ;;  %v1603_v18 = vshll.u32 %v5637_v7, 16  ;;  %4267 = vmatprep.subr.bf16.mxu1 %v4334_v26  ;;  %v1797_v8 = vrot.slane %v1795_v60, 5  ;;  %v1613_v37 = vshrl.u32 %v5651_v61, 16  ;;  %v4047_v19 = vcombine.low %v5637_v7, %v5651_v61 }
  0xe4   : > { %v5658_v16 = vpop.permute.xlu0 %2157  ;;  %v5674_v29 = vrot.slane %v1600_v41, 4  ;;  %v3024_v55 = vsel %vm3022_vm14, %v2991_v23, %v5527_v9  ;;  %v3040_v42 = vsel %vm3022_vm14, %v5588_v54, %v5517_v4  ;;  %v1774_v6 = vor.u32 %v1773_v15, %v1770_v13  ;;  %v4494_v9 = vld [vmem:[%s4593_s19 + $0x78] sm:$0xf]  ;;  %v4495_v4 = vld [vmem:[%s4593_s19 + $0x7c] sm:$0xf] }
  0xe5   : > { %v5667_v51 = vpop.permute.xlu1 %2251  ;;  %2607 = vrot.lane.b32.xlu1 %v4054_v59, %s4546_s25  ;;  %4234 = vmatprep.mubr.msk.bf16.mxu0 %vm3082_vm15, %v3024_v55  ;;  %v1777_v20 = vshll.u32 %v5598_v25, 16  ;;  %v1783_v3 = vrot.slane %v1781_v48, 4  ;;  %v1787_v35 = vshll.u32 %v5665_v62, 16  ;;  %v1605_v47 = vrot.slane %v1603_v18, 5  ;;  %v5704_v48 = vld [vmem:[%s4593_s19 + $0xbc] sm:$0x1] }
  0xe6   : > { %2591 = vrot.lane.b32.xlu0 %v4046_v58, %s4546_s25  ;;  %4250 = vmatprep.mubr.msk.bf16.mxu1 %vm3082_vm15, %v3040_v42  ;;  %v3956_v54 = vcombine.low %v4494_v9, %v4495_v4  ;;  %v1582_v1 = vor.u32 %v1581_v14, %v1578_v27  ;;  %v1585_v38 = vshll.u32 %v5633_v63, 16  ;;  %v1775_v24 = vrot.slane %v1774_v6, 4  ;;  %v5718_v27 = vld [vmem:[%s4593_s19 + $0x5c] sm:$0x1]  ;;  %v3918_v9 = vld [vmem:[%s4593_s19 + $0x48] sm:$0xe] }
  0xe7   : > { %4231 = vmatpush3.bf16.msra.mxu0 %v4334_v26  ;;  %4270 = vmatpush3.bf16.msra.mxu1 %v4334_v26  ;;  %v1779_v22 = vrot.slane %v1777_v20, 5  ;;  %v1789_v40 = vrot.slane %v1787_v35, 5  ;;  %v1591_v11 = vrot.slane %v1589_v12, 4  ;;  %v1595_v44 = vshll.u32 %v5688_v52, 16 }
  0xe8   : > { %v5690_v5 = vpop.permute.xlu0 %2235  ;;  %4232 = vmatprep.subr.bf16.mxu0 %v4339_v49  ;;  %4268 = vmatprep.subr.bf16.mxu1 %v4339_v49  ;;  %v1583_v34 = vrot.slane %v1582_v1, 4  ;;  %v1587_v28 = vrot.slane %v1585_v38, 5  ;;  %v3042_v57 = vsel %vm3022_vm14, %v5615_v2, %v5578_v32  ;;  %v3026_v7 = vsel %vm3022_vm14, %v5619_v36, %v5601_v43 }
  0xe9   : > { %v5696_v23 = vpop.permute.xlu1 %2253  ;;  %2609 = vrot.lane.b32.xlu1 %v4055_v39, %s4546_s25  ;;  %v1780_v26 = vsel %vm4682_vm5, %v1775_v24, %v1779_v22  ;;  %v1784_v0 = vor.u32 %v1783_v3, %v1779_v22  ;;  %v1798_v56 = vor.u32 %v1797_v8, %v1794_v45  ;;  %v1597_v2 = vrot.slane %v1595_v44, 5  ;;  %v4496_v45 = vld [vmem:[%s4593_s19 + $0x18] sm:$0xf]  ;;  %v4497_v39 = vld [vmem:[%s4593_s19 + $0x1c] sm:$0xf] }
  0xea   : > { %2593 = vrot.lane.b32.xlu0 %v4047_v19, %s4546_s25  ;;  %v1588_v15 = vsel %vm4682_vm5, %v1583_v34, %v1587_v28  ;;  %v1592_v32 = vor.u32 %v1591_v11, %v1587_v28  ;;  %v1801_v59 = vshll.u32 %v5644_v10, 16  ;;  %v1807_v36 = vrot.slane %v1805_v53, 4  ;;  %v3926_v19 = vld [vmem:[%s4593_s19 + $0xa8] sm:$0xe] }
  0xeb   : > { %4233 = vmatpush3.bf16.msra.mxu0 %v4339_v49  ;;  %v1785_v33 = vrot.slane %v1784_v0, 4  ;;  %4271 = vmatpush3.bf16.msra.mxu1 %v4339_v49  ;;  %v1799_v43 = vrot.slane %v1798_v56, 4  ;;  %v1811_v60 = vshll.u32 %v5704_v48, 16  ;;  %v1606_v58 = vor.u32 %v1605_v47, %v5674_v29 }
  0xec   : > { %v5712_v13 = vpop.permute.xlu0 %2237  ;;  %v1593_v14 = vrot.slane %v1592_v32, 4  ;;  %v1803_v12 = vrot.slane %v1801_v59, 5  ;;  %v1609_v41 = vshll.u32 %v5651_v61, 16  ;;  %v3948_v18 = vcombine.low %v4496_v45, %v4497_v39  ;;  %v4501_v59 = vld [vmem:[%s4593_s19 + $0x28] sm:$0xf] }
  0xed   : > { %v5720_v17 = vpop.permute.xlu1 %2347  ;;  %v1790_v8 = vsel %vm4682_vm5, %v1785_v33, %v1789_v40  ;;  %v1615_v49 = vrot.slane %v1613_v37, 4  ;;  %v1619_v53 = vshll.u32 %v5718_v27, 16  ;;  %v1813_v20 = vrot.slane %v1811_v60, 5  ;;  %v5774_v60 = vld [vmem:[%s4593_s19 + $0xac] sm:$0xf] }
  0xee   : > { %4235 = vmatmul.mubr.msk.bf16.vlgmr.msra.gmra.mxu0 %vm3082_vm15, %v3026_v7  ;;  %v4070_v29 = vcombine.low %v1780_v26, %v1790_v8  ;;  %v1598_v42 = vsel %vm4682_vm5, %v1593_v14, %v1597_v2  ;;  %v1808_v6 = vor.u32 %v1807_v36, %v1803_v12  ;;  %4251 = vmatmul.mubr.msk.bf16.vlgmr.msra.gmra.mxu1 %vm3082_vm15, %v3042_v57  ;;  %v1607_v47 = vrot.slane %v1606_v58, 4  ;;  %v229_v26 = vld [vmem:[%s4593_s19 + $0xa8] sm:$0xf]  ;;  %v4500_v2 = vld [vmem:[%s4593_s19 + $0x24] sm:$0xf] }
  0xef   : > { %v4062_v35 = vcombine.low %v1588_v15, %v1598_v42  ;;  %v1611_v37 = vrot.slane %v1609_v41, 5  ;;  %v5744_v4 = vsel %vm2775_vm6, %v3956_v54, %v5542_v31  ;;  %v1804_v1 = vsel %vm4682_vm5, %v1799_v43, %v1803_v12  ;;  %v4499_v15 = vld [vmem:[%s4593_s19 + $0x88] sm:$0xf]  ;;  %v5782_v58 = vld [vmem:[%s4593_s19 + $0xb0] sm:$0x1] }
  0xf0   : > { %v5734_v55 = vpop.permute.xlu0 %2331  ;;  %2687 = vrot.lane.b32.xlu1 %v4070_v29, %s4547_s26  ;;  %v1809_v38 = vrot.slane %v1808_v6, 4  ;;  %v3942_v24 = vrot.slane %v3926_v19, 9  ;;  %v1621_v40 = vrot.slane %v1619_v53, 5  ;;  %v2013_v11 = vrot.slane %v5598_v25, 5  ;;  %v213_v39 = vld [vmem:[%s4593_s19 + $0x48] sm:$0xf] }
  0xf1   : > { %v5739_v3 = vpop.permute.xlu1 %2349  ;;  %2671 = vrot.lane.b32.xlu0 %v4062_v35, %s4547_s26  ;;  %v1616_v22 = vor.u32 %v1615_v49, %v1611_v37  ;;  %v2016_v34 = vrot.slane %v5665_v62, 5  ;;  %v5756_v54 = vsel %vm2775_vm6, %v3948_v18, %v5554_v50  ;;  %v1612_v44 = vsel %vm4682_vm5, %v1607_v47, %v1611_v37  ;;  %v4498_v50 = vld [vmem:[%s4593_s19 + $0x84] sm:$0xf]  ;;  %v5792_v6 = vld [vmem:[%s4593_s19 + $0x4c] sm:$0xf] }
  0xf2   : > { %v1814_v28 = vsel %vm4682_vm5, %v1809_v38, %v1813_v20  ;;  %v3934_v57 = vrot.slane %v3918_v9, 9  ;;  %v2014_v62 = vsel %vm4624_vm2, %v3942_v24, %v2013_v11  ;;  %v2015_v7 = vrot.slane %v2013_v11, 4  ;;  %v5805_v9 = vld [vmem:[%s4593_s19 + $0x50] sm:$0x1] }
  0xf3   : > { %v4071_v25 = vcombine.low %v1804_v1, %v1814_v28  ;;  %v1617_v0 = vrot.slane %v1616_v22, 4  ;;  %v3957_v32 = vcombine.low %v4498_v50, %v4499_v15  ;;  %v3949_v33 = vcombine.low %v4500_v2, %v4501_v59  ;;  %v3919_v59 = vld [vmem:[%s4593_s19 + $0x54] sm:$0xe] }
  0xf4   : > { %v5752_v31 = vpop.permute.xlu0 %2333  ;;  %v1957_v43 = vrot.slane %v5633_v63, 5  ;;  %v1960_v36 = vrot.slane %v5688_v52, 5  ;;  %v2017_v12 = vsel %vm4624_vm2, %v2015_v7, %v2016_v34  ;;  %v589_v41 = vshrl.u32 %v229_v26, 16 }
  0xf5   : > { %2689 = vrot.lane.b32.xlu1 %v4071_v25, %s4547_s26  ;;  %v1622_v14 = vsel %vm4682_vm5, %v1617_v0, %v1621_v40  ;;  %v592_v45 = vshll.u32 %v229_v26, 16  ;;  %v4086_v18 = vcombine.low %v2014_v62, %v2017_v12  ;;  %v598_v29 = vshll.u32 %v5774_v60, 16  ;;  %v3927_v62 = vld [vmem:[%s4593_s19 + $0xb4] sm:$0xe] }
  0xf6   : > { %v5765_v56 = vpop.permute.xlu1 %2427  ;;  %v4063_v52 = vcombine.low %v1612_v44, %v1622_v14  ;;  %v1958_v8 = vsel %vm4624_vm2, %v3934_v57, %v1957_v43  ;;  %v1959_v49 = vrot.slane %v1957_v43, 4  ;;  %v591_v53 = vrot.slane %v589_v41, 4 }
  0xf7   : > { %v594_v19 = vrot.slane %v592_v45, 5  ;;  %v602_v42 = vshrl.u32 %v5774_v60, 16  ;;  %v5799_v35 = vsel %vm2775_vm6, %v3957_v32, %v5639_v46  ;;  %v608_v37 = vshll.u32 %v5782_v58, 16 }
  0xf8   : > { %v5785_v63 = vpop.permute.xlu0 %2411  ;;  %2673 = vrot.lane.b32.xlu0 %v4063_v52, %s4547_s26  ;;  %v1961_v47 = vsel %vm4624_vm2, %v1959_v49, %v1960_v36  ;;  %v397_v1 = vshrl.u32 %v213_v39, 16  ;;  %v600_v22 = vrot.slane %v598_v29, 5  ;;  %v400_v28 = vshll.u32 %v213_v39, 16  ;;  %v231_v52 = vld [vmem:[%s4593_s19 + $0xb4] sm:$0xf] }
  0xf9   : > { %2767 = vrot.lane.b32.xlu1 %v4086_v18, %s4548_s27  ;;  %v4078_v38 = vcombine.low %v1958_v8, %v1961_v47  ;;  %v595_v24 = vor.u32 %v594_v19, %v591_v53  ;;  %v604_v40 = vrot.slane %v602_v42, 4  ;;  %v610_v46 = vrot.slane %v608_v37, 5 }
  0xfa   : > { %v5794_v20 = vpop.permute.xlu1 %2429  ;;  %v399_v34 = vrot.slane %v397_v1, 4  ;;  %v406_v44 = vshll.u32 %v5792_v6, 16  ;;  %v410_v25 = vshrl.u32 %v5792_v6, 16  ;;  %v416_v0 = vshll.u32 %v5805_v9, 16 }
  0xfb   : > { %v596_v57 = vrot.slane %v595_v24, 4  ;;  %v605_v26 = vor.u32 %v604_v40, %v600_v22  ;;  %v5818_v50 = vsel %vm2775_vm6, %v3949_v33, %v5658_v16  ;;  %v5824_v15 = vsel %vm2824_vm7, %v5744_v4, %v5667_v51 }
  0xfc   : > { %v5808_v11 = vpop.permute.xlu0 %2413  ;;  %2751 = vrot.lane.b32.xlu0 %v4078_v38, %s4548_s27  ;;  %v402_v32 = vrot.slane %v400_v28, 5  ;;  %v408_v2 = vrot.slane %v406_v44, 5  ;;  %v5830_v43 = vsel %vm2824_vm7, %v5756_v54, %v5690_v5  ;;  %v412_v36 = vrot.slane %v410_v25, 4 }
  0xfd   : > { %v601_v16 = vsel %vm4682_vm5, %v596_v57, %v600_v22  ;;  %v606_v33 = vrot.slane %v605_v26, 4  ;;  %v418_v41 = vrot.slane %v416_v0, 5  ;;  %v3943_v51 = vrot.slane %v3927_v62, 9  ;;  %v5860_v22 = vld [vmem:[%s4593_s19 + $0xbc] sm:$0x1] }
  0xfe   : > { %v5814_v7 = vpop.permute.xlu1 %2507  ;;  %v403_v12 = vor.u32 %v402_v32, %v399_v34  ;;  %v2020_v4 = vrot.slane %v5644_v10, 5  ;;  %v413_v39 = vor.u32 %v412_v36, %v408_v2  ;;  %v2023_v5 = vrot.slane %v5704_v48, 5  ;;  %v5849_v48 = vld [vmem:[%s4593_s19 + $0xb8] sm:$0xf] }
  0xff   : > { %v611_v45 = vsel %vm4682_vm5, %v606_v33, %v610_v46  ;;  %v3935_v54 = vrot.slane %v3919_v59, 9  ;;  %v806_v10 = vrot.slane %v5782_v58, 5  ;;  %v1964_v42 = vrot.slane %v5651_v61, 5  ;;  %v5871_v62 = vld [vmem:[%s4593_s19 + $0x58] sm:$0xf] }
 0x100   : > { %v5834_v14 = vpop.permute.xlu0 %2491  ;;  %v3976_v8 = vcombine.low %v601_v16, %v611_v45  ;;  %v404_v49 = vrot.slane %v403_v12, 4  ;;  %v2021_v53 = vsel %vm4624_vm2, %v3943_v51, %v2020_v4  ;;  %v2022_v19 = vrot.slane %v2020_v4, 4  ;;  %v5878_v16 = vld [vmem:[%s4593_s19 + $0x5c] sm:$0x1] }
 0x101   : > { %v414_v29 = vrot.slane %v413_v39, 4  ;;  %v1967_v47 = vrot.slane %v5718_v27, 5  ;;  %v750_v38 = vrot.slane %v5805_v9, 5  ;;  %v613_v61 = vshrl.u32 %v231_v52, 16  ;;  %v215_v27 = vld [vmem:[%s4593_s19 + $0x54] sm:$0xf] }
 0x102   : > { %v5841_v18 = vpop.permute.xlu1 %2509  ;;  %2179 = vrot.lane.b32.xlu1 %v3976_v8, %s4543_s22  ;;  %v409_v1 = vsel %vm4682_vm5, %v404_v49, %v408_v2  ;;  %v2024_v24 = vsel %vm4624_vm2, %v2022_v19, %v2023_v5  ;;  %v1965_v34 = vsel %vm4624_vm2, %v3935_v54, %v1964_v42  ;;  %v1966_v28 = vrot.slane %v1964_v42, 4  ;;  %v642_v42 = vld [vmem:[%s4593_s19 + $0x48] sm:$0xe] }
 0x103   : > { %v419_v40 = vsel %vm4682_vm5, %v414_v29, %v418_v41  ;;  %v4087_v46 = vcombine.low %v2021_v53, %v2024_v24  ;;  %v615_v26 = vrot.slane %v613_v61, 4  ;;  %v616_v25 = vshll.u32 %v231_v52, 16  ;;  %v650_v52 = vld [vmem:[%s4593_s19 + $0xa8] sm:$0xe] }
 0x104   : > { %v5851_v37 = vpop.permute.xlu0 %2493  ;;  %v3968_v57 = vcombine.low %v409_v1, %v419_v40  ;;  %v622_v0 = vshll.u32 %v5849_v48, 16  ;;  %v1968_v32 = vsel %vm4624_vm2, %v1966_v28, %v1967_v47  ;;  %v626_v2 = vshrl.u32 %v5849_v48, 16 }
 0x105   : > { %v632_v59 = vshll.u32 %v5860_v22, 16  ;;  %v421_v33 = vshrl.u32 %v215_v27, 16  ;;  %v4079_v12 = vcombine.low %v1965_v34, %v1968_v32  ;;  %v618_v41 = vrot.slane %v616_v25, 5  ;;  %v651_v32 = vld [vmem:[%s4593_s19 + $0xb4] sm:$0xe] }
 0x106   : > { %v5867_v44 = vpop.permute.xlu1 %2603  ;;  %2163 = vrot.lane.b32.xlu0 %v3968_v57, %s4543_s22  ;;  %2769 = vrot.lane.b32.xlu1 %v4087_v46, %s4548_s27  ;;  %v624_v51 = vrot.slane %v622_v0, 5  ;;  %v424_v4 = vshll.u32 %v215_v27, 16  ;;  %v2848_v45 = vsel %vm2824_vm7, %v5799_v35, %v5696_v23  ;;  %v628_v39 = vrot.slane %v626_v2, 4 }
 0x107   : > { %v423_v5 = vrot.slane %v421_v33, 4  ;;  %v430_v54 = vshll.u32 %v5871_v62, 16  ;;  %v619_v49 = vor.u32 %v618_v41, %v615_v26  ;;  %v434_v19 = vshrl.u32 %v5871_v62, 16 }
 0x108   : > { %v5880_v36 = vpop.permute.xlu0 %2587  ;;  %v426_v53 = vrot.slane %v424_v4, 5  ;;  %v440_v29 = vshll.u32 %v5878_v16, 16  ;;  %v2832_v47 = vsel %vm2824_vm7, %v5818_v50, %v5712_v13  ;;  %v629_v1 = vor.u32 %v628_v39, %v624_v51 }
 0x109   : > { %v634_v23 = vrot.slane %v632_v59, 5  ;;  %v432_v35 = vrot.slane %v430_v54, 5  ;;  %v620_v24 = vrot.slane %v619_v49, 4  ;;  %v436_v27 = vrot.slane %v434_v19, 4 }
 0x10a   : > { %v5889_v8 = vpop.permute.xlu1 %2605  ;;  %2753 = vrot.lane.b32.xlu0 %v4079_v12, %s4548_s27  ;;  %v427_v61 = vor.u32 %v426_v53, %v423_v5  ;;  %v442_v40 = vrot.slane %v440_v29, 5  ;;  %v630_v34 = vrot.slane %v629_v1, 4  ;;  %v3784_v28 = vrot.slane %v650_v52, 9 }
 0x10b   : > { %v803_v57 = vrot.slane %v5774_v60, 5  ;;  %v3776_v26 = vrot.slane %v642_v42, 9  ;;  %v625_v13 = vsel %vm4682_vm5, %v620_v24, %v624_v51  ;;  %v437_v25 = vor.u32 %v436_v27, %v432_v35  ;;  %v3814_v42 = vld [vmem:[%s4593_s19 + $0xb4] sm:$0xf] }
 0x10c   : > { %v5898_v46 = vpop.permute.xlu0 %2589  ;;  %v428_v50 = vrot.slane %v427_v61, 4  ;;  %v747_v0 = vrot.slane %v5792_v6, 5  ;;  %v2879_v2 = vsel %vm2857_vm8, %v5824_v15, %v5720_v17  ;;  %v635_v59 = vsel %vm4682_vm5, %v630_v34, %v634_v23  ;;  %v643_v17 = vld [vmem:[%s4593_s19 + $0x54] sm:$0xe] }
 0x10d   : > { %v804_v60 = vsel %vm4624_vm2, %v3784_v28, %v803_v57  ;;  %v805_v33 = vrot.slane %v803_v57, 4  ;;  %v2863_v41 = vsel %vm2857_vm8, %v5830_v43, %v5734_v55  ;;  %v3977_v51 = vcombine.low %v625_v13, %v635_v59  ;;  %v5967_v28 = vld [vmem:[%s4593_s19 + $0x58] sm:$0xf] }
 0x10e   : > { %v433_v6 = vsel %vm4682_vm5, %v428_v50, %v432_v35  ;;  %v438_v4 = vrot.slane %v437_v25, 4  ;;  %v748_v39 = vsel %vm4624_vm2, %v3776_v26, %v747_v0  ;;  %v749_v5 = vrot.slane %v747_v0, 4  ;;  %v5945_v35 = vld [vmem:[%s4593_s19 + $0x54] sm:$0xf]  ;;  %v3816_v26 = vld [vmem:[%s4593_s19 + $0xc0] sm:$0xf] }
 0x10f   : > { %v5912_v12 = vpop.permute.xlu1 %2683  ;;  %v807_v15 = vsel %vm4624_vm2, %v805_v33, %v806_v10  ;;  %v3785_v54 = vrot.slane %v651_v32, 9  ;;  %2181 = vrot.lane.b32.xlu1 %v3977_v51, %s4543_s22  ;;  %v810_v52 = vrot.slane %v5849_v48, 5  ;;  %v813_v49 = vrot.slane %v5860_v22, 5  ;;  %v3800_v33 = vld [vmem:[%s4593_s19 + $0x60] sm:$0xf] }
 0x110   : > { %v443_v55 = vsel %vm4682_vm5, %v438_v4, %v442_v40  ;;  %v3992_v43 = vcombine.low %v804_v60, %v807_v15  ;;  %v5931_v58 = vpop.permute.xlu0 %2667  ;;  %v751_v53 = vsel %vm4624_vm2, %v749_v5, %v750_v38  ;;  %v3777_v19 = vrot.slane %v643_v17, 9  ;;  %v5990_v4 = vld [vmem:[%s4593_s19 + $0x64] sm:$0xf] }
 0x111   : > { %v3969_v10 = vcombine.low %v433_v6, %v443_v55  ;;  %v754_v29 = vrot.slane %v5871_v62, 5  ;;  %v2881_v1 = vsel %vm2857_vm8, %v2848_v45, %v5739_v3  ;;  %v811_v48 = vsel %vm4624_vm2, %v3785_v54, %v810_v52  ;;  %v5953_v45 = vld [vmem:[%s4593_s19 + $0xb8] sm:$0xf]  ;;  %v6003_v54 = vld [vmem:[%s4593_s19 + $0xbc] sm:$0x1] }
 0x112   : > { %v812_v22 = vrot.slane %v810_v52, 4  ;;  %v757_v23 = vrot.slane %v5878_v16, 5  ;;  %v2865_v9 = vsel %vm2857_vm8, %v2832_v47, %v5752_v31  ;;  %v3984_v38 = vcombine.low %v748_v39, %v751_v53  ;;  %v6010_v53 = vld [vmem:[%s4593_s19 + $0x5c] sm:$0x1] }
 0x113   : > { %2165 = vrot.lane.b32.xlu0 %v3969_v10, %s4543_s22  ;;  %v2912_v24 = vsel %vm2890_vm9, %v2879_v2, %v5765_v56  ;;  %v756_v3 = vrot.slane %v754_v29, 4  ;;  %v5955_v61 = vpop.permute.xlu1 %2685  ;;  %2259 = vrot.lane.b32.xlu1 %v3992_v43, %s4542_s21  ;;  %v755_v27 = vsel %vm4624_vm2, %v3777_v19, %v754_v29  ;;  %v1204_v40 = vshrl.u32 %v3814_v42, 16 }
 0x114   : > { %v814_v16 = vsel %vm4624_vm2, %v812_v22, %v813_v49  ;;  %v1207_v31 = vshll.u32 %v3814_v42, 16  ;;  %v2896_v47 = vsel %vm2890_vm9, %v2863_v41, %v5785_v63  ;;  %v1012_v57 = vshrl.u32 %v5945_v35, 16 }
 0x115   : > { %v3993_v56 = vcombine.low %v811_v48, %v814_v16  ;;  %v758_v34 = vsel %vm4624_vm2, %v756_v3, %v757_v23  ;;  %v2914_v13 = vsel %vm2890_vm9, %v2881_v1, %v5794_v20  ;;  %v5975_v50 = vsel %vm2890_vm9, %v2865_v9, %v5808_v11  ;;  %v5979_v0 = vpop.permute.xlu0 %2669  ;;  %v5984_v20 = vld [vmem:[%s4593_s19 + $0xc4] sm:$0xf] }
 0x116   : > { %v1217_v63 = vshrl.u32 %v5953_v45, 16  ;;  %v1015_v25 = vshll.u32 %v5945_v35, 16  ;;  %v3985_v32 = vcombine.low %v755_v27, %v758_v34  ;;  %v1206_v2 = vrot.slane %v1204_v40, 4 }
 0x117   : > { %2243 = vrot.lane.b32.xlu0 %v3984_v38, %s4542_s21  ;;  %v1209_v59 = vrot.slane %v1207_v31, 5  ;;  %v4008_v60 = vcombine.low %v3814_v42, %v5953_v45  ;;  %2261 = vrot.lane.b32.xlu1 %v3993_v56, %s4542_s21  ;;  %v1014_v11 = vrot.slane %v1012_v57, 4  ;;  %v1025_v41 = vshrl.u32 %v5967_v28, 16  ;;  %v6005_v55 = vpop.permute.xlu1 %2763  ;;  %v6023_v31 = vld [vmem:[%s4593_s19 + $0xc8] sm:$0x1] }
 0x118   : > { %v1228_v51 = vshrl.u32 %v3816_v26, 16  ;;  %v1231_v6 = vshll.u32 %v3816_v26, 16  ;;  %v1017_v17 = vrot.slane %v1015_v25, 5  ;;  %v4000_v15 = vcombine.low %v5945_v35, %v5967_v28 }
 0x119   : > { %v5996_v39 = vsel %vm2923_vm10, %v2912_v24, %v5814_v7  ;;  %v6000_v5 = vsel %vm2923_vm10, %v2896_v47, %v5834_v14  ;;  %v1241_v43 = vshrl.u32 %v5984_v20, 16  ;;  %v4009_v52 = vcombine.low %v3816_v26, %v5984_v20  ;;  %v6018_v23 = vpop.permute.xlu0 %2747 }
 0x11a   : > { %v1036_v49 = vshrl.u32 %v3800_v33, 16  ;;  %v1039_v10 = vshll.u32 %v3800_v33, 16  ;;  %v1230_v7 = vrot.slane %v1228_v51, 4  ;;  %v1233_v19 = vrot.slane %v1231_v6, 5  ;;  %v6038_v51 = vld [vmem:[%s4593_s19 + $0x68] sm:$0x1] }
 0x11b   : > { %2245 = vrot.lane.b32.xlu0 %v3985_v32, %s4542_s21  ;;  %v1049_v29 = vshrl.u32 %v5990_v4, 16  ;;  %v4001_v14 = vcombine.low %v3800_v33, %v5990_v4  ;;  %2355 = vrot.lane.b32.xlu1 %v4008_v60, %s4541_s20  ;;  %v1210_v42 = vor.u32 %v1209_v59, %v1206_v2  ;;  %v1213_v1 = vshll.u32 %v5953_v45, 16 }
 0x11c   : > { %v1219_v48 = vrot.slane %v1217_v63, 4  ;;  %v1223_v22 = vshll.u32 %v6003_v54, 16  ;;  %v1018_v35 = vor.u32 %v1017_v17, %v1014_v11  ;;  %v1021_v9 = vshll.u32 %v5967_v28, 16 }
 0x11d   : > { %v1027_v38 = vrot.slane %v1025_v41, 4  ;;  %v1031_v24 = vshll.u32 %v6010_v53, 16  ;;  %v1038_v3 = vrot.slane %v1036_v49, 4  ;;  %v1041_v16 = vrot.slane %v1039_v10, 5 }
 0x11e   : > { %v1211_v27 = vrot.slane %v1210_v42, 4  ;;  %v1215_v40 = vrot.slane %v1213_v1, 5  ;;  %v6028_v47 = vsel %vm2923_vm10, %v2914_v13, %v5841_v18  ;;  %v1225_v56 = vrot.slane %v1223_v22, 5  ;;  %v3848_v1 = vld [vmem:[%s4593_s19 + $0xb4] sm:$0xe] }
 0x11f   : > { %2339 = vrot.lane.b32.xlu0 %v4000_v15, %s4541_s20  ;;  %v1019_v34 = vrot.slane %v1018_v35, 4  ;;  %v1023_v57 = vrot.slane %v1021_v9, 5  ;;  %v6030_v26 = vpop.permute.xlu1 %2175  ;;  %2357 = vrot.lane.b32.xlu1 %v4009_v52, %s4541_s20  ;;  %v1033_v25 = vrot.slane %v1031_v24, 5  ;;  %v1234_v32 = vor.u32 %v1233_v19, %v1230_v7  ;;  %v3840_v9 = vld [vmem:[%s4593_s19 + $0x54] sm:$0xe] }
 0x120   : > { %v1220_v63 = vor.u32 %v1219_v48, %v1215_v40  ;;  %v1237_v2 = vshll.u32 %v5984_v20, 16  ;;  %v1216_v59 = vsel %vm4682_vm5, %v1211_v27, %v1215_v40  ;;  %v1243_v33 = vrot.slane %v1241_v43, 4 }
 0x121   : > { %v1028_v60 = vor.u32 %v1027_v38, %v1023_v57  ;;  %v1247_v18 = vshll.u32 %v6023_v31, 16  ;;  %v1235_v11 = vrot.slane %v1234_v32, 4  ;;  %v1042_v6 = vor.u32 %v1041_v16, %v1038_v3 }
 0x122   : > { %v1221_v13 = vrot.slane %v1220_v63, 4  ;;  %v1239_v41 = vrot.slane %v1237_v2, 5  ;;  %v6040_v17 = vpop.permute.xlu0 %2159  ;;  %v1024_v15 = vsel %vm4682_vm5, %v1019_v34, %v1023_v57  ;;  %v1045_v43 = vshll.u32 %v5990_v4, 16 }
 0x123   : > { %2341 = vrot.lane.b32.xlu0 %v4001_v14, %s4541_s20  ;;  %v1029_v52 = vrot.slane %v1028_v60, 4  ;;  %v1051_v49 = vrot.slane %v1049_v29, 4  ;;  %v1249_v19 = vrot.slane %v1247_v18, 5  ;;  %v1043_v42 = vrot.slane %v1042_v6, 4  ;;  %v6053_v38 = vpop.permute.xlu1 %2765 }
 0x124   : > { %v1226_v10 = vsel %vm4682_vm5, %v1221_v13, %v1225_v56  ;;  %v1244_v7 = vor.u32 %v1243_v33, %v1239_v41  ;;  %v1047_v35 = vrot.slane %v1045_v43, 5  ;;  %v1055_v14 = vshll.u32 %v6038_v51, 16 }
 0x125   : > { %v4024_v48 = vcombine.low %v1216_v59, %v1226_v10  ;;  %v1034_v22 = vsel %vm4682_vm5, %v1029_v52, %v1033_v25  ;;  %v2931_v29 = vsel %vm2923_vm10, %v5975_v50, %v5851_v37  ;;  %v1240_v3 = vsel %vm4682_vm5, %v1235_v11, %v1239_v41  ;;  %v3849_v25 = vld [vmem:[%s4593_s19 + $0xc0] sm:$0xe] }
 0x126   : > { %v4016_v24 = vcombine.low %v1024_v15, %v1034_v22  ;;  %v1245_v16 = vrot.slane %v1244_v7, 4  ;;  %v1048_v27 = vsel %vm4682_vm5, %v1043_v42, %v1047_v35  ;;  %v1052_v40 = vor.u32 %v1051_v49, %v1047_v35  ;;  %v6069_v32 = vpop.permute.xlu0 %2749  ;;  %v3841_v11 = vld [vmem:[%s4593_s19 + $0x60] sm:$0xe] }
 0x127   : > { %2435 = vrot.lane.b32.xlu1 %v4024_v48, %s4544_s23  ;;  %v1057_v56 = vrot.slane %v1055_v14, 5  ;;  %v3864_v34 = vrot.slane %v3848_v1, 9  ;;  %v1415_v37 = vrot.slane %v5953_v45, 5  ;;  %v1418_v50 = vrot.slane %v6003_v54, 5  ;;  %v3894_v7 = vld [vmem:[%s4593_s19 + $0xc0] sm:$0xf] }
 0x128   : > { %2419 = vrot.lane.b32.xlu0 %v4016_v24, %s4544_s23  ;;  %v1250_v57 = vsel %vm4682_vm5, %v1245_v16, %v1249_v19  ;;  %v3856_v63 = vrot.slane %v3840_v9, 9  ;;  %v1053_v59 = vrot.slane %v1052_v40, 4  ;;  %v1359_v60 = vrot.slane %v5967_v28, 5  ;;  %v6102_v48 = vld [vmem:[%s4593_s19 + $0x60] sm:$0xf] }
 0x129   : > { %v4025_v2 = vcombine.low %v1240_v3, %v1250_v57  ;;  %v1362_v33 = vrot.slane %v6010_v53, 5  ;;  %v2978_v18 = vsel %vm2956_vm11, %v5996_v39, %v5867_v44  ;;  %v2962_v45 = vsel %vm2956_vm11, %v6000_v5, %v5880_v36  ;;  %v6121_v3 = vld [vmem:[%s4593_s19 + $0xc4] sm:$0xf]  ;;  %v3896_v40 = vld [vmem:[%s4593_s19 + $0xcc] sm:$0xf] }
 0x12a   : > { %v1416_v54 = vsel %vm4624_vm2, %v3864_v34, %v1415_v37  ;;  %v1417_v13 = vrot.slane %v1415_v37, 4  ;;  %v1058_v28 = vsel %vm4682_vm5, %v1053_v59, %v1057_v56  ;;  %v1360_v53 = vsel %vm4624_vm2, %v3856_v63, %v1359_v60  ;;  %v6136_v57 = vld [vmem:[%s4593_s19 + $0x6c] sm:$0xf] }
 0x12b   : > { %2437 = vrot.lane.b32.xlu1 %v4025_v2, %s4544_s23  ;;  %v1361_v41 = vrot.slane %v1359_v60, 4  ;;  %v3865_v44 = vrot.slane %v3849_v25, 9  ;;  %v4017_v36 = vcombine.low %v1048_v27, %v1058_v28  ;;  %v1422_v6 = vrot.slane %v5984_v20, 5  ;;  %v6144_v2 = vld [vmem:[%s4593_s19 + $0x64] sm:$0xf] }
 0x12c   : > { %v1419_v5 = vsel %vm4624_vm2, %v1417_v13, %v1418_v50  ;;  %v1425_v15 = vrot.slane %v6023_v31, 5  ;;  %v3857_v49 = vrot.slane %v3841_v11, 9  ;;  %v1366_v10 = vrot.slane %v5990_v4, 5 }
 0x12d   : > { %v6087_v39 = vpop.permute.xlu1 %2177  ;;  %v4040_v52 = vcombine.low %v1416_v54, %v1419_v5  ;;  %v1363_v43 = vsel %vm4624_vm2, %v1361_v41, %v1362_v33  ;;  %2421 = vrot.lane.b32.xlu0 %v4017_v36, %s4544_s23  ;;  %v1423_v42 = vsel %vm4624_vm2, %v3865_v44, %v1422_v6  ;;  %v1424_v1 = vrot.slane %v1422_v6, 4 }
 0x12e   : > { %v4032_v19 = vcombine.low %v1360_v53, %v1363_v43  ;;  %v1369_v20 = vrot.slane %v6038_v51, 5  ;;  %v2980_v4 = vsel %vm2956_vm11, %v6028_v47, %v5889_v8  ;;  %v2964_v22 = vsel %vm2956_vm11, %v2931_v29, %v5898_v46 }
 0x12f   : > { %2515 = vrot.lane.b32.xlu1 %v4040_v52, %s4545_s24  ;;  %v1367_v35 = vsel %vm4624_vm2, %v3857_v49, %v1366_v10  ;;  %v1368_v14 = vrot.slane %v1366_v10, 4  ;;  %v3011_v51 = vsel %vm2989_vm12, %v2978_v18, %v5912_v12  ;;  %v1426_v24 = vsel %vm4624_vm2, %v1424_v1, %v1425_v15 }
 0x130   : > { %v6104_v31 = vpop.permute.xlu0 %2161  ;;  %v1816_v8 = vshrl.u32 %v3894_v7, 16  ;;  %v1819_v47 = vshll.u32 %v3894_v7, 16  ;;  %v2995_v46 = vsel %vm2989_vm12, %v2962_v45, %v5931_v58  ;;  %v4041_v29 = vcombine.low %v1423_v42, %v1426_v24  ;;  %v6155_v45 = vld [vmem:[%s4593_s19 + $0x70] sm:$0xf]  ;;  %v6180_v42 = vld [vmem:[%s4593_s19 + $0x68] sm:$0x1] }
 0x131   : > { %v6114_v9 = vpop.permute.xlu1 %2255  ;;  %v1370_v16 = vsel %vm4624_vm2, %v1368_v14, %v1369_v20  ;;  %v1624_v27 = vshrl.u32 %v6102_v48, 16  ;;  %2499 = vrot.lane.b32.xlu0 %v4032_v19, %s4545_s24  ;;  %v3013_v56 = vsel %vm2989_vm12, %v2980_v4, %v5955_v61  ;;  %v2997_v34 = vsel %vm2989_vm12, %v2964_v22, %v5979_v0  ;;  %v6149_v0 = vld [vmem:[%s4593_s19 + $0xd0] sm:$0xf] }
 0x132   : > { %v4033_v12 = vcombine.low %v1367_v35, %v1370_v16  ;;  %v1627_v58 = vshll.u32 %v6102_v48, 16  ;;  %v1818_v50 = vrot.slane %v1816_v8, 4  ;;  %v1829_v63 = vshrl.u32 %v6121_v3, 16 }
 0x133   : > { %2517 = vrot.lane.b32.xlu1 %v4041_v29, %s4545_s24  ;;  %v4056_v25 = vcombine.low %v3894_v7, %v6121_v3  ;;  %v3044_v61 = vsel %vm3022_vm14, %v3011_v51, %v6005_v55  ;;  %v1821_v59 = vrot.slane %v1819_v47, 5  ;;  %v3028_v60 = vsel %vm3022_vm14, %v2995_v46, %v6018_v23  ;;  %v6161_v55 = vld [vmem:[%s4593_s19 + $0xc8] sm:$0x1] }
 0x134   : > { %v6138_v37 = vpop.permute.xlu0 %2239  ;;  %v1840_v33 = vshrl.u32 %v3896_v40, 16  ;;  %v1843_v18 = vshll.u32 %v3896_v40, 16  ;;  %4254 = vmatprep.mubr.msk.bf16.mxu1 %vm3082_vm15, %v3044_v61  ;;  %v1626_v54 = vrot.slane %v1624_v27, 4  ;;  %v1629_v13 = vrot.slane %v1627_v58, 5  ;;  %4238 = vmatprep.mubr.msk.bf16.mxu0 %vm3082_vm15, %v3028_v60  ;;  %v6193_v27 = vld [vmem:[%s4593_s19 + $0xd4] sm:$0x1] }
 0x135   : > { %v1648_v11 = vshrl.u32 %v6136_v57, 16  ;;  %v1651_v28 = vshll.u32 %v6136_v57, 16  ;;  %2501 = vrot.lane.b32.xlu0 %v4033_v12, %s4545_s24  ;;  %v1637_v23 = vshrl.u32 %v6144_v2, 16  ;;  %v4048_v41 = vcombine.low %v6102_v48, %v6144_v2 }
 0x136   : > { %v6163_v53 = vpop.permute.xlu1 %2257  ;;  %v1853_v44 = vshrl.u32 %v6149_v0, 16  ;;  %v4057_v36 = vcombine.low %v3896_v40, %v6149_v0  ;;  %v1842_v6 = vrot.slane %v1840_v33, 4  ;;  %v1845_v15 = vrot.slane %v1843_v18, 5 }
 0x137   : > { %2611 = vrot.lane.b32.xlu1 %v4056_v25, %s4546_s25  ;;  %v1661_v52 = vshrl.u32 %v6155_v45, 16  ;;  %v4049_v43 = vcombine.low %v6136_v57, %v6155_v45  ;;  %v1822_v49 = vor.u32 %v1821_v59, %v1818_v50  ;;  %v1825_v10 = vshll.u32 %v6121_v3, 16 }
 0x138   : > { %v6171_v5 = vpop.permute.xlu0 %2241  ;;  %v1831_v7 = vrot.slane %v1829_v63, 4  ;;  %v1835_v19 = vshll.u32 %v6161_v55, 16  ;;  %v1650_v1 = vrot.slane %v1648_v11, 4  ;;  %v1653_v20 = vrot.slane %v1651_v28, 5 }
 0x139   : > { %v1630_v48 = vor.u32 %v1629_v13, %v1626_v54  ;;  %v1633_v4 = vshll.u32 %v6144_v2, 16  ;;  %2595 = vrot.lane.b32.xlu0 %v4048_v41, %s4546_s25  ;;  %v1823_v35 = vrot.slane %v1822_v49, 4  ;;  %v1827_v14 = vrot.slane %v1825_v10, 5 }
 0x13a   : > { %v6183_v22 = vpop.permute.xlu1 %2351  ;;  %v1837_v51 = vrot.slane %v1835_v19, 5  ;;  %v1639_v24 = vrot.slane %v1637_v23, 4  ;;  %v1643_v29 = vshll.u32 %v6180_v42, 16  ;;  %v3046_v16 = vsel %vm3022_vm14, %v3013_v56, %v6053_v38  ;;  %v6204_v38 = vld [vmem:[%s4593_s19 + $0x74] sm:$0x1] }
 0x13b   : > { %2613 = vrot.lane.b32.xlu1 %v4057_v36, %s4546_s25  ;;  %v1631_v47 = vrot.slane %v1630_v48, 4  ;;  %v1635_v46 = vrot.slane %v1633_v4, 5  ;;  %v1828_v40 = vsel %vm4682_vm5, %v1823_v35, %v1827_v14  ;;  %v1832_v12 = vor.u32 %v1831_v7, %v1827_v14  ;;  %4255 = vmatmul.mubr.msk.bf16.gmra.mxu1 %vm3082_vm15, %v3046_v16  ;;  %v3928_v36 = vld [vmem:[%s4593_s19 + $0xc0] sm:$0xe] }
 0x13c   : > { %v6186_v8 = vpop.permute.xlu0 %2335  ;;  %v3030_v58 = vsel %vm3022_vm14, %v2997_v34, %v6069_v32  ;;  %v1846_v57 = vor.u32 %v1845_v15, %v1842_v6  ;;  %v1645_v25 = vrot.slane %v1643_v29, 5  ;;  %v1849_v61 = vshll.u32 %v6149_v0, 16  ;;  %v3920_v19 = vld [vmem:[%s4593_s19 + $0x60] sm:$0xe]  ;;  %v3929_v29 = vld [vmem:[%s4593_s19 + $0xcc] sm:$0xe] }
 0x13d   : > { %v1636_v50 = vsel %vm4682_vm5, %v1631_v47, %v1635_v46  ;;  %v1640_v63 = vor.u32 %v1639_v24, %v1635_v46  ;;  %4239 = vmatmul.mubr.msk.bf16.gmra.mxu0 %vm3082_vm15, %v3030_v58  ;;  %2597 = vrot.lane.b32.xlu0 %v4049_v43, %s4546_s25  ;;  %v1833_v56 = vrot.slane %v1832_v12, 4  ;;  %v1855_v32 = vrot.slane %v1853_v44, 4 }
 0x13e   : > { %v1847_v59 = vrot.slane %v1846_v57, 4  ;;  %v1859_v34 = vshll.u32 %v6193_v27, 16  ;;  %v6209_v60 = vpop.permute.xlu1 %2353  ;;  %v1851_v18 = vrot.slane %v1849_v61, 5  ;;  %v1654_v54 = vor.u32 %v1653_v20, %v1650_v1 }
 0x13f   : > { %v1641_v33 = vrot.slane %v1640_v63, 4  ;;  %v1657_v13 = vshll.u32 %v6155_v45, 16  ;;  %v1838_v28 = vsel %vm4682_vm5, %v1833_v56, %v1837_v51  ;;  %v1663_v23 = vrot.slane %v1661_v52, 4 }
 0x140   : > { %v6212_v11 = vpop.permute.xlu0 %2337  ;;  %v1667_v41 = vshll.u32 %v6204_v38, 16  ;;  %v4072_v44 = vcombine.low %v1828_v40, %v1838_v28  ;;  %v1856_v15 = vor.u32 %v1855_v32, %v1851_v18  ;;  %v1861_v43 = vrot.slane %v1859_v34, 5 }
 0x141   : > { %v1646_v6 = vsel %vm4682_vm5, %v1641_v33, %v1645_v25  ;;  %v1655_v10 = vrot.slane %v1654_v54, 4  ;;  %v1659_v7 = vrot.slane %v1657_v13, 5  ;;  %v1852_v1 = vsel %vm4682_vm5, %v1847_v59, %v1851_v18 }
 0x142   : > { %v4064_v49 = vcombine.low %v1636_v50, %v1646_v6  ;;  %2691 = vrot.lane.b32.xlu1 %v4072_v44, %s4547_s26  ;;  %v1857_v52 = vrot.slane %v1856_v15, 4  ;;  %v3944_v20 = vrot.slane %v3928_v36, 9  ;;  %v1669_v4 = vrot.slane %v1667_v41, 5  ;;  %v3921_v50 = vld [vmem:[%s4593_s19 + $0x6c] sm:$0xe] }
 0x143   : > { %v1664_v48 = vor.u32 %v1663_v23, %v1659_v7  ;;  %v2027_v35 = vrot.slane %v6121_v3, 5  ;;  %v2030_v14 = vrot.slane %v6161_v55, 5  ;;  %v1660_v47 = vsel %vm4682_vm5, %v1655_v10, %v1659_v7 }
 0x144   : > { %2675 = vrot.lane.b32.xlu0 %v4064_v49, %s4547_s26  ;;  %v1862_v24 = vsel %vm4682_vm5, %v1857_v52, %v1861_v43  ;;  %v3936_v46 = vrot.slane %v3920_v19, 9  ;;  %v1971_v55 = vrot.slane %v6144_v2, 5  ;;  %v1974_v57 = vrot.slane %v6180_v42, 5 }
 0x145   : > { %v6227_v51 = vpop.permute.xlu1 %2431  ;;  %v4073_v40 = vcombine.low %v1852_v1, %v1862_v24  ;;  %v1665_v12 = vrot.slane %v1664_v48, 4  ;;  %v2028_v58 = vsel %vm4624_vm2, %v3944_v20, %v2027_v35  ;;  %v2029_v3 = vrot.slane %v2027_v35, 4  ;;  %v4502_v20 = vld [vmem:[%s4593_s19 + $0x90] sm:$0xf]  ;;  %v4503_v48 = vld [vmem:[%s4593_s19 + $0x94] sm:$0xf] }
 0x146   : > { %v6234_v16 = vpop.permute.xlu0 %2415  ;;  %v3945_v61 = vrot.slane %v3929_v29, 9  ;;  %v2034_v56 = vrot.slane %v6149_v0, 5  ;;  %v1972_v34 = vsel %vm4624_vm2, %v3936_v46, %v1971_v55  ;;  %v1973_v2 = vrot.slane %v1971_v55, 4 }
 0x147   : > { %2693 = vrot.lane.b32.xlu1 %v4073_v40, %s4547_s26  ;;  %v1670_v63 = vsel %vm4682_vm5, %v1665_v12, %v1669_v4  ;;  %v2031_v25 = vsel %vm4624_vm2, %v2029_v3, %v2030_v14  ;;  %v2037_v18 = vrot.slane %v6193_v27, 5  ;;  %v3937_v30 = vrot.slane %v3921_v50, 9  ;;  %v4505_v14 = vld [vmem:[%s4593_s19 + $0x34] sm:$0xf] }
 0x148   : > { %v4065_v59 = vcombine.low %v1660_v47, %v1670_v63  ;;  %v4088_v32 = vcombine.low %v2028_v58, %v2031_v25  ;;  %v2035_v42 = vsel %vm4624_vm2, %v3945_v61, %v2034_v56  ;;  %v2036_v33 = vrot.slane %v2034_v56, 4  ;;  %v4507_v61 = vld [vmem:[%s4593_s19 + $0xa0] sm:$0xf] }
 0x149   : > { %v1975_v0 = vsel %vm4624_vm2, %v1973_v2, %v1974_v57  ;;  %v1978_v13 = vrot.slane %v6155_v45, 5  ;;  %v1981_v28 = vrot.slane %v6204_v38, 5  ;;  %v3958_v4 = vcombine.low %v4502_v20, %v4503_v48  ;;  %v4508_v2 = vld [vmem:[%s4593_s19 + $0x3c] sm:$0xf] }
 0x14a   : > { %2677 = vrot.lane.b32.xlu0 %v4065_v59, %s4547_s26  ;;  %v4080_v41 = vcombine.low %v1972_v34, %v1975_v0  ;;  %v2038_v27 = vsel %vm4624_vm2, %v2036_v33, %v2037_v18  ;;  %v3950_v24 = vcombine.low %v4504_v21, %v4505_v14 }
 0x14b   : > { %v6252_v54 = vpop.permute.xlu1 %2433  ;;  %2771 = vrot.lane.b32.xlu1 %v4088_v32, %s4548_s27  ;;  %v4089_v36 = vcombine.low %v2035_v42, %v2038_v27  ;;  %v1979_v44 = vsel %vm4624_vm2, %v3937_v30, %v1978_v13  ;;  %v1980_v6 = vrot.slane %v1978_v13, 4  ;;  %v2814_v46 = vsel %vm2775_vm6, %v3958_v4, %v6030_v26  ;;  %v4509_v42 = vld [vmem:[%s4593_s19 + $0x40] sm:$0xf] }
 0x14c   : > { %v6259_v23 = vpop.permute.xlu0 %2417  ;;  %v2850_v29 = vsel %vm2824_vm7, %v2814_v46, %v6114_v9  ;;  %v2790_v58 = vsel %vm2775_vm6, %v3950_v24, %v6040_v17  ;;  %v3951_v33 = vcombine.low %v4508_v2, %v4509_v42  ;;  %v4511_v2 = vld [vmem:[%s4593_s19 + $0xac] sm:$0xf] }
 0x14d   : > { %v1982_v45 = vsel %vm4624_vm2, %v1980_v6, %v1981_v28  ;;  %v2883_v40 = vsel %vm2857_vm8, %v2850_v29, %v6183_v22  ;;  %v2834_v55 = vsel %vm2824_vm7, %v2790_v58, %v6138_v37 }
 0x14e   : > { %2755 = vrot.lane.b32.xlu0 %v4080_v41, %s4548_s27  ;;  %v4081_v43 = vcombine.low %v1979_v44, %v1982_v45  ;;  %v2916_v3 = vsel %vm2890_vm9, %v2883_v40, %v6227_v51  ;;  %v2867_v9 = vsel %vm2857_vm8, %v2834_v55, %v6186_v8  ;;  %v4506_v8 = vld [vmem:[%s4593_s19 + $0x9c] sm:$0xf]  ;;  %v2793_v28 = vsel %vm2775_vm6, %v3951_v33, %v6104_v31  ;;  %v6374_v40 = vld [vmem:[%s6594_s2] ss:$0 sm:$0xff] }
 0x14f   : > { %v2512_v15 = vpop.permute.xlu1 %2511  ;;  %2773 = vrot.lane.b32.xlu1 %v4089_v36, %s4548_s27  ;;  %v2900_v50 = vsel %vm2890_vm9, %v2867_v9, %v6234_v16  ;;  %v3959_v56 = vcombine.low %v4506_v8, %v4507_v61 }
 0x150   : > { %v2496_v38 = vpop.permute.xlu0 %2495  ;;  %v2949_v26 = vsel %vm2923_vm10, %v2916_v3, %v2512_v15 }
 0x151   : > { %v2933_v51 = vsel %vm2923_vm10, %v2900_v50, %v2496_v38  ;;  %v2817_v34 = vsel %vm2775_vm6, %v3959_v56, %v6087_v39  ;;  %v2836_v39 = vsel %vm2824_vm7, %v2793_v28, %v6171_v5 }
 0x152   : > { %2757 = vrot.lane.b32.xlu0 %v4081_v43, %s4548_s27  ;;  %v2852_v18 = vsel %vm2824_vm7, %v2817_v34, %v6163_v53  ;;  %v2869_v53 = vsel %vm2857_vm8, %v2836_v39, %v6212_v11  ;;  %v4510_v34 = vld [vmem:[%s4593_s19 + $0xa8] sm:$0xf] }
 0x153   : > { %v2514_v49 = vpop.permute.xlu1 %2513  ;;  %v2885_v30 = vsel %vm2857_vm8, %v2852_v18, %v6209_v60  ;;  %v3960_v42 = vcombine.low %v4510_v34, %v4511_v2 }
 0x154   : > { %v2498_v10 = vpop.permute.xlu0 %2497  ;;  %v2918_v13 = vsel %vm2890_vm9, %v2885_v30, %v6252_v54  ;;  %v2902_v54 = vsel %vm2890_vm9, %v2869_v53, %v6259_v23  ;;  %v4513_v53 = vld [vmem:[%s4593_s19 + $0x4c] sm:$0xf] }
 0x155   : > { %v2951_v41 = vsel %vm2923_vm10, %v2918_v13, %v2514_v49  ;;  %v2935_v6 = vsel %vm2923_vm10, %v2902_v54, %v2498_v10 }
 0x157   : > { %v2608_v7 = vpop.permute.xlu1 %2607 }
 0x158   : > { %v2592_v19 = vpop.permute.xlu0 %2591  ;;  %v2982_v57 = vsel %vm2956_vm11, %v2949_v26, %v2608_v7 }
 0x159   : > { %v2966_v25 = vsel %vm2956_vm11, %v2933_v51, %v2592_v19 }
 0x15b   : > { %v2610_v1 = vpop.permute.xlu1 %2609 }
 0x15c   : > { %v2594_v52 = vpop.permute.xlu0 %2593  ;;  %v2984_v27 = vsel %vm2956_vm11, %v2951_v41, %v2610_v1 }
 0x15d   : > { %v2968_v5 = vsel %vm2956_vm11, %v2935_v6, %v2594_v52  ;;  %v4514_v6 = vld [vmem:[%s4593_s19 + $0xb4] sm:$0xf] }
 0x162   : > { %v2688_v35 = vpop.permute.xlu1 %2687 }
 0x163   : > { %v2672_v47 = vpop.permute.xlu0 %2671  ;;  %v3015_v17 = vsel %vm2989_vm12, %v2982_v57, %v2688_v35 }
 0x164   : > { %v2999_v59 = vsel %vm2989_vm12, %v2966_v25, %v2672_v47 }
 0x167   : > { %v2690_v12 = vpop.permute.xlu1 %2689 }
 0x168   : > { %v3017_v60 = vsel %vm2989_vm12, %v2984_v27, %v2690_v12  ;;  %v4512_v27 = vld [vmem:[%s4593_s19 + $0x48] sm:$0xf] }
 0x16a   : > { %v2674_v22 = vpop.permute.xlu0 %2673 }
 0x16b   : > { %v2768_v63 = vpop.permute.xlu1 %2767  ;;  %v3001_v15 = vsel %vm2989_vm12, %v2968_v5, %v2674_v22  ;;  %v4515_v5 = vld [vmem:[%s4593_s19 + $0xb8] sm:$0xf] }
 0x16c   : > { %v3048_v37 = vsel %vm3022_vm14, %v3015_v17, %v2768_v63 }
 0x16d   : > { %4258 = vmatprep.mubr.msk.bf16.mxu1 %vm3082_vm15, %v3048_v37 }
 0x16e   : > { %v2752_v32 = vpop.permute.xlu0 %2751 }
 0x16f   : > { %v3032_v16 = vsel %vm3022_vm14, %v2999_v59, %v2752_v32 }
 0x170   : > { %4242 = vmatprep.mubr.msk.bf16.mxu0 %vm3082_vm15, %v3032_v16 }
 0x174   : > { %v6311_v0 = vpop.permute.xlu1 %2179 }
 0x178   : > { %v6324_v36 = vpop.permute.xlu0 %2163  ;;  %v2770_v44 = vpop.permute.xlu1 %2769 }
 0x179   : > { %v3050_v31 = vsel %vm3022_vm14, %v3017_v60, %v2770_v44  ;;  %v3952_v60 = vcombine.low %v4512_v27, %v4513_v53 }
 0x17a   : > { %4259 = vmatmul.mubr.msk.bf16.gmra.mxu1 %vm3082_vm15, %v3050_v31  ;;  %v2820_v31 = vsel %vm2775_vm6, %v3960_v42, %v6311_v0 }
 0x17c   : > { %v2754_v45 = vpop.permute.xlu0 %2753 }
 0x17d   : > { %v3034_v11 = vsel %vm3022_vm14, %v3001_v15, %v2754_v45  ;;  %v3961_v15 = vcombine.low %v4514_v6, %v4515_v5 }
 0x17e   : > { %4243 = vmatmul.mubr.msk.bf16.gmra.mxu0 %vm3082_vm15, %v3034_v11  ;;  %v4516_v11 = vld [vmem:[%s4593_s19 + $0x54] sm:$0xf] }
 0x181   : > { %v6335_v38 = vpop.permute.xlu1 %2181 }
 0x185   : > { %v6337_v43 = vpop.permute.xlu0 %2165  ;;  %v6339_v23 = vpop.permute.xlu1 %2259 }
 0x186   : > { %v2854_v45 = vsel %vm2824_vm7, %v2820_v31, %v6339_v23 }
 0x189   : > { %v6341_v49 = vpop.permute.xlu0 %2243  ;;  %v6343_v10 = vpop.permute.xlu1 %2261 }
 0x18d   : > { %v6345_v7 = vpop.permute.xlu0 %2245  ;;  %v6347_v19 = vpop.permute.xlu1 %2355 }
 0x191   : > { %v6349_v1 = vpop.permute.xlu0 %2339  ;;  %v6351_v52 = vpop.permute.xlu1 %2357 }
 0x195   : > { %v6353_v20 = vpop.permute.xlu0 %2341 }
 0x199   : > { %v6355_v48 = vpop.permute.xlu1 %2435 }
 0x19a   : > { %v6357_v4 = vpop.permute.xlu0 %2419 }
 0x19d   : > { %v6359_v35 = vpop.permute.xlu1 %2437 }
 0x19f   : > { %v6361_v21 = vpop.permute.xlu0 %2421 }
 0x1a1   : > { %v6363_v14 = vpop.permute.xlu1 %2515 }
 0x1a3   : > { %v6365_v24 = vpop.permute.xlu0 %2499 }
 0x1a5   : > { %v6367_v47 = vpop.permute.xlu1 %2517 }
 0x1a7   : > { %v6369_v46 = vpop.permute.xlu0 %2501 }
 0x1a9   : > { %v2612_v29 = vpop.permute.xlu1 %2611 }
 0x1ab   : > { %v6376_v12 = vpop.permute.xlu0 %2595 }
 0x1ad   : > { %v6381_v26 = vpop.permute.xlu1 %2613 }
 0x1ae   : > { %v4236_v58 = vpop.f32.mrf.mxu0  ;;  %v4252_v55 = vpop.f32.mrf.mxu1 }
 0x1af   : > { %v6379_v3 = vadd.f32 %v4236_v58, %v6374_v40  ;;  %v6384_v9 = vadd.f32 %v4252_v55, %v6374_v40  ;;  %v6390_v63 = vpop.permute.xlu0 %2597  ;;  %v3953_v58 = vcombine.low %v4516_v11, %v5871_v62  ;;  %v2887_v55 = vsel %vm2857_vm8, %v2854_v45, %v6347_v19 }
 0x1b0   : > { %v3153_v57 = vpop.f32.mrf.mxu0  ;;  %v3217_v17 = vpop.f32.mrf.mxu1  ;;  %v2920_v0 = vsel %vm2890_vm9, %v2887_v55, %v6355_v48 }
 0x1b1   : > { %v4112_v22 = vmul.f32 -1.442695, %v6379_v3  ;;  %v6388_v50 = vadd.f32 %v6374_v40, %v3153_v57  ;;  %v4128_v51 = vmul.f32 -1.442695, %v6384_v9  ;;  %v6394_v37 = vadd.f32 %v6374_v40, %v3217_v17 }
 0x1b2   : > { %v4237_v25 = vpop.f32.mrf.mxu0  ;;  %v4253_v56 = vpop.f32.mrf.mxu1  ;;  %v2823_v17 = vsel %vm2775_vm6, %v3961_v15, %v6335_v38  ;;  %v2799_v48 = vsel %vm2775_vm6, %v3953_v58, %v6337_v43 }
 0x1b3   : > { %4358 = vpow2.f32 %v4112_v22  ;;  %v4110_v8 = vmul.f32 -1.442695, %v6388_v50  ;;  %v6398_v61 = vadd.f32 %v4237_v25, %v6374_v40  ;;  %v4126_v59 = vmul.f32 -1.442695, %v6394_v37 }
 0x1b4   : > { %4360 = vpow2.f32 %v4128_v51  ;;  %v6402_v32 = vadd.f32 %v4253_v56, %v6374_v40  ;;  %v3156_v16 = vpop.f32.mrf.mxu0  ;;  %v3220_v30 = vpop.f32.mrf.mxu1  ;;  %v2796_v22 = vsel %vm2775_vm6, %v3952_v60, %v6324_v36  ;;  %v2953_v51 = vsel %vm2923_vm10, %v2920_v0, %v6363_v14 }
 0x1b5   : > { %4362 = vpow2.f32 %v4110_v8  ;;  %v4113_v33 = vmul.f32 -1.442695, %v6398_v61  ;;  %v6408_v18 = vadd.f32 %v6374_v40, %v3156_v16  ;;  %v2692_v13 = vpop.permute.xlu1 %2691  ;;  %v6412_v41 = vadd.f32 %v6374_v40, %v3220_v30 }
 0x1b6   : > { %4364 = vpow2.f32 %v4126_v59  ;;  %v4129_v28 = vmul.f32 -1.442695, %v6402_v32  ;;  %v2676_v44 = vpop.permute.xlu0 %2675  ;;  %v2838_v23 = vsel %vm2824_vm7, %v2796_v22, %v6341_v49  ;;  %v2856_v62 = vsel %vm2824_vm7, %v2823_v17, %v6343_v10 }
 0x1b7   : > { %4366 = vpow2.f32 %v4113_v33  ;;  %v4111_v39 = vmul.f32 -1.442695, %v6408_v18  ;;  %v4127_v54 = vmul.f32 -1.442695, %v6412_v41  ;;  %v2871_v19 = vsel %vm2857_vm8, %v2838_v23, %v6349_v1 }
 0x1b8   : > { %4368 = vpow2.f32 %v4129_v28  ;;  %v2986_v36 = vsel %vm2956_vm11, %v2953_v51, %v2612_v29  ;;  %v2889_v38 = vsel %vm2857_vm8, %v2856_v62, %v6351_v52  ;;  %v2904_v49 = vsel %vm2890_vm9, %v2871_v19, %v6357_v4 }
 0x1b9   : > { %4370 = vpow2.f32 %v4111_v39  ;;  %v2694_v57 = vpop.permute.xlu1 %2693  ;;  %v3019_v14 = vsel %vm2989_vm12, %v2986_v36, %v2692_v13  ;;  %v2840_v10 = vsel %vm2824_vm7, %v2799_v48, %v6345_v7  ;;  %v2922_v1 = vsel %vm2890_vm9, %v2889_v38, %v6359_v35 }
 0x1ba   : > { %4372 = vpow2.f32 %v4127_v54  ;;  %v2937_v29 = vsel %vm2923_vm10, %v2904_v49, %v6365_v24  ;;  %v2873_v52 = vsel %vm2857_vm8, %v2840_v10, %v6353_v20  ;;  %v2955_v4 = vsel %vm2923_vm10, %v2922_v1, %v6367_v47 }
 0x1bb   : > { %v2970_v16 = vsel %vm2956_vm11, %v2937_v29, %v6376_v12  ;;  %v2906_v35 = vsel %vm2890_vm9, %v2873_v52, %v6361_v21  ;;  %v2988_v24 = vsel %vm2956_vm11, %v2955_v4, %v6381_v26 }
 0x1bc   : > { %v2678_v25 = vpop.permute.xlu0 %2677  ;;  %v3003_v2 = vsel %vm2989_vm12, %v2970_v16, %v2676_v44  ;;  %v3021_v47 = vsel %vm2989_vm12, %v2988_v24, %v2694_v57  ;;  %v2939_v39 = vsel %vm2923_vm10, %v2906_v35, %v6369_v46 }
 0x1bd   : > { %v2772_v8 = vpop.permute.xlu1 %2771  ;;  %v2972_v53 = vsel %vm2956_vm11, %v2939_v39, %v6390_v63 }
 0x1be   : > { %v3052_v43 = vsel %vm3022_vm14, %v3019_v14, %v2772_v8  ;;  %v3005_v54 = vsel %vm2989_vm12, %v2972_v53, %v2678_v25 }
 0x1bf   : > { %4262 = vmatprep.mubr.msk.bf16.mxu1 %vm3082_vm15, %v3052_v43 }
 0x1c0   : > { %v4359_v56 = vpop.eup %4358  ;;  %v2756_v42 = vpop.permute.xlu0 %2755 }
 0x1c1   : > { %v4361_v59 = vpop.eup %4360  ;;  %v3378_v7 = vadd.f32 1.0, %v4359_v56  ;;  %v3036_v30 = vsel %vm3022_vm14, %v3003_v2, %v2756_v42  ;;  %v2774_v12 = vpop.permute.xlu1 %2773 }
 0x1c2   : > { %v4363_v34 = vpop.eup %4362  ;;  %v3394_v20 = vadd.f32 1.0, %v4361_v59  ;;  %4246 = vmatprep.mubr.msk.bf16.mxu0 %vm3082_vm15, %v3036_v30  ;;  %v3054_v21 = vsel %vm3022_vm14, %v3021_v47, %v2774_v12 }
 0x1c3   : > { %v4365_v33 = vpop.eup %4364  ;;  %4374 = vrcp.f32 %v3378_v7  ;;  %v3376_v13 = vadd.f32 1.0, %v4363_v34  ;;  %4263 = vmatmul.mubr.msk.bf16.gmra.mxu1 %vm3082_vm15, %v3054_v21 }
 0x1c4   : > { %v4367_v28 = vpop.eup %4366  ;;  %4376 = vrcp.f32 %v3394_v20  ;;  %v3392_v26 = vadd.f32 1.0, %v4365_v33  ;;  %v2758_v31 = vpop.permute.xlu0 %2757 }
 0x1c5   : > { %v4369_v27 = vpop.eup %4368  ;;  %4378 = vrcp.f32 %v3376_v13  ;;  %v3379_v60 = vadd.f32 1.0, %v4367_v28  ;;  %v3038_v5 = vsel %vm3022_vm14, %v3005_v54, %v2758_v31 }
 0x1c6   : > { %v4371_v44 = vpop.eup %4370  ;;  %4380 = vrcp.f32 %v3392_v26  ;;  %v3395_v46 = vadd.f32 1.0, %v4369_v27  ;;  %4247 = vmatmul.mubr.msk.bf16.gmra.mxu0 %vm3082_vm15, %v3038_v5 }
 0x1c7   : > { %v4373_v6 = vpop.eup %4372  ;;  %4382 = vrcp.f32 %v3379_v60  ;;  %v3377_v15 = vadd.f32 1.0, %v4371_v44 }
 0x1c8   : > { %4384 = vrcp.f32 %v3395_v46  ;;  %v3393_v63 = vadd.f32 1.0, %v4373_v6 }
 0x1c9   : > { %4386 = vrcp.f32 %v3377_v15 }
 0x1ca   : > { %4388 = vrcp.f32 %v3393_v63 }
 0x1d0   : > { %v4375_v45 = vpop.eup %4374 }
 0x1d1   : > { %v4377_v11 = vpop.eup %4376  ;;  %v3474_v58 = vmul.f32 %v4375_v45, %v6379_v3 }
 0x1d2   : > { %v4379_v55 = vpop.eup %4378  ;;  %v3490_v57 = vmul.f32 %v4377_v11, %v6384_v9 }
 0x1d3   : > { %v4381_v22 = vpop.eup %4380  ;;  %v4179_v0 = vpack.c.bf16 %v3474_v58, %v3474_v58  ;;  %v3472_v17 = vmul.f32 %v4379_v55, %v6388_v50 }
 0x1d4   : > { %v4383_v23 = vpop.eup %4382  ;;  %v4195_v51 = vpack.c.bf16 %v3490_v57, %v3490_v57  ;;  %v3488_v3 = vmul.f32 %v4381_v22, %v6394_v37 }
 0x1d5   : > { %v4385_v62 = vpop.eup %4384  ;;  %3635 = vst.msk [vmem:[%s6486_s16 + $0x8] sm:$0xf] %vm3632_vm0, %v4179_v0  ;;  %v4177_v19 = vpack.c.bf16 %v3472_v17, %v3472_v17  ;;  %v3475_v36 = vmul.f32 %v4383_v23, %v6398_v61 }
 0x1d6   : > { %v4387_v9 = vpop.eup %4386  ;;  %3651 = vst.msk [vmem:[%s6486_s16 + $0x48] sm:$0xf] %vm3632_vm0, %v4195_v51  ;;  %v4193_v25 = vpack.c.bf16 %v3488_v3, %v3488_v3  ;;  %v3491_v50 = vmul.f32 %v4385_v62, %v6402_v32 }
 0x1d7   : > { %v4389_v48 = vpop.eup %4388  ;;  %3633 = vst.msk [vmem:[%s6486_s16] sm:$0xf] %vm3632_vm0, %v4177_v19  ;;  %v4180_v37 = vpack.c.bf16 %v3475_v36, %v3475_v36  ;;  %v3473_v38 = vmul.f32 %v4387_v9, %v6408_v18 }
 0x1d8   : > { %3649 = vst.msk [vmem:[%s6486_s16 + $0x40] sm:$0xf] %vm3632_vm0, %v4193_v25  ;;  %v4196_v49 = vpack.c.bf16 %v3491_v50, %v3491_v50  ;;  %v3489_v14 = vmul.f32 %v4389_v48, %v6412_v41 }
 0x1d9   : > { %3636 = vst.msk [vmem:[%s6486_s16 + $0xc] sm:$0xf] %vm3632_vm0, %v4180_v37  ;;  %v4178_v61 = vpack.c.bf16 %v3473_v38, %v3473_v38 }
 0x1da   : > { %3652 = vst.msk [vmem:[%s6486_s16 + $0x4c] sm:$0xf] %vm3632_vm0, %v4196_v49  ;;  %v4194_v8 = vpack.c.bf16 %v3489_v14, %v3489_v14 }
 0x1db   : > { %3634 = vst.msk [vmem:[%s6486_s16 + $0x4] sm:$0xf] %vm3632_vm0, %v4178_v61 }
 0x1dc   : > { %3650 = vst.msk [vmem:[%s6486_s16 + $0x44] sm:$0xf] %vm3632_vm0, %v4194_v8 }
 0x1fb   : > { %v4256_v32 = vpop.f32.mrf.mxu1 }
 0x1fc   : > { %v3242_v10 = vadd.f32 %v4256_v32, %v6374_v40 }
 0x1fd   : > { %v4240_v56 = vpop.f32.mrf.mxu0  ;;  %v3233_v1 = vpop.f32.mrf.mxu1 }
 0x1fe   : > { %v3178_v18 = vadd.f32 %v4240_v56, %v6374_v40  ;;  %v4132_v29 = vmul.f32 -1.442695, %v3242_v10  ;;  %v3234_v41 = vadd.f32 %v6374_v40, %v3233_v1 }
 0x1ff   : > { %v3169_v43 = vpop.f32.mrf.mxu0  ;;  %v4257_v4 = vpop.f32.mrf.mxu1 }
 0x200   : > { %v4116_v59 = vmul.f32 -1.442695, %v3178_v18  ;;  %v3170_v52 = vadd.f32 %v6374_v40, %v3169_v43  ;;  %4390 = vpow2.f32 %v4132_v29  ;;  %v4130_v16 = vmul.f32 -1.442695, %v3234_v41 }
 0x201   : > { %v4241_v7 = vpop.f32.mrf.mxu0  ;;  %v3245_v34 = vadd.f32 %v4257_v4, %v6374_v40  ;;  %v3236_v2 = vpop.f32.mrf.mxu1 }
 0x202   : > { %4392 = vpow2.f32 %v4116_v59  ;;  %v4114_v35 = vmul.f32 -1.442695, %v3170_v52  ;;  %v3181_v24 = vadd.f32 %v4241_v7, %v6374_v40  ;;  %v3237_v33 = vadd.f32 %v6374_v40, %v3236_v2 }
 0x203   : > { %4394 = vpow2.f32 %v4130_v16  ;;  %v4133_v42 = vmul.f32 -1.442695, %v3245_v34  ;;  %v3172_v20 = vpop.f32.mrf.mxu0 }
 0x204   : > { %4396 = vpow2.f32 %v4114_v35  ;;  %v4117_v47 = vmul.f32 -1.442695, %v3181_v24  ;;  %v3173_v30 = vadd.f32 %v6374_v40, %v3172_v20  ;;  %v4131_v12 = vmul.f32 -1.442695, %v3237_v33 }
 0x205   : > { %4398 = vpow2.f32 %v4133_v42 }
 0x206   : > { %4400 = vpow2.f32 %v4117_v47  ;;  %v4115_v13 = vmul.f32 -1.442695, %v3173_v30 }
 0x207   : > { %4402 = vpow2.f32 %v4131_v12 }
 0x208   : > { %4404 = vpow2.f32 %v4115_v13 }
 0x20d   : > { %v4391_v28 = vpop.eup %4390 }
 0x20e   : > { %v3398_v21 = vadd.f32 1.0, %v4391_v28 }
 0x20f   : > { %v4393_v39 = vpop.eup %4392 }
 0x210   : > { %v4395_v26 = vpop.eup %4394  ;;  %v3382_v27 = vadd.f32 1.0, %v4393_v39  ;;  %4406 = vrcp.f32 %v3398_v21 }
 0x211   : > { %v4397_v53 = vpop.eup %4396  ;;  %v3396_v60 = vadd.f32 1.0, %v4395_v26 }
 0x212   : > { %v4399_v44 = vpop.eup %4398  ;;  %4408 = vrcp.f32 %v3382_v27  ;;  %v3380_v54 = vadd.f32 1.0, %v4397_v53 }
 0x213   : > { %v4401_v31 = vpop.eup %4400  ;;  %4410 = vrcp.f32 %v3396_v60  ;;  %v3399_v46 = vadd.f32 1.0, %v4399_v44 }
 0x214   : > { %v4403_v6 = vpop.eup %4402  ;;  %4412 = vrcp.f32 %v3380_v54  ;;  %v3383_v5 = vadd.f32 1.0, %v4401_v31 }
 0x215   : > { %v4405_v15 = vpop.eup %4404  ;;  %4414 = vrcp.f32 %v3399_v46  ;;  %v3397_v63 = vadd.f32 1.0, %v4403_v6 }
 0x216   : > { %4416 = vrcp.f32 %v3383_v5  ;;  %v3381_v45 = vadd.f32 1.0, %v4405_v15 }
 0x217   : > { %4418 = vrcp.f32 %v3397_v63 }
 0x218   : > { %4420 = vrcp.f32 %v3381_v45 }
 0x21d   : > { %v4407_v11 = vpop.eup %4406 }
 0x21e   : > { %v3494_v55 = vmul.f32 %v4407_v11, %v3242_v10 }
 0x21f   : > { %v4409_v58 = vpop.eup %4408 }
 0x220   : > { %v4411_v57 = vpop.eup %4410  ;;  %v3478_v22 = vmul.f32 %v4409_v58, %v3178_v18  ;;  %v4199_v17 = vpack.c.bf16 %v3494_v55, %v3494_v55 }
 0x221   : > { %v4413_v0 = vpop.eup %4412  ;;  %v3492_v23 = vmul.f32 %v4411_v57, %v3234_v41 }
 0x222   : > { %v4415_v51 = vpop.eup %4414  ;;  %v4183_v3 = vpack.c.bf16 %v3478_v22, %v3478_v22  ;;  %v3476_v62 = vmul.f32 %v4413_v0, %v3170_v52  ;;  %3655 = vst.msk [vmem:[%s6486_s16 + $0x58] sm:$0xf] %vm3632_vm0, %v4199_v17 }
 0x223   : > { %v4417_v19 = vpop.eup %4416  ;;  %v4197_v36 = vpack.c.bf16 %v3492_v23, %v3492_v23  ;;  %v3495_v9 = vmul.f32 %v4415_v51, %v3245_v34 }
 0x224   : > { %v4419_v25 = vpop.eup %4418  ;;  %3639 = vst.msk [vmem:[%s6486_s16 + $0x18] sm:$0xf] %vm3632_vm0, %v4183_v3  ;;  %v4181_v50 = vpack.c.bf16 %v3476_v62, %v3476_v62  ;;  %v3479_v48 = vmul.f32 %v4417_v19, %v3181_v24 }
 0x225   : > { %v4421_v37 = vpop.eup %4420  ;;  %3653 = vst.msk [vmem:[%s6486_s16 + $0x50] sm:$0xf] %vm3632_vm0, %v4197_v36  ;;  %v4200_v38 = vpack.c.bf16 %v3495_v9, %v3495_v9  ;;  %v3493_v49 = vmul.f32 %v4419_v25, %v3237_v33 }
 0x226   : > { %3637 = vst.msk [vmem:[%s6486_s16 + $0x10] sm:$0xf] %vm3632_vm0, %v4181_v50  ;;  %v4184_v14 = vpack.c.bf16 %v3479_v48, %v3479_v48  ;;  %v3477_v61 = vmul.f32 %v4421_v37, %v3173_v30 }
 0x227   : > { %3656 = vst.msk [vmem:[%s6486_s16 + $0x5c] sm:$0xf] %vm3632_vm0, %v4200_v38  ;;  %v4198_v8 = vpack.c.bf16 %v3493_v49, %v3493_v49 }
 0x228   : > { %3640 = vst.msk [vmem:[%s6486_s16 + $0x1c] sm:$0xf] %vm3632_vm0, %v4184_v14  ;;  %v4182_v32 = vpack.c.bf16 %v3477_v61, %v3477_v61 }
 0x229   : > { %3654 = vst.msk [vmem:[%s6486_s16 + $0x54] sm:$0xf] %vm3632_vm0, %v4198_v8 }
 0x22a   : > { %3638 = vst.msk [vmem:[%s6486_s16 + $0x14] sm:$0xf] %vm3632_vm0, %v4182_v32 }
 0x23a   : > { %v4260_v56 = vpop.f32.mrf.mxu1 }
 0x23b   : > { %v3258_v10 = vadd.f32 %v4260_v56, %v6374_v40 }
 0x23c   : > { %v3249_v18 = vpop.f32.mrf.mxu1 }
 0x23d   : > { %v4136_v1 = vmul.f32 -1.442695, %v3258_v10  ;;  %v3250_v29 = vadd.f32 %v6374_v40, %v3249_v18 }
 0x23e   : > { %v4244_v43 = vpop.f32.mrf.mxu0  ;;  %v4261_v41 = vpop.f32.mrf.mxu1 }
 0x23f   : > { %v3194_v59 = vadd.f32 %v4244_v43, %v6374_v40  ;;  %4422 = vpow2.f32 %v4136_v1  ;;  %v4134_v52 = vmul.f32 -1.442695, %v3250_v29  ;;  %v3261_v4 = vadd.f32 %v4261_v41, %v6374_v40 }
 0x240   : > { %v3185_v16 = vpop.f32.mrf.mxu0  ;;  %v3252_v7 = vpop.f32.mrf.mxu1 }
 0x241   : > { %v4120_v34 = vmul.f32 -1.442695, %v3194_v59  ;;  %v3186_v35 = vadd.f32 %v6374_v40, %v3185_v16  ;;  %4424 = vpow2.f32 %v4134_v52  ;;  %v4137_v24 = vmul.f32 -1.442695, %v3261_v4 }
 0x242   : > { %v4245_v2 = vpop.f32.mrf.mxu0  ;;  %v3253_v42 = vadd.f32 %v6374_v40, %v3252_v7 }
 0x243   : > { %4426 = vpow2.f32 %v4120_v34  ;;  %v4118_v20 = vmul.f32 -1.442695, %v3186_v35  ;;  %v3197_v33 = vadd.f32 %v4245_v2, %v6374_v40 }
 0x244   : > { %4428 = vpow2.f32 %v4137_v24  ;;  %v3188_v47 = vpop.f32.mrf.mxu0  ;;  %v4135_v30 = vmul.f32 -1.442695, %v3253_v42 }
 0x245   : > { %4430 = vpow2.f32 %v4118_v20  ;;  %v4121_v12 = vmul.f32 -1.442695, %v3197_v33  ;;  %v3189_v13 = vadd.f32 %v6374_v40, %v3188_v47 }
 0x246   : > { %4432 = vpow2.f32 %v4135_v30 }
 0x247   : > { %4434 = vpow2.f32 %v4121_v12  ;;  %v4119_v28 = vmul.f32 -1.442695, %v3189_v13 }
 0x249   : > { %4436 = vpow2.f32 %v4119_v28 }
 0x24c   : > { %v4423_v39 = vpop.eup %4422 }
 0x24d   : > { %v3402_v21 = vadd.f32 1.0, %v4423_v39 }
 0x24e   : > { %v4425_v26 = vpop.eup %4424 }
 0x24f   : > { %4438 = vrcp.f32 %v3402_v21  ;;  %v3400_v27 = vadd.f32 1.0, %v4425_v26 }
 0x250   : > { %v4427_v53 = vpop.eup %4426 }
 0x251   : > { %v4429_v60 = vpop.eup %4428  ;;  %v3386_v44 = vadd.f32 1.0, %v4427_v53  ;;  %4440 = vrcp.f32 %v3400_v27 }
 0x252   : > { %v4431_v54 = vpop.eup %4430  ;;  %v3403_v31 = vadd.f32 1.0, %v4429_v60 }
 0x253   : > { %v4433_v46 = vpop.eup %4432  ;;  %4442 = vrcp.f32 %v3386_v44  ;;  %v3384_v6 = vadd.f32 1.0, %v4431_v54 }
 0x254   : > { %v4435_v5 = vpop.eup %4434  ;;  %4444 = vrcp.f32 %v3403_v31  ;;  %v3401_v15 = vadd.f32 1.0, %v4433_v46 }
 0x255   : > { %4446 = vrcp.f32 %v3384_v6  ;;  %v3387_v63 = vadd.f32 1.0, %v4435_v5 }
 0x256   : > { %v4437_v45 = vpop.eup %4436  ;;  %4448 = vrcp.f32 %v3401_v15 }
 0x257   : > { %4450 = vrcp.f32 %v3387_v63  ;;  %v3385_v11 = vadd.f32 1.0, %v4437_v45 }
 0x259   : > { %4452 = vrcp.f32 %v3385_v11 }
 0x25c   : > { %v4439_v58 = vpop.eup %4438 }
 0x25d   : > { %v3498_v55 = vmul.f32 %v4439_v58, %v3258_v10 }
 0x25e   : > { %v4441_v57 = vpop.eup %4440 }
 0x25f   : > { %v4203_v22 = vpack.c.bf16 %v3498_v55, %v3498_v55  ;;  %v3496_v0 = vmul.f32 %v4441_v57, %v3250_v29 }
 0x260   : > { %v4443_v17 = vpop.eup %4442 }
 0x261   : > { %v4445_v23 = vpop.eup %4444  ;;  %v3482_v51 = vmul.f32 %v4443_v17, %v3194_v59  ;;  %3659 = vst.msk [vmem:[%s6486_s16 + $0x68] sm:$0xf] %vm3632_vm0, %v4203_v22  ;;  %v4201_v3 = vpack.c.bf16 %v3496_v0, %v3496_v0 }
 0x262   : > { %v4447_v62 = vpop.eup %4446  ;;  %v3499_v19 = vmul.f32 %v4445_v23, %v3261_v4 }
 0x263   : > { %v4449_v36 = vpop.eup %4448  ;;  %v4187_v9 = vpack.c.bf16 %v3482_v51, %v3482_v51  ;;  %v3480_v25 = vmul.f32 %v4447_v62, %v3186_v35  ;;  %3657 = vst.msk [vmem:[%s6486_s16 + $0x60] sm:$0xf] %vm3632_vm0, %v4201_v3 }
 0x264   : > { %v4451_v50 = vpop.eup %4450  ;;  %v4204_v48 = vpack.c.bf16 %v3499_v19, %v3499_v19  ;;  %v3497_v37 = vmul.f32 %v4449_v36, %v3253_v42 }
 0x265   : > { %3643 = vst.msk [vmem:[%s6486_s16 + $0x28] sm:$0xf] %vm3632_vm0, %v4187_v9  ;;  %v4185_v38 = vpack.c.bf16 %v3480_v25, %v3480_v25  ;;  %v3483_v49 = vmul.f32 %v4451_v50, %v3197_v33 }
 0x266   : > { %v4453_v14 = vpop.eup %4452  ;;  %3660 = vst.msk [vmem:[%s6486_s16 + $0x6c] sm:$0xf] %vm3632_vm0, %v4204_v48  ;;  %v4202_v61 = vpack.c.bf16 %v3497_v37, %v3497_v37 }
 0x267   : > { %3641 = vst.msk [vmem:[%s6486_s16 + $0x20] sm:$0xf] %vm3632_vm0, %v4185_v38  ;;  %v4188_v8 = vpack.c.bf16 %v3483_v49, %v3483_v49  ;;  %v3481_v32 = vmul.f32 %v4453_v14, %v3189_v13 }
 0x268   : > { %3658 = vst.msk [vmem:[%s6486_s16 + $0x64] sm:$0xf] %vm3632_vm0, %v4202_v61 }
 0x269   : > { %3644 = vst.msk [vmem:[%s6486_s16 + $0x2c] sm:$0xf] %vm3632_vm0, %v4188_v8  ;;  %v4186_v56 = vpack.c.bf16 %v3481_v32, %v3481_v32 }
 0x26b   : > { %3642 = vst.msk [vmem:[%s6486_s16 + $0x24] sm:$0xf] %vm3632_vm0, %v4186_v56 }
 0x283   : > { %v4264_v10 = vpop.f32.mrf.mxu1 }
 0x284   : > { %v3274_v18 = vadd.f32 %v4264_v10, %v6374_v40 }
 0x285   : > { %v3265_v1 = vpop.f32.mrf.mxu1 }
 0x286   : > { %v4248_v29 = vpop.f32.mrf.mxu0  ;;  %v4140_v43 = vmul.f32 -1.442695, %v3274_v18  ;;  %v3266_v41 = vadd.f32 %v6374_v40, %v3265_v1 }
 0x287   : > { %v3210_v59 = vadd.f32 %v4248_v29, %v6374_v40  ;;  %v4265_v52 = vpop.f32.mrf.mxu1 }
 0x288   : > { %4454 = vpow2.f32 %v4140_v43  ;;  %v3201_v4 = vpop.f32.mrf.mxu0  ;;  %v4138_v16 = vmul.f32 -1.442695, %v3266_v41  ;;  %v3277_v7 = vadd.f32 %v4265_v52, %v6374_v40 }
 0x289   : > { %v4124_v34 = vmul.f32 -1.442695, %v3210_v59  ;;  %v3202_v35 = vadd.f32 %v6374_v40, %v3201_v4  ;;  %v3268_v24 = vpop.f32.mrf.mxu1 }
 0x28a   : > { %4456 = vpow2.f32 %v4138_v16  ;;  %v4249_v2 = vpop.f32.mrf.mxu0  ;;  %v4141_v42 = vmul.f32 -1.442695, %v3277_v7  ;;  %v3269_v20 = vadd.f32 %v6374_v40, %v3268_v24 }
 0x28b   : > { %4458 = vpow2.f32 %v4124_v34  ;;  %v4122_v33 = vmul.f32 -1.442695, %v3202_v35  ;;  %v3213_v47 = vadd.f32 %v4249_v2, %v6374_v40 }
 0x28c   : > { %4460 = vpow2.f32 %v4141_v42  ;;  %v3204_v30 = vpop.f32.mrf.mxu0  ;;  %v4139_v12 = vmul.f32 -1.442695, %v3269_v20 }
 0x28d   : > { %4462 = vpow2.f32 %v4122_v33  ;;  %v4125_v13 = vmul.f32 -1.442695, %v3213_v47  ;;  %v3205_v28 = vadd.f32 %v6374_v40, %v3204_v30 }
 0x28e   : > { %4464 = vpow2.f32 %v4139_v12 }
 0x28f   : > { %4466 = vpow2.f32 %v4125_v13  ;;  %v4123_v39 = vmul.f32 -1.442695, %v3205_v28 }
 0x291   : > { %4468 = vpow2.f32 %v4123_v39 }
 0x295   : > { %v4455_v21 = vpop.eup %4454 }
 0x296   : > { %v3406_v26 = vadd.f32 1.0, %v4455_v21 }
 0x297   : > { %v4457_v27 = vpop.eup %4456 }
 0x298   : > { %v4459_v53 = vpop.eup %4458  ;;  %4470 = vrcp.f32 %v3406_v26  ;;  %v3404_v60 = vadd.f32 1.0, %v4457_v27 }
 0x299   : > { %v4461_v44 = vpop.eup %4460  ;;  %v3390_v54 = vadd.f32 1.0, %v4459_v53 }
 0x29a   : > { %v4463_v31 = vpop.eup %4462  ;;  %4472 = vrcp.f32 %v3404_v60  ;;  %v3407_v46 = vadd.f32 1.0, %v4461_v44 }
 0x29b   : > { %v4465_v6 = vpop.eup %4464  ;;  %4474 = vrcp.f32 %v3390_v54  ;;  %v3388_v5 = vadd.f32 1.0, %v4463_v31 }
 0x29c   : > { %v4467_v15 = vpop.eup %4466  ;;  %4476 = vrcp.f32 %v3407_v46  ;;  %v3405_v40 = vadd.f32 1.0, %v4465_v6 }
 0x29d   : > { %4478 = vrcp.f32 %v3388_v5  ;;  %v3391_v63 = vadd.f32 1.0, %v4467_v15 }
 0x29e   : > { %v4469_v45 = vpop.eup %4468  ;;  %4480 = vrcp.f32 %v3405_v40 }
 0x29f   : > { %4482 = vrcp.f32 %v3391_v63  ;;  %v3389_v11 = vadd.f32 1.0, %v4469_v45 }
 0x2a1   : > { %4484 = vrcp.f32 %v3389_v11 }
 0x2a5   : > { %v4471_v58 = vpop.eup %4470 }
 0x2a6   : > { %v3502_v55 = vmul.f32 %v4471_v58, %v3274_v18 }
 0x2a7   : > { %v4473_v57 = vpop.eup %4472 }
 0x2a8   : > { %v4475_v22 = vpop.eup %4474  ;;  %v4207_v0 = vpack.c.bf16 %v3502_v55, %v3502_v55  ;;  %v3500_v17 = vmul.f32 %v4473_v57, %v3266_v41 }
 0x2a9   : > { %v4477_v23 = vpop.eup %4476  ;;  %v3486_v51 = vmul.f32 %v4475_v22, %v3210_v59 }
 0x2aa   : > { %v4479_v3 = vpop.eup %4478  ;;  %3663 = vst.msk [vmem:[%s6486_s16 + $0x78] sm:$0xf] %vm3632_vm0, %v4207_v0  ;;  %v4205_v62 = vpack.c.bf16 %v3500_v17, %v3500_v17  ;;  %v3503_v19 = vmul.f32 %v4477_v23, %v3277_v7 }
 0x2ab   : > { %v4481_v36 = vpop.eup %4480  ;;  %v4191_v9 = vpack.c.bf16 %v3486_v51, %v3486_v51  ;;  %v3484_v25 = vmul.f32 %v4479_v3, %v3202_v35 }
 0x2ac   : > { %v4483_v50 = vpop.eup %4482  ;;  %3661 = vst.msk [vmem:[%s6486_s16 + $0x70] sm:$0xf] %vm3632_vm0, %v4205_v62  ;;  %v4208_v48 = vpack.c.bf16 %v3503_v19, %v3503_v19  ;;  %v3501_v37 = vmul.f32 %v4481_v36, %v3269_v20 }
 0x2ad   : > { %3647 = vst.msk [vmem:[%s6486_s16 + $0x38] sm:$0xf] %vm3632_vm0, %v4191_v9  ;;  %v4189_v38 = vpack.c.bf16 %v3484_v25, %v3484_v25  ;;  %v3487_v49 = vmul.f32 %v4483_v50, %v3213_v47 }
 0x2ae   : > { %v4485_v14 = vpop.eup %4484  ;;  %3664 = vst.msk [vmem:[%s6486_s16 + $0x7c] sm:$0xf] %vm3632_vm0, %v4208_v48  ;;  %v4206_v61 = vpack.c.bf16 %v3501_v37, %v3501_v37 }
 0x2af   : > { %3645 = vst.msk [vmem:[%s6486_s16 + $0x30] sm:$0xf] %vm3632_vm0, %v4189_v38  ;;  %v4192_v8 = vpack.c.bf16 %v3487_v49, %v3487_v49  ;;  %v3485_v32 = vmul.f32 %v4485_v14, %v3205_v28 }
 0x2b0   : > { %3662 = vst.msk [vmem:[%s6486_s16 + $0x74] sm:$0xf] %vm3632_vm0, %v4206_v61 }
 0x2b1   : > { %3648 = vst.msk [vmem:[%s6486_s16 + $0x3c] sm:$0xf] %vm3632_vm0, %v4192_v8  ;;  %v4190_v56 = vpack.c.bf16 %v3485_v32, %v3485_v32 }
 0x2b3   : > { %3646 = vst.msk [vmem:[%s6486_s16 + $0x34] sm:$0xf] %vm3632_vm0, %v4190_v56 }
 0x2b4 PF: > { %s13_s14 = sadd.s32 1, %s4539_s14   ;;  %s6600_s12 = smov %s4535_s13 }
 0x2b5   : > { %p10_p5 = scmp.ge.s32.totalorder %s13_s14, 4   ;;  %s6601_s13 = smov %s6603_s15 }
 0x2b7   :  { %12 = sbr.rel (!%p10_p5) target bundleno = 2 (0x2), region = 65 }

</bundles_post_ra>
